<compile_context>
chip_gen: v5e
topology: v5e:2x2
jax: 0.10.0
libtpu: 0.0.40
codegen_flags: <defaults>
</compile_context>

<pallas_src>
import functools
import math

import jax
import jax.numpy as jnp
from jax.experimental import pallas as pl
from jax.experimental.pallas import tpu as pltpu


def _mha_kernel(x_ref, wqkv_ref, bqkv_ref, wo_ref, bo_ref, o_ref, *, num_heads):
    """One batch element of multi-head self-attention, tokens-last layout.

    x_ref:    (1, E, S)  activations (channel-major; S = D*H*W tokens), f32
    wqkv_ref: (3E, E)    fused in_proj weight (torch layout, Q rows pre-scaled), bf16
    bqkv_ref: (3E, 1)    fused in_proj bias (Q part pre-scaled), f32
    wo_ref:   (E, E)     out_proj weight (torch layout), bf16
    bo_ref:   (E, 1)     out_proj bias, f32
    o_ref:    (1, E, S)  output, f32
    """
    xT = x_ref[0].astype(jnp.bfloat16)                       # (E, S)
    E, S = xT.shape
    hd = E // num_heads

    # Fused QKV projection: ONE (3E, E) @ (E, S) matmul (contraction over E sublanes),
    # f32 accumulate, f32 bias add. qT already carries the 1/sqrt(hd) scale.
    qkvT = jnp.dot(wqkv_ref[...], xT, preferred_element_type=jnp.float32)  # (3E, S)
    qkvT = qkvT + bqkv_ref[...]

    # Per-head views: sublane-major slices/splits of qkvT, lane dim untouched.
    qT = qkvT[0 * E:1 * E].reshape(num_heads, hd, S)                      # (H, hd, S)
    kT = qkvT[1 * E:2 * E].reshape(num_heads, hd, S).astype(jnp.bfloat16)
    vT = qkvT[2 * E:3 * E].reshape(num_heads, hd, S).astype(jnp.bfloat16)
    # Cheap minor-dims transpose of the small q tensor so the score matmul is a
    # canonical (lhs-last x rhs-first) contraction.
    qh = jnp.swapaxes(qT, 1, 2).astype(jnp.bfloat16)                      # (H, S, hd)

    # Scores + softmax over keys (lane-dim reduction), f32, exact division.
    s = jnp.einsum("hqd,hdk->hqk", qh, kT,
                   preferred_element_type=jnp.float32)                    # (H, S, S)
    s = s - jnp.max(s, axis=-1, keepdims=True)
    p = jnp.exp(s)
    p = p / jnp.sum(p, axis=-1, keepdims=True)

    # PV (contraction over keys, rhs-transposed batched matmul) -> (H, hd, S),
    # then merge heads along sublanes -> (E, S) (leading-dim reshape, no relayout).
    ohT = jnp.einsum("hdk,hqk->hdq", vT, p.astype(jnp.bfloat16),
                     preferred_element_type=jnp.float32)                  # (H, hd, S)
    attnT = ohT.reshape(E, S).astype(jnp.bfloat16)

    # Output projection: ONE (E, E) @ (E, S) matmul + bias.
    outT = jnp.dot(wo_ref[...], attnT, preferred_element_type=jnp.float32)
    o_ref[0] = (outT + bo_ref[...]).astype(o_ref.dtype)


def mha_pallas(x_bes, wqkv, bqkv, wo, bo, num_heads):
    """x_bes: (B, E, S) f32 tokens-last activations. Weights pre-packed (see _prep_params)."""
    B, E, S = x_bes.shape
    kernel = functools.partial(_mha_kernel, num_heads=num_heads)

    return pl.pallas_call(
        kernel,
        out_shape=jax.ShapeDtypeStruct((B, E, S), jnp.float32),
        grid_spec=pltpu.PrefetchScalarGridSpec(
            num_scalar_prefetch=0,
            grid=(B,),
            in_specs=[
                pl.BlockSpec((1, E, S), lambda b: (b, 0, 0)),      # x (tokens-last)
                pl.BlockSpec((3 * E, E), lambda b: (0, 0)),        # fused in_proj W (bf16)
                pl.BlockSpec((3 * E, 1), lambda b: (0, 0)),        # fused in_proj b (f32)
                pl.BlockSpec((E, E), lambda b: (0, 0)),            # out_proj W (bf16)
                pl.BlockSpec((E, 1), lambda b: (0, 0)),            # out_proj b (f32)
            ],
            out_specs=pl.BlockSpec((1, E, S), lambda b: (b, 0, 0)),
        ),
        compiler_params=pltpu.CompilerParams(
            dimension_semantics=("parallel",),
            vmem_limit_bytes=32 * 1024 * 1024,
        ),
    )(x_bes, wqkv, bqkv, wo, bo)


def _prep_params(params, num_heads):
    """Host-side (trace-time) repack of torch-convention weights for the tokens-last kernel.

    torch: q = x @ Wq^T + bq  ==>  tokens-last: qT = Wq @ xT + bq[:, None]
    so in_proj weights are used in their NATIVE (3E, E) layout (no transpose), and
    out = attn @ Wo^T + bo  ==>  outT = Wo @ attnT + bo[:, None] (native (E, E) layout).
    The 1/sqrt(hd) attention scale is folded into the Q rows / bias.
    """
    wq, wk, wv = params["wq"], params["wk"], params["wv"]
    bq, bk, bv = params["bq"], params["bk"], params["bv"]
    wo, bo = params["wo"], params["bo"]
    E = wq.shape[0]
    hd = E // num_heads
    scale = 1.0 / math.sqrt(hd)

    wqkv = jnp.concatenate([wq * scale, wk, wv], axis=0).astype(jnp.bfloat16)   # (3E, E)
    bqkv = jnp.concatenate([bq[0] * scale, bk[0], bv[0]], axis=0).reshape(3 * E, 1)
    wo_b = wo.astype(jnp.bfloat16)                                              # (E, E)
    bo_c = bo[0].reshape(E, 1)                                                  # (E, 1)
    return wqkv, bqkv.astype(jnp.float32), wo_b, bo_c.astype(jnp.float32)


def global_multi_head_attention(x, params, num_heads):
    """x: (B, C, D, H, W) f32 (NCDHW, PyTorch convention)."""
    B, C, D, H, W = x.shape
    assert C % num_heads == 0, "embed_dim must be divisible by num_heads"
    S = D * H * W
    # Tokens-last layout is a pure reshape of NCDHW: no transposes in either direction
    # (attention only needs a consistent token order; channel stays the embedding dim).
    x_bes = x.reshape(B, C, S)
    wqkv, bqkv, wo_b, bo_c = _prep_params(params, num_heads)
    o_bes = mha_pallas(x_bes, wqkv, bqkv, wo_b, bo_c, num_heads)
    return o_bes.reshape(B, C, D, H, W)


def init_params(key, embed_dim):
    """nn.MultiheadAttention parameter shapes: in_proj (3E,E)+(3E,), out_proj (E,E)+(E,).
    Biases are randomized (instead of torch's zero init) so the bias path is exercised."""
    k1, k2, k3, k4 = jax.random.split(key, 4)
    E = embed_dim
    bound = 1.0 / math.sqrt(E)
    in_proj_w = jax.random.uniform(k1, (3 * E, E), jnp.float32, -bound, bound)
    out_proj_w = jax.random.uniform(k2, (E, E), jnp.float32, -bound, bound)
    in_proj_b = jax.random.uniform(k3, (3 * E,), jnp.float32, -bound, bound)
    out_proj_b = jax.random.uniform(k4, (E,), jnp.float32, -bound, bound)
    return {
        "wq": in_proj_w[0 * E:1 * E],
        "wk": in_proj_w[1 * E:2 * E],
        "wv": in_proj_w[2 * E:3 * E],
        "bq": in_proj_b[0 * E:1 * E].reshape(1, E),
        "bk": in_proj_b[1 * E:2 * E].reshape(1, E),
        "bv": in_proj_b[2 * E:3 * E].reshape(1, E),
        "wo": out_proj_w,
        "bo": out_proj_b.reshape(1, E),
    }


def _reference(x_bse, params, num_heads):
    """Pure-JAX f32 reference matching nn.MultiheadAttention (no mask, no dropout)."""
    wq, wk, wv = params["wq"], params["wk"], params["wv"]
    bq, bk, bv = params["bq"], params["bk"], params["bv"]
    wo, bo = params["wo"], params["bo"]
    B, S, E = x_bse.shape
    hd = E // num_heads
    hp = jax.lax.Precision.HIGHEST
    q = jnp.einsum("bse,fe->bsf", x_bse, wq, precision=hp) + bq[0]
    k = jnp.einsum("bse,fe->bsf", x_bse, wk, precision=hp) + bk[0]
    v = jnp.einsum("bse,fe->bsf", x_bse, wv, precision=hp) + bv[0]

    def split(t):
        return t.reshape(B, S, num_heads, hd).transpose(0, 2, 1, 3)   # (B,H,S,hd)

    qh, kh, vh = split(q), split(k), split(v)
    s = jnp.einsum("bhqd,bhkd->bhqk", qh * (1.0 / math.sqrt(hd)), kh, precision=hp)
    p = jax.nn.softmax(s, axis=-1)
    oh = jnp.einsum("bhqk,bhkd->bhqd", p, vh, precision=hp)
    attn = oh.transpose(0, 2, 1, 3).reshape(B, S, E)
    return jnp.einsum("bse,fe->bsf", attn, wo, precision=hp) + bo[0]


if __name__ == "__main__":
    # embed_dim = C = 32, num_heads = 4, spatial (D,H,W) = (4,4,8) -> S = 128 (lane-dense).
    B, C, D, H, W = 2, 32, 4, 4, 8
    num_heads = 4

    key = jax.random.PRNGKey(0)
    kx, kp = jax.random.split(key)
    x = jax.random.normal(kx, (B, C, D, H, W), jnp.float32)
    params = init_params(kp, C)

    out = global_multi_head_attention(x, params, num_heads)
    out = jax.block_until_ready(out)
    assert out.shape == (B, C, D, H, W), out.shape
    assert bool(jnp.all(jnp.isfinite(out)))

    # Cross-check against the f32 reference. Tolerance covers the bf16 MXU operands
    # (softmax itself is exact-f32; approx reciprocal was removed).
    x_bse = jnp.transpose(x, (0, 2, 3, 4, 1)).reshape(B, D * H * W, C)
    ref_bse = _reference(x_bse, params, num_heads)
    ref = jnp.transpose(ref_bse.reshape(B, D, H, W, C), (0, 4, 1, 2, 3))
    max_err = float(jnp.max(jnp.abs(out - ref)))
    assert max_err < 6e-2, f"max abs err {max_err}"

    print("KERNEL_OK")
</pallas_src>

<mosaic_0001>
module attributes {stable_mosaic.version = 11 : i64} {
  func.func @_mha_kernel(%arg0: i32, %arg1: memref<1x32x128xf32, #tpu.memory_space<vmem>>, %arg2: memref<96x32xbf16, #tpu.memory_space<vmem>>, %arg3: memref<96x1xf32, #tpu.memory_space<vmem>>, %arg4: memref<32x32xbf16, #tpu.memory_space<vmem>>, %arg5: memref<32x1xf32, #tpu.memory_space<vmem>>, %arg6: memref<1x32x128xf32, #tpu.memory_space<vmem>>) attributes {dimension_semantics = [#tpu.dimension_semantics<parallel>], iteration_bounds = array<i64: 2>, scalar_prefetch = 0 : i64, scratch_operands = 0 : i64, tpu.core_type = #tpu.core_type<tc>, window_params = [{transform_indices = @transform_0, window_bounds = array<i64: 1, 32, 128>}, {pipeline_mode = #tpu.pipeline_mode<synchronous>, transform_indices = @transform_1, window_bounds = array<i64: 96, 32>}, {pipeline_mode = #tpu.pipeline_mode<synchronous>, transform_indices = @transform_2, window_bounds = array<i64: 96, 1>}, {pipeline_mode = #tpu.pipeline_mode<synchronous>, transform_indices = @transform_3, window_bounds = array<i64: 32, 32>}, {pipeline_mode = #tpu.pipeline_mode<synchronous>, transform_indices = @transform_4, window_bounds = array<i64: 32, 1>}, {transform_indices = @transform_5, window_bounds = array<i64: 1, 32, 128>}]} {
    %c0 = arith.constant 0 : index
    %c0_0 = arith.constant 0 : index
    %c0_1 = arith.constant 0 : index
    %0 = vector.load %arg1[%c0, %c0_0, %c0_1] : memref<1x32x128xf32, #tpu.memory_space<vmem>>, vector<1x32x128xf32>
    %1 = vector.shape_cast %0 : vector<1x32x128xf32> to vector<32x128xf32>
    %2 = arith.truncf %1 : vector<32x128xf32> to vector<32x128xbf16>
    %c0_2 = arith.constant 0 : index
    %c0_3 = arith.constant 0 : index
    %3 = vector.load %arg2[%c0_2, %c0_3] : memref<96x32xbf16, #tpu.memory_space<vmem>>, vector<96x32xbf16>
    %cst = arith.constant dense<0.000000e+00> : vector<96x128xf32>
    %4 = tpu.matmul %3, %2, %cst {dimension_numbers = #tpu.dot_dimension_numbers<[1], [0], [0], [1], [0, 0, 1, 1], [], []>} : vector<96x32xbf16>, vector<32x128xbf16>, vector<96x128xf32> -> vector<96x128xf32>
    %c0_4 = arith.constant 0 : index
    %c0_5 = arith.constant 0 : index
    %5 = vector.load %arg3[%c0_4, %c0_5] : memref<96x1xf32, #tpu.memory_space<vmem>>, vector<96x1xf32>
    %6 = vector.broadcast %5 : vector<96x1xf32> to vector<96x128xf32>
    %7 = arith.addf %4, %6 : vector<96x128xf32>
    %8 = vector.extract_strided_slice %7 {offsets = [0, 0], sizes = [32, 128], strides = [1, 1]} : vector<96x128xf32> to vector<32x128xf32>
    %9 = vector.shape_cast %8 : vector<32x128xf32> to vector<4x8x128xf32>
    %10 = vector.extract_strided_slice %7 {offsets = [32, 0], sizes = [32, 128], strides = [1, 1]} : vector<96x128xf32> to vector<32x128xf32>
    %11 = vector.shape_cast %10 : vector<32x128xf32> to vector<4x8x128xf32>
    %12 = arith.truncf %11 : vector<4x8x128xf32> to vector<4x8x128xbf16>
    %13 = vector.extract_strided_slice %7 {offsets = [64, 0], sizes = [32, 128], strides = [1, 1]} : vector<96x128xf32> to vector<32x128xf32>
    %14 = vector.shape_cast %13 : vector<32x128xf32> to vector<4x8x128xf32>
    %15 = arith.truncf %14 : vector<4x8x128xf32> to vector<4x8x128xbf16>
    %16 = tpu.transpose %9, [0, 2, 1] : vector<4x8x128xf32> -> vector<4x128x8xf32>
    %17 = arith.truncf %16 : vector<4x128x8xf32> to vector<4x128x8xbf16>
    "tpu.trace_start"() <{level = 10 : i32, message = "hqd,hdk->hqk"}> : () -> ()
    %cst_6 = arith.constant dense<0.000000e+00> : vector<4x128x128xf32>
    %18 = tpu.matmul %17, %12, %cst_6 {dimension_numbers = #tpu.dot_dimension_numbers<[2], [1], [1], [2], [0, 0, 0, 1, 1, 2], [0], [0]>} : vector<4x128x8xbf16>, vector<4x8x128xbf16>, vector<4x128x128xf32> -> vector<4x128x128xf32>
    "tpu.trace_stop"() : () -> ()
    %cst_7 = arith.constant dense<0xFF800000> : vector<4x128xf32>
    %19 = vector.multi_reduction <maximumf>, %18, %cst_7 [2] : vector<4x128x128xf32> to vector<4x128xf32>
    %20 = vector.shape_cast %19 : vector<4x128xf32> to vector<4x128x1xf32>
    %21 = vector.broadcast %20 : vector<4x128x1xf32> to vector<4x128x128xf32>
    %22 = arith.subf %18, %21 : vector<4x128x128xf32>
    %23 = math.exp %22 : vector<4x128x128xf32>
    %cst_8 = arith.constant dense<0.000000e+00> : vector<4x128xf32>
    %24 = vector.multi_reduction <add>, %23, %cst_8 [2] : vector<4x128x128xf32> to vector<4x128xf32>
    %25 = vector.shape_cast %24 : vector<4x128xf32> to vector<4x128x1xf32>
    %26 = vector.broadcast %25 : vector<4x128x1xf32> to vector<4x128x128xf32>
    %27 = arith.divf %23, %26 : vector<4x128x128xf32>
    %28 = arith.truncf %27 : vector<4x128x128xf32> to vector<4x128x128xbf16>
    "tpu.trace_start"() <{level = 10 : i32, message = "hdk,hqk->hdq"}> : () -> ()
    %cst_9 = arith.constant dense<0.000000e+00> : vector<4x8x128xf32>
    %29 = tpu.matmul %15, %28, %cst_9 {dimension_numbers = #tpu.dot_dimension_numbers<[2], [2], [1], [1], [0, 0, 0, 1, 1, 1], [0], [0]>} : vector<4x8x128xbf16>, vector<4x128x128xbf16>, vector<4x8x128xf32> -> vector<4x8x128xf32>
    "tpu.trace_stop"() : () -> ()
    %30 = vector.shape_cast %29 : vector<4x8x128xf32> to vector<32x128xf32>
    %31 = arith.truncf %30 : vector<32x128xf32> to vector<32x128xbf16>
    %c0_10 = arith.constant 0 : index
    %c0_11 = arith.constant 0 : index
    %32 = vector.load %arg4[%c0_10, %c0_11] : memref<32x32xbf16, #tpu.memory_space<vmem>>, vector<32x32xbf16>
    %cst_12 = arith.constant dense<0.000000e+00> : vector<32x128xf32>
    %33 = tpu.matmul %32, %31, %cst_12 {dimension_numbers = #tpu.dot_dimension_numbers<[1], [0], [0], [1], [0, 0, 1, 1], [], []>} : vector<32x32xbf16>, vector<32x128xbf16>, vector<32x128xf32> -> vector<32x128xf32>
    %c0_13 = arith.constant 0 : index
    %c0_14 = arith.constant 0 : index
    %34 = vector.load %arg5[%c0_13, %c0_14] : memref<32x1xf32, #tpu.memory_space<vmem>>, vector<32x1xf32>
    %35 = vector.broadcast %34 : vector<32x1xf32> to vector<32x128xf32>
    %36 = arith.addf %33, %35 : vector<32x128xf32>
    %c0_15 = arith.constant 0 : index
    %c0_16 = arith.constant 0 : index
    %c0_17 = arith.constant 0 : index
    %37 = vector.load %arg6[%c0_15, %c0_16, %c0_17] : memref<1x32x128xf32, #tpu.memory_space<vmem>>, vector<1x32x128xf32>
    %38 = vector.shape_cast %37 : vector<1x32x128xf32> to vector<32x128xf32>
    %39 = vector.shape_cast %36 : vector<32x128xf32> to vector<1x32x128xf32>
    tpu.vector_store %arg6[%c0_15, %c0_16, %c0_17], %39 {strides = array<i32>} : memref<1x32x128xf32, #tpu.memory_space<vmem>>, vector<1x32x128xf32>,
    return
  }
  func.func @transform_0(%arg0: i32) -> (i32, i32, i32) {
    %c0_i32 = arith.constant 0 : i32
    %c0_i32_0 = arith.constant 0 : i32
    %c0_i32_1 = arith.constant 0 : i32
    return %arg0, %c0_i32, %c0_i32_0 : i32, i32, i32
  }
  func.func @transform_1(%arg0: i32) -> (i32, i32) {
    %c0_i32 = arith.constant 0 : i32
    %c0_i32_0 = arith.constant 0 : i32
    %c0_i32_1 = arith.constant 0 : i32
    return %c0_i32, %c0_i32_0 : i32, i32
  }
  func.func @transform_2(%arg0: i32) -> (i32, i32) {
    %c0_i32 = arith.constant 0 : i32
    %c0_i32_0 = arith.constant 0 : i32
    %c0_i32_1 = arith.constant 0 : i32
    return %c0_i32, %c0_i32_0 : i32, i32
  }
  func.func @transform_3(%arg0: i32) -> (i32, i32) {
    %c0_i32 = arith.constant 0 : i32
    %c0_i32_0 = arith.constant 0 : i32
    %c0_i32_1 = arith.constant 0 : i32
    return %c0_i32, %c0_i32_0 : i32, i32
  }
  func.func @transform_4(%arg0: i32) -> (i32, i32) {
    %c0_i32 = arith.constant 0 : i32
    %c0_i32_0 = arith.constant 0 : i32
    %c0_i32_1 = arith.constant 0 : i32
    return %c0_i32, %c0_i32_0 : i32, i32
  }
  func.func @transform_5(%arg0: i32) -> (i32, i32, i32) {
    %c0_i32 = arith.constant 0 : i32
    %c0_i32_0 = arith.constant 0 : i32
    %c0_i32_1 = arith.constant 0 : i32
    return %arg0, %c0_i32, %c0_i32_0 : i32, i32, i32
  }
}

</mosaic_0001>

<bundles_post_ra>
// kernel: tpu_custom_call.1
= control target key start
LH: loop header
LB: loop body
LE: loop exit
PB: predicated region body
PF: predicated region fallthrough
CT: control target
= control target key end

     0   :  { %10 = vsyncpa [#allocation3], 0  ;;  %s6406_s0 = inlined_call_operand.vmem [shape: f32[2,32,128], index: 0, kind: input, shape index: {}]   ;;  %s6407_s1 = inlined_call_operand.vmem [shape: bf16[96,32], index: 1, kind: input, shape index: {}]   ;;  %s6408_s2 = inlined_call_operand.vmem [shape: f32[96,1], index: 2, kind: input, shape index: {}]   ;;  %s6409_s3 = inlined_call_operand.vmem [shape: bf16[32,32], index: 3, kind: input, shape index: {}]   ;;  %s6410_s4 = inlined_call_operand.vmem [shape: f32[32,1], index: 4, kind: input, shape index: {}]   ;;  %s6411_s5 = inlined_call_operand.hbm [shape: f32[2,32,128], index: 5, kind: output, shape index: {}]  }
   0x1   :  { %12 = vsyncpa [#allocation3 + $0x1], 0  ;;  %s3509_s18 = smov 0   ;;  %s3511_s19 = smov 0  }
   0x2   :  { %s3513_s20 = smov 0   ;;  %s3515_s21 = smov 0  }
   0x3 LB: > { %s3530_s22 = sadd.s32 4294967295, %s3474_s21   ;;  %s2931_s23 = sadd.s32 4294967294, %s3474_s21   ;;  %s3474_s21 = sphi %s3515_s21, %s7119_s21   ;;  %s3470_s20 = sphi %s3513_s20, %s7118_s20   ;;  %s3466_s19 = sphi %s3511_s19, %s7117_s19   ;;  %s3462_s18 = sphi %s3509_s18, %s7116_s18  }
   0x4   : > { %s3534_s24 = sadd.s32 1, %s3474_s21   ;;  %s135_s25 = sadd.s32 1, %s3470_s20 }
   0x5   : > { %s132_s26 = ssub.s32 %s3474_s21, %s3534_s24  ;;  %p145_p0 = scmp.ne.s32.totalorder %s3470_s20, %s3466_s19 }
   0x6   : > { %p133_p1 = scmp.eq.s32.totalorder %s132_s26, 0  ;;  %p146_p2 = scmp.eq.s32.totalorder %s3530_s22, 1 }
   0x7   : > { %p151_p3 = scmp.ne.s32.totalorder %s3466_s19, %s3462_s18  ;;  %p152_p4 = scmp.eq.s32.totalorder %s2931_s23, 1 }
   0x8   : > { %s3545_s27 = scalar_select %p133_p1, %s3470_s20, %s135_s25  }
   0x9   : > { %p3547_p5 = por %p146_p2, %p145_p0  ;;  %p3551_p6 = por %p152_p4, %p151_p3 }
   0xa   : > { %p2934_p7 = scmp.ge.s32.totalorder %s3474_s21, 1  ;;  %p190_p8 = scmp.lt.s32.totalorder %s3474_s21, 3 }
   0xc   : > { %p191_p9 = pnand %p2934_p7, %p190_p8 }
   0xe   : > { %194 = sbr.rel (%p191_p9) target bundleno = 1425 (0x591), region = 40 }
  0x13   : > { %p218_p10 = scmp.lt.s32.totalorder %s3530_s22, 1  ;;  %v244_v0 = vld [vmem:[%s6408_s2 + $0x10] sm:$0xff]  ;;  %v3476_v1 = vmov 0   ;;  %v242_v2 = vld [vmem:[%s6408_s2] sm:$0xff]  ;;  %v243_v8 = vld [vmem:[%s6408_s2 + $0x8] sm:$0xff]  ;;  %vm6531_vm0 = vcmask 261120  }
  0x14   : > { %3072 = vset.pattern.permute.xlu1 %v3476_v1  ;;  %3071 = vset.pattern.permute.xlu0 %v3476_v1  ;;  %v3016_v10 = vld [vmem:[%s6407_s1] sm:$0xff]  ;;  %v248_v11 = vld [vmem:[%s6408_s2 + $0x30] sm:$0xff]  ;;  %v245_v13 = vld [vmem:[%s6408_s2 + $0x18] sm:$0xff]  ;;  %vm667_vm1 = vcmask 1043456   ;;  %vm642_vm2 = vcmask 64512   ;;  %s3432_s7 = scalar_lea.hbm %s6411_s5, 64 }
  0x15   : > { %s219_s9 = scalar_select %p218_p10, %s3530_s22, 1  ;;  %266 = vperm.xlu1 %3072, %v244_v0   ;;  %256 = vperm.xlu0 %3071, %v242_v2   ;;  %v246_v12 = vld [vmem:[%s6408_s2 + $0x20] sm:$0xff]  ;;  %v249_v14 = vld [vmem:[%s6408_s2 + $0x38] sm:$0xff]  ;;  %v3017_v15 = vld [vmem:[%s6407_s1 + $0x8] sm:$0xff] }
  0x16   : > { %3073 = vset.pattern.permute.xlu2 %v3476_v1  ;;  %v247_v16 = vld [vmem:[%s6408_s2 + $0x28] sm:$0xff]  ;;  %v3018_v17 = vld [vmem:[%s6407_s1 + $0x10] sm:$0xff]  ;;  %v3019_v18 = vld [vmem:[%s6407_s1 + $0x18] sm:$0xff] }
  0x17   : > { %s3015_s10 = sshll.u32 %s219_s9, 5  ;;  %276 = vperm.xlu2 %3073, %v246_v12   ;;  %v3020_v33 = vld [vmem:[%s6407_s1 + $0x20] sm:$0xff]  ;;  %v3021_v53 = vld [vmem:[%s6407_s1 + $0x28] sm:$0xff] }
  0x18   : > { %s222_s13 = scalar_lea.vmem %s6406_s0, %s3015_s10  ;;  %s215_s10 = sand.u32 1, %s3466_s19  }
  0x19   : > { %v226_v3 = vld [vmem:[%s222_s13 + $0x10] sm:$0xff]  ;;  %v227_v4 = vld [vmem:[%s222_s13 + $0x18] sm:$0xff]  ;;  %v224_v5 = vld [vmem:[%s222_s13] sm:$0xff]  ;;  %s2935_s11 = sshll.u32 %s215_s10, 5  ;;  %s2854_s25 = scalar_lea.sflag [#allocation3], %s215_s10 }
  0x1a   : > { %v229_v6 = vpack.c.bf16 %v227_v4, %v226_v3  ;;  %v225_v7 = vld [vmem:[%s222_s13 + $0x8] sm:$0xff]  ;;  %s217_s12 = scalar_lea.vmem [#allocation2], %s2935_s11  ;;  %s3024_s13 = sshll.u32 %s3530_s22, 5 }
  0x1b   : > { %v228_v9 = vpack.c.bf16 %v225_v7, %v224_v5  ;;  %s2865_s16 = scalar_lea.hbm %s6411_s5, %s3024_s13  ;;  %s2866_s17 = sshll.u32 %s217_s12, 4  ;;  %s2867_s17 = int_to_ptr.vmem [resolvable:$true] %s2866_s17 }
  0x1c   : > { %369 = vmatpush.bf16.msra.mxu0 %v229_v6  ;;  %3025 = vmatpush.bf16.msra.mxu3 %v229_v6  ;;  %s2868_s23 = sshll.u32 %s2865_s16, 4  ;;  %s2869_s23 = int_to_ptr.hbm [resolvable:$true] %s2868_s23 }
  0x1d   : > { %261 = vperm.xlu1 %3072, %v243_v8   ;;  %s3426_s26 = sshra.s32 %s2869_s23, 4  ;;  %s3427_s26 = int_to_ptr.hbm [resolvable:$true] %s3426_s26 }
  0x1e   : > { %s3428_s30 = scalar_lea.hbm %s3427_s26, 32  ;;  %p3433_p0 = scmp.lt.s32.totalorder %s3427_s26, %s6411_s5 }
  0x1f   : > { %271 = vperm.xlu2 %3073, %v245_v13   ;;  %p3429_p11 = scmp.ne.s32.totalorder %s3427_s26, %s3428_s30  ;;  %p3434_p1 = scmp.lt.s32.totalorder %s3432_s7, %s3428_s30 }
  0x20   : > { %370 = vmatpush.bf16.msra.mxu0 %v228_v9  ;;  %3026 = vmatpush.bf16.msra.mxu3 %v228_v9 }
  0x21   : > { %p3430_p12 = pnand %p3429_p11, %p3547_p5  ;;  %p3435_p2 = por %p3434_p1, %p3433_p0 }
  0x23   : > { %2962 = vmatmul.msk.bf16.vlgmr.msra.gmra.mxu0 %vm6531_vm0, %v3016_v10  ;;  %2966 = vmatmul.msk.bf16.vlgmr.msra.gmra.mxu3 %vm6531_vm0, %v3020_v33  ;;  %p3431_p13 = pneg %p3430_p12 }
  0x25   : > { %286 = vperm.xlu1 %3072, %v248_v11   ;;  %p3436_p3 = pnand %p3435_p2, %p3431_p13 }
  0x27   : > { %281 = vperm.xlu2 %3073, %v247_v16  }
  0x2d   : > { %291 = vperm.xlu1 %3072, %v249_v14  }
  0x33   : > { %2963 = vmatmul.msk.bf16.gmra.mxu0 %vm6531_vm0, %v3017_v15  ;;  %2967 = vmatmul.msk.bf16.gmra.mxu3 %vm6531_vm0, %v3021_v53 }
  0x43   : > { %2964 = vmatmul.msk.bf16.gmra.mxu0 %vm6531_vm0, %v3018_v17 }
  0x53   : > { %2965 = vmatmul.msk.bf16.gmra.mxu0 %vm6531_vm0, %v3019_v18 }
  0x71   : > { %v277_v24 = vpop.permute.xlu2 %276 }
  0x79   : > { %v272_v30 = vpop.permute.xlu2 %271 }
  0x81   : > { %v282_v38 = vpop.permute.xlu2 %281 }
  0x87   : > { %v257_v19 = vpop.permute.xlu0 %256  ;;  %v267_v22 = vpop.permute.xlu1 %266 }
  0x8f   : > { %v262_v25 = vpop.permute.xlu1 %261 }
  0x97   : > { %v287_v43 = vpop.permute.xlu1 %286 }
  0x9f   : > { %v292_v48 = vpop.permute.xlu1 %291 }
  0xa0   : > { %v372_v20 = vpop.f32.mrf.mxu0 }
  0xa1   : > { %v373_v21 = vadd.f32 %v372_v20, %v257_v19 }
  0xa3   : > { %410 = vxpose.xlu0.b32.start.end [1/1] (short) %v373_v21, 128 }
  0xa8   : > { %v374_v23 = vpop.f32.mrf.mxu0 }
  0xa9   : > { %v375_v27 = vadd.f32 %v374_v23, %v262_v25 }
  0xb0   : > { %v377_v26 = vpop.f32.mrf.mxu0 }
  0xb1   : > { %v378_v28 = vadd.f32 %v377_v26, %v267_v22 }
  0xb3   : > { %v3074_v29 = vpack.i.bf16 %v375_v27, %v378_v28 }
  0xb5   : > { %3075 = vxpose.xlu2.b32.start.end [1/1] (short) %v3074_v29, 128 }
  0xb8   : > { %v379_v31 = vpop.f32.mrf.mxu0 }
  0xb9   : > { %v380_v32 = vadd.f32 %v379_v31, %v272_v30 }
  0xbb   : > { %506 = vxpose.xlu1.b32.start.end [1/1] (short) %v380_v32, 128 }
  0xc0   : > { %v382_v34 = vpop.f32.mrf.mxu0 }
  0xc1   : > { %v383_v35 = vadd.f32 %v382_v34, %v277_v24 }
  0xc3   : > { %v402_v36 = vpack.c.bf16 %v383_v35, %v383_v35 }
  0xc5   : > { %v669_v37 = vsel %vm667_vm1, %v402_v36, 0 }
  0xc6   : > { %678 = vmatpush.bf16.msra.mxu1 %v669_v37  ;;  %3027 = vmatpush.bf16.msra.mxu2 %v669_v37 }
  0xc8   : > { %v384_v39 = vpop.f32.mrf.mxu0 }
  0xc9   : > { %v385_v40 = vadd.f32 %v384_v39, %v282_v38 }
  0xcb   : > { %v403_v41 = vpack.c.bf16 %v385_v40, %v385_v40 }
  0xcd   : > { %v785_v42 = vsel %vm667_vm1, %v403_v41, 0 }
  0xce   : > { %794 = vmatpush.bf16.msrb.mxu2 %v785_v42 }
  0xd0   : > { %v387_v44 = vpop.f32.mrf.mxu0 }
  0xd1   : > { %v388_v45 = vadd.f32 %v387_v44, %v287_v43 }
  0xd3   : > { %v404_v46 = vpack.c.bf16 %v388_v45, %v388_v45 }
  0xd5   : > { %v901_v47 = vsel %vm667_vm1, %v404_v46, 0 }
  0xd6   : > { %910 = vmatpush.bf16.msrb.mxu3 %v901_v47 }
  0xd8   : > { %v389_v49 = vpop.f32.mrf.mxu0 }
  0xd9   : > { %v390_v50 = vadd.f32 %v389_v49, %v292_v48 }
  0xdb   : > { %v405_v51 = vpack.c.bf16 %v390_v50, %v390_v50 }
  0xdd   : > { %v1017_v52 = vsel %vm667_vm1, %v405_v51, 0 }
  0xde   : > { %1026 = vmatpush.bf16.msrb.mxu0 %v1017_v52 }
 0x147   : > { %v426_v54 = vpop.trf.xlu0 }
 0x148   : > { %v538_v55 = vpack.c.bf16 %v426_v54, %v426_v54 }
 0x14a   : > { %v618_v59 = vunpack.c.l.b16 %v538_v55 }
 0x14e   : > { %v3614_v56 = vpop.trf.xlu2 }
 0x14f   : > { %v427_v57 = vpop.trf.xlu0  ;;  %v3077_v61 = vunpack.i.l.bf16 %v3614_v56 }
 0x150   : > { %v539_v58 = vpack.c.bf16 %v427_v57, %v427_v57 }
 0x151   : > { %v570_v0 = vpack.c.bf16 %v3077_v61, %v3077_v61 }
 0x152   : > { %v619_v60 = vunpack.c.l.b16 %v539_v58 }
 0x153   : > { %v852_v4 = vunpack.c.l.b16 %v570_v0 }
 0x154   : > { %v634_v62 = vpack.c.b16 %v619_v60, %v618_v59 }
 0x156   : > { %v3617_v63 = vpop.trf.xlu2  ;;  %2968 = vmatmul.msk.bf16.vlgmr.msra.gmra.mxu1 %vm642_vm2, %v634_v62 }
 0x157   : > { %v3082_v1 = vunpack.i.l.bf16 %v3617_v63  ;;  %v428_v2 = vpop.trf.xlu0 }
 0x158   : > { %v540_v7 = vpack.c.bf16 %v428_v2, %v428_v2 }
 0x159   : > { %v571_v3 = vpack.c.bf16 %v3082_v1, %v3082_v1 }
 0x15a   : > { %v620_v12 = vunpack.c.l.b16 %v540_v7 }
 0x15b   : > { %v853_v5 = vunpack.c.l.b16 %v571_v3 }
 0x15d   : > { %v868_v6 = vpack.c.b16 %v853_v5, %v852_v4 }
 0x15e   : > { %v3621_v8 = vpop.trf.xlu2 }
 0x15f   : > { %v522_v9 = vpop.trf.xlu1  ;;  %2984 = vmatmul.msk.bf16.vlgmr.msrb.gmra.mxu3 %vm642_vm2, %v868_v6  ;;  %v429_v10 = vpop.trf.xlu0  ;;  %v3087_v14 = vunpack.i.l.bf16 %v3621_v8 }
 0x160   : > { %v541_v11 = vpack.c.bf16 %v429_v10, %v429_v10  ;;  %v586_v16 = vpack.c.bf16 %v522_v9, %v522_v9 }
 0x161   : > { %v572_v21 = vpack.c.bf16 %v3087_v14, %v3087_v14 }
 0x162   : > { %v621_v13 = vunpack.c.l.b16 %v541_v11  ;;  %v968_v24 = vunpack.c.l.b16 %v586_v16 }
 0x163   : > { %v854_v27 = vunpack.c.l.b16 %v572_v21 }
 0x164   : > { %v635_v15 = vpack.c.b16 %v621_v13, %v620_v12 }
 0x166   : > { %v3625_v17 = vpop.trf.xlu2  ;;  %2969 = vmatmul.msk.bf16.gmra.mxu1 %vm642_vm2, %v635_v15 }
 0x167   : > { %v523_v18 = vpop.trf.xlu1  ;;  %v430_v19 = vpop.trf.xlu0  ;;  %v3092_v20 = vunpack.i.l.bf16 %v3625_v17 }
 0x168   : > { %v587_v22 = vpack.c.bf16 %v523_v18, %v523_v18  ;;  %v542_v30 = vpack.c.bf16 %v430_v19, %v430_v19 }
 0x169   : > { %v573_v23 = vpack.c.bf16 %v3092_v20, %v3092_v20 }
 0x16a   : > { %v969_v25 = vunpack.c.l.b16 %v587_v22  ;;  %v622_v35 = vunpack.c.l.b16 %v542_v30 }
 0x16b   : > { %v855_v26 = vunpack.c.l.b16 %v573_v23 }
 0x16c   : > { %v984_v28 = vpack.c.b16 %v969_v25, %v968_v24 }
 0x16d   : > { %v869_v29 = vpack.c.b16 %v855_v26, %v854_v27 }
 0x16e   : > { %2992 = vmatmul.msk.bf16.vlgmr.msrb.gmra.mxu0 %vm642_vm2, %v984_v28  ;;  %v3630_v31 = vpop.trf.xlu2 }
 0x16f   : > { %v524_v32 = vpop.trf.xlu1  ;;  %2985 = vmatmul.msk.bf16.gmra.mxu3 %vm642_vm2, %v869_v29  ;;  %v431_v33 = vpop.trf.xlu0  ;;  %v3097_v37 = vunpack.i.l.bf16 %v3630_v31 }
 0x170   : > { %v543_v34 = vpack.c.bf16 %v431_v33, %v431_v33  ;;  %v588_v39 = vpack.c.bf16 %v524_v32, %v524_v32 }
 0x171   : > { %v574_v44 = vpack.c.bf16 %v3097_v37, %v3097_v37 }
 0x172   : > { %v623_v36 = vunpack.c.l.b16 %v543_v34  ;;  %v970_v47 = vunpack.c.l.b16 %v588_v39 }
 0x173   : > { %v856_v50 = vunpack.c.l.b16 %v574_v44 }
 0x174   : > { %v636_v38 = vpack.c.b16 %v623_v36, %v622_v35 }
 0x176   : > { %v3634_v40 = vpop.trf.xlu2  ;;  %2970 = vmatmul.msk.bf16.gmra.mxu1 %vm642_vm2, %v636_v38 }
 0x177   : > { %v525_v41 = vpop.trf.xlu1  ;;  %v432_v42 = vpop.trf.xlu0  ;;  %v3102_v43 = vunpack.i.l.bf16 %v3634_v40 }
 0x178   : > { %v589_v45 = vpack.c.bf16 %v525_v41, %v525_v41  ;;  %v544_v53 = vpack.c.bf16 %v432_v42, %v432_v42 }
 0x179   : > { %v575_v46 = vpack.c.bf16 %v3102_v43, %v3102_v43 }
 0x17a   : > { %v971_v48 = vunpack.c.l.b16 %v589_v45  ;;  %v624_v59 = vunpack.c.l.b16 %v544_v53 }
 0x17b   : > { %v857_v49 = vunpack.c.l.b16 %v575_v46 }
 0x17c   : > { %v985_v51 = vpack.c.b16 %v971_v48, %v970_v47 }
 0x17d   : > { %v870_v52 = vpack.c.b16 %v857_v49, %v856_v50 }
 0x17e   : > { %2993 = vmatmul.msk.bf16.gmra.mxu0 %vm642_vm2, %v985_v51  ;;  %v3639_v54 = vpop.trf.xlu2 }
 0x17f   : > { %v526_v55 = vpop.trf.xlu1  ;;  %2986 = vmatmul.msk.bf16.gmra.mxu3 %vm642_vm2, %v870_v52  ;;  %v433_v57 = vpop.trf.xlu0  ;;  %v3107_v61 = vunpack.i.l.bf16 %v3639_v54 }
 0x180   : > { %v545_v58 = vpack.c.bf16 %v433_v57, %v433_v57  ;;  %v590_v0 = vpack.c.bf16 %v526_v55, %v526_v55 }
 0x181   : > { %v576_v5 = vpack.c.bf16 %v3107_v61, %v3107_v61 }
 0x182   : > { %v625_v60 = vunpack.c.l.b16 %v545_v58  ;;  %v972_v9 = vunpack.c.l.b16 %v590_v0 }
 0x183   : > { %v858_v12 = vunpack.c.l.b16 %v576_v5 }
 0x184   : > { %v637_v62 = vpack.c.b16 %v625_v60, %v624_v59 }
 0x186   : > { %v3643_v1 = vpop.trf.xlu2  ;;  %2971 = vmatmul.msk.bf16.gmra.mxu1 %vm642_vm2, %v637_v62 }
 0x187   : > { %v527_v2 = vpop.trf.xlu1  ;;  %v434_v3 = vpop.trf.xlu0  ;;  %v3112_v4 = vunpack.i.l.bf16 %v3643_v1 }
 0x188   : > { %v591_v6 = vpack.c.bf16 %v527_v2, %v527_v2  ;;  %v546_v15 = vpack.c.bf16 %v434_v3, %v434_v3 }
 0x189   : > { %v577_v7 = vpack.c.bf16 %v3112_v4, %v3112_v4 }
 0x18a   : > { %v973_v10 = vunpack.c.l.b16 %v591_v6  ;;  %v626_v21 = vunpack.c.l.b16 %v546_v15 }
 0x18b   : > { %v859_v11 = vunpack.c.l.b16 %v577_v7 }
 0x18c   : > { %v986_v13 = vpack.c.b16 %v973_v10, %v972_v9 }
 0x18d   : > { %v871_v14 = vpack.c.b16 %v859_v11, %v858_v12 }
 0x18e   : > { %2994 = vmatmul.msk.bf16.gmra.mxu0 %vm642_vm2, %v986_v13  ;;  %v3648_v16 = vpop.trf.xlu2 }
 0x18f   : > { %v528_v18 = vpop.trf.xlu1  ;;  %2987 = vmatmul.msk.bf16.gmra.mxu3 %vm642_vm2, %v871_v14  ;;  %v435_v19 = vpop.trf.xlu0  ;;  %v3117_v23 = vunpack.i.l.bf16 %v3648_v16 }
 0x190   : > { %v547_v20 = vpack.c.bf16 %v435_v19, %v435_v19  ;;  %v592_v25 = vpack.c.bf16 %v528_v18, %v528_v18 }
 0x191   : > { %v578_v30 = vpack.c.bf16 %v3117_v23, %v3117_v23 }
 0x192   : > { %v627_v22 = vunpack.c.l.b16 %v547_v20  ;;  %v974_v34 = vunpack.c.l.b16 %v592_v25 }
 0x193   : > { %v860_v37 = vunpack.c.l.b16 %v578_v30 }
 0x194   : > { %v638_v24 = vpack.c.b16 %v627_v22, %v626_v21 }
 0x196   : > { %v3652_v26 = vpop.trf.xlu2  ;;  %2972 = vmatmul.msk.bf16.gmra.mxu1 %vm642_vm2, %v638_v24 }
 0x197   : > { %v529_v27 = vpop.trf.xlu1  ;;  %v436_v28 = vpop.trf.xlu0  ;;  %v3122_v29 = vunpack.i.l.bf16 %v3652_v26 }
 0x198   : > { %v593_v32 = vpack.c.bf16 %v529_v27, %v529_v27  ;;  %v548_v41 = vpack.c.bf16 %v436_v28, %v436_v28 }
 0x199   : > { %v579_v33 = vpack.c.bf16 %v3122_v29, %v3122_v29 }
 0x19a   : > { %v975_v35 = vunpack.c.l.b16 %v593_v32  ;;  %v628_v46 = vunpack.c.l.b16 %v548_v41 }
 0x19b   : > { %v861_v36 = vunpack.c.l.b16 %v579_v33 }
 0x19c   : > { %v987_v38 = vpack.c.b16 %v975_v35, %v974_v34 }
 0x19d   : > { %v872_v39 = vpack.c.b16 %v861_v36, %v860_v37  ;;  %v3668_v37 = vpop.f32.mrf.mxu3 }
 0x19e   : > { %2995 = vmatmul.msk.bf16.gmra.mxu0 %vm642_vm2, %v987_v38  ;;  %v3657_v42 = vpop.trf.xlu2  ;;  %6538 = vst [vmem:[#allocation5_spill] sm:$0xff] %v3668_v37 }
 0x19f   : > { %v530_v43 = vpop.trf.xlu1  ;;  %2988 = vmatmul.msk.bf16.gmra.mxu3 %vm642_vm2, %v872_v39  ;;  %v437_v44 = vpop.trf.xlu0  ;;  %v3127_v48 = vunpack.i.l.bf16 %v3657_v42 }
 0x1a0   : > { %v549_v45 = vpack.c.bf16 %v437_v44, %v437_v44  ;;  %v594_v50 = vpack.c.bf16 %v530_v43, %v530_v43 }
 0x1a1   : > { %v580_v57 = vpack.c.bf16 %v3127_v48, %v3127_v48 }
 0x1a2   : > { %v629_v47 = vunpack.c.l.b16 %v549_v45  ;;  %v976_v60 = vunpack.c.l.b16 %v594_v50 }
 0x1a3   : > { %v862_v0 = vunpack.c.l.b16 %v580_v57 }
 0x1a4   : > { %v639_v49 = vpack.c.b16 %v629_v47, %v628_v46 }
 0x1a6   : > { %v3661_v51 = vpop.trf.xlu2  ;;  %2973 = vmatmul.msk.bf16.gmra.mxu1 %vm642_vm2, %v639_v49 }
 0x1a7   : > { %v3132_v52 = vunpack.i.l.bf16 %v3661_v51  ;;  %v531_v53 = vpop.trf.xlu1  ;;  %v438_v55 = vpop.trf.xlu0 }
 0x1a8   : > { %v595_v58 = vpack.c.bf16 %v531_v53, %v531_v53  ;;  %v550_v4 = vpack.c.bf16 %v438_v55, %v438_v55  ;;  %v3677_v55 = vpop.f32.mrf.mxu3 }
 0x1a9   : > { %v581_v59 = vpack.c.bf16 %v3132_v52, %v3132_v52  ;;  %6539 = vst [vmem:[#allocation6_spill] sm:$0xff] %v3677_v55 }
 0x1aa   : > { %v977_v61 = vunpack.c.l.b16 %v595_v58  ;;  %v630_v12 = vunpack.c.l.b16 %v550_v4 }
 0x1ab   : > { %v863_v62 = vunpack.c.l.b16 %v581_v59 }
 0x1ac   : > { %v988_v2 = vpack.c.b16 %v977_v61, %v976_v60  ;;  %v3085_v60 = vunpack.i.h.bf16 %v3617_v63 }
 0x1ad   : > { %v873_v3 = vpack.c.b16 %v863_v62, %v862_v0 }
 0x1ae   : > { %2996 = vmatmul.msk.bf16.gmra.mxu0 %vm642_vm2, %v988_v2  ;;  %v3136_v5 = vpop.trf.xlu2 }
 0x1af   : > { %v532_v6 = vpop.trf.xlu1  ;;  %2989 = vmatmul.msk.bf16.gmra.mxu3 %vm642_vm2, %v873_v3  ;;  %v439_v7 = vpop.trf.xlu0  ;;  %v3140_v10 = vunpack.i.h.bf16 %v3136_v5  ;;  %v3137_v11 = vunpack.i.l.bf16 %v3136_v5  ;;  %v3080_v3 = vunpack.i.h.bf16 %v3614_v56 }
 0x1b0   : > { %v551_v9 = vpack.c.bf16 %v439_v7, %v439_v7  ;;  %v596_v19 = vpack.c.bf16 %v532_v6, %v532_v6  ;;  %v555_v6 = vpack.c.bf16 %v3085_v60, %v3085_v60 }
 0x1b1   : > { %v566_v15 = vpack.c.bf16 %v3140_v10, %v3140_v10  ;;  %v582_v18 = vpack.c.bf16 %v3137_v11, %v3137_v11  ;;  %v554_v10 = vpack.c.bf16 %v3080_v3, %v3080_v3 }
 0x1b2   : > { %v631_v13 = vunpack.c.l.b16 %v551_v9  ;;  %v978_v32 = vunpack.c.l.b16 %v596_v19  ;;  %v737_v63 = vunpack.c.l.b16 %v555_v6  ;;  %v3120_v6 = vunpack.i.h.bf16 %v3648_v16 }
 0x1b3   : > { %v864_v29 = vunpack.c.l.b16 %v582_v18  ;;  %v748_v30 = vunpack.c.l.b16 %v566_v15 }
 0x1b4   : > { %v640_v14 = vpack.c.b16 %v631_v13, %v630_v12  ;;  %v3687_v12 = vpop.f32.mrf.mxu3  ;;  %v736_v13 = vunpack.c.l.b16 %v554_v10 }
 0x1b5   : > { %6540 = vst [vmem:[#allocation7_spill] sm:$0xff] %v3687_v12 }
 0x1b6   : > { %2974 = vmatmul.msk.bf16.gmra.mxu1 %vm642_vm2, %v640_v14  ;;  %v3141_v20 = vpop.trf.xlu2  ;;  %v752_v56 = vpack.c.b16 %v737_v63, %v736_v13 }
 0x1b7   : > { %v533_v21 = vpop.trf.xlu1  ;;  %v440_v22 = vpop.trf.xlu0  ;;  %v3145_v23 = vunpack.i.h.bf16 %v3141_v20  ;;  %v3142_v24 = vunpack.i.l.bf16 %v3141_v20 }
 0x1b8   : > { %v597_v25 = vpack.c.bf16 %v533_v21, %v533_v21  ;;  %v552_v41 = vpack.c.bf16 %v440_v22, %v440_v22  ;;  %v3095_v21 = vunpack.i.h.bf16 %v3625_v17  ;;  %v3105_v17 = vunpack.i.h.bf16 %v3634_v40 }
 0x1b9   : > { %v567_v27 = vpack.c.bf16 %v3145_v23, %v3145_v23  ;;  %v583_v28 = vpack.c.bf16 %v3142_v24, %v3142_v24  ;;  %v3090_v24 = vunpack.i.h.bf16 %v3621_v8 }
 0x1ba   : > { %v979_v33 = vunpack.c.l.b16 %v597_v25  ;;  %v632_v48 = vunpack.c.l.b16 %v552_v41 }
 0x1bb   : > { %v865_v34 = vunpack.c.l.b16 %v583_v28  ;;  %v749_v35 = vunpack.c.l.b16 %v567_v27  ;;  %v557_v28 = vpack.c.bf16 %v3095_v21, %v3095_v21 }
 0x1bc   : > { %v989_v36 = vpack.c.b16 %v979_v33, %v978_v32  ;;  %v3694_v22 = vpop.f32.mrf.mxu3 }
 0x1bd   : > { %v874_v38 = vpack.c.b16 %v865_v34, %v864_v29  ;;  %v3670_v39 = vpack.c.b16 %v749_v35, %v748_v30  ;;  %6542 = vst [vmem:[#allocation9_spill] sm:$0xff] %v3694_v22  ;;  %v556_v29 = vpack.c.bf16 %v3090_v24, %v3090_v24  ;;  %v739_v30 = vunpack.c.l.b16 %v557_v28 }
 0x1be   : > { %2997 = vmatmul.msk.bf16.gmra.mxu0 %vm642_vm2, %v989_v36  ;;  %v3673_v43 = vpop.trf.xlu2  ;;  %v3100_v36 = vunpack.i.h.bf16 %v3630_v31 }
 0x1bf   : > { %v534_v44 = vpop.trf.xlu1  ;;  %v441_v45 = vpop.trf.xlu0  ;;  %2990 = vmatmul.msk.bf16.gmra.mxu3 %vm642_vm2, %v874_v38  ;;  %v3147_v47 = vunpack.i.l.bf16 %v3673_v43  ;;  %v738_v33 = vunpack.c.l.b16 %v556_v29 }
 0x1c0   : > { %v553_v46 = vpack.c.bf16 %v441_v45, %v441_v45  ;;  %v598_v50 = vpack.c.bf16 %v534_v44, %v534_v44  ;;  %v559_v44 = vpack.c.bf16 %v3105_v17, %v3105_v17  ;;  %v558_v45 = vpack.c.bf16 %v3100_v36, %v3100_v36 }
 0x1c1   : > { %v584_v53 = vpack.c.bf16 %v3147_v47, %v3147_v47  ;;  %v753_v8 = vpack.c.b16 %v739_v30, %v738_v33 }
 0x1c2   : > { %v633_v49 = vunpack.c.l.b16 %v553_v46  ;;  %v980_v61 = vunpack.c.l.b16 %v598_v50  ;;  %v741_v46 = vunpack.c.l.b16 %v559_v44  ;;  %v3115_v50 = vunpack.i.h.bf16 %v3643_v1 }
 0x1c3   : > { %v866_v2 = vunpack.c.l.b16 %v584_v53  ;;  %v3110_v53 = vunpack.i.h.bf16 %v3639_v54 }
 0x1c4   : > { %v641_v52 = vpack.c.b16 %v633_v49, %v632_v48  ;;  %v740_v48 = vunpack.c.l.b16 %v558_v45  ;;  %v561_v60 = vpack.c.bf16 %v3115_v50, %v3115_v50 }
 0x1c6   : > { %2975 = vmatmul.msk.bf16.vlgmr.msra.gmra.mxu2 %vm642_vm2, %v641_v52  ;;  %v3680_v57 = vpop.trf.xlu2  ;;  %v754_v31 = vpack.c.b16 %v741_v46, %v740_v48  ;;  %v3150_v48 = vunpack.i.h.bf16 %v3673_v43 }
 0x1c7   : > { %v535_v58 = vpop.trf.xlu1  ;;  %v3152_v59 = vunpack.i.l.bf16 %v3680_v57 }
 0x1c8   : > { %v599_v62 = vpack.c.bf16 %v535_v58, %v535_v58 }
 0x1c9   : > { %v585_v0 = vpack.c.bf16 %v3152_v59, %v3152_v59 }
 0x1ca   : > { %v981_v4 = vunpack.c.l.b16 %v599_v62  ;;  %v743_v62 = vunpack.c.l.b16 %v561_v60  ;;  %v568_v60 = vpack.c.bf16 %v3150_v48, %v3150_v48 }
 0x1cb   : > { %v867_v5 = vunpack.c.l.b16 %v585_v0 }
 0x1cc   : > { %v990_v7 = vpack.c.b16 %v981_v4, %v980_v61  ;;  %v560_v61 = vpack.c.bf16 %v3110_v53, %v3110_v53  ;;  %v3125_v4 = vunpack.i.h.bf16 %v3652_v26 }
 0x1cd   : > { %v875_v9 = vpack.c.b16 %v867_v5, %v866_v2 }
 0x1ce   : > { %2998 = vmatmul.msk.bf16.gmra.mxu0 %vm642_vm2, %v990_v7  ;;  %v742_v1 = vunpack.c.l.b16 %v560_v61  ;;  %v563_v10 = vpack.c.bf16 %v3125_v4, %v3125_v4 }
 0x1cf   : > { %v536_v11 = vpop.trf.xlu1  ;;  %2991 = vmatmul.msk.bf16.gmra.mxu3 %vm642_vm2, %v875_v9 }
 0x1d0   : > { %v600_v15 = vpack.c.bf16 %v536_v11, %v536_v11  ;;  %v755_v54 = vpack.c.b16 %v743_v62, %v742_v1  ;;  %v562_v11 = vpack.c.bf16 %v3120_v6, %v3120_v6  ;;  %v745_v63 = vunpack.c.l.b16 %v563_v10 }
 0x1d1   : > { %v750_v62 = vunpack.c.l.b16 %v568_v60 }
 0x1d2   : > { %v982_v19 = vunpack.c.l.b16 %v600_v15  ;;  %v744_v26 = vunpack.c.l.b16 %v562_v11 }
 0x1d3   : > { %v3689_v14 = vpop.f32.mrf.mxu1 }
 0x1d4   : > { %6541 = vst [vmem:[#allocation8_spill] sm:$0xff] %v3689_v14  ;;  %1068 = vmax.xlane.f32.xlu1 %v3689_v14  ;;  %v756_v16 = vpack.c.b16 %v745_v63, %v744_v26 }
 0x1d6   : > { %2976 = vmatmul.msk.bf16.vlgmr.msrb.gmra.mxu2 %vm642_vm2, %v752_v56 }
 0x1d7   : > { %v537_v18 = vpop.trf.xlu1 }
 0x1d8   : > { %v601_v20 = vpack.c.bf16 %v537_v18, %v537_v18  ;;  %v3135_v18 = vunpack.i.h.bf16 %v3661_v51 }
 0x1da   : > { %v983_v23 = vunpack.c.l.b16 %v601_v20  ;;  %v3130_v20 = vunpack.i.h.bf16 %v3657_v42  ;;  %v565_v24 = vpack.c.bf16 %v3135_v18, %v3135_v18 }
 0x1db   : > { %v3697_v25 = vpop.f32.mrf.mxu1 }
 0x1dc   : > { %v991_v27 = vpack.c.b16 %v983_v23, %v982_v19  ;;  %1070 = vmax.xlane.f32.xlu2 %v3697_v25  ;;  %v747_v28 = vunpack.c.l.b16 %v565_v24 }
 0x1de   : > { %2999 = vmatmul.msk.bf16.gmra.mxu0 %vm642_vm2, %v991_v27  ;;  %v564_v27 = vpack.c.bf16 %v3130_v20, %v3130_v20 }
 0x1e0   : > { %v746_v51 = vunpack.c.l.b16 %v564_v27 }
 0x1e2   : > { %v3701_v32 = vpop.f32.mrf.mxu3  ;;  %v757_v42 = vpack.c.b16 %v747_v28, %v746_v51 }
 0x1e3   : > { %6543 = vst [vmem:[#allocation10_spill] sm:$0xff] %v3701_v32  ;;  %v3703_v34 = vpop.f32.mrf.mxu1 }
 0x1e4   : > { %1132 = vmax.xlane.f32.xlu2 %v3701_v32  ;;  %1072 = vmax.xlane.f32.xlu0 %v3703_v34 }
 0x1e6   : > { %2977 = vmatmul.msk.bf16.gmra.mxu2 %vm642_vm2, %v753_v8 }
 0x1ea   : > { %v3709_v35 = vpop.f32.mrf.mxu3 }
 0x1eb   : > { %6544 = vst [vmem:[#allocation11_spill] sm:$0xff] %v3709_v35  ;;  %v3712_v38 = vpop.f32.mrf.mxu1  ;;  %v3714_v41 = vpop.f32.mrf.mxu0 }
 0x1ec   : > { %6545 = vst [vmem:[#allocation12_spill] sm:$0xff] %v3714_v41  ;;  %1164 = vmax.xlane.f32.xlu0 %v3714_v41  ;;  %1074 = vmax.xlane.f32.xlu1 %v3712_v38 }
 0x1f2   : > { %v3718_v47 = vpop.f32.mrf.mxu3 }
 0x1f3   : > { %6546 = vst [vmem:[#allocation13_spill] sm:$0xff] %v3718_v47  ;;  %v3720_v49 = vpop.f32.mrf.mxu0  ;;  %1136 = vmax.xlane.f32.xlu2 %v3718_v47  ;;  %v3723_v40 = vpop.f32.mrf.mxu1 }
 0x1f4   : > { %6547 = vst [vmem:[#allocation14_spill] sm:$0xff] %v3720_v49  ;;  %1134 = vmax.xlane.f32.xlu0 %v3709_v35  ;;  %1076 = vmax.xlane.f32.xlu1 %v3723_v40 }
 0x1f6   : > { %2978 = vmatmul.msk.bf16.gmra.mxu2 %vm642_vm2, %v754_v31  ;;  %v3155_v31 = vunpack.i.h.bf16 %v3680_v57 }
 0x1f8   : > { %v569_v61 = vpack.c.bf16 %v3155_v31, %v3155_v31 }
 0x1fa   : > { %v3729_v52 = vpop.f32.mrf.mxu3  ;;  %v751_v1 = vunpack.c.l.b16 %v569_v61 }
 0x1fb   : > { %6548 = vst [vmem:[#allocation15_spill] sm:$0xff] %v3729_v52  ;;  %v3732_v58 = vpop.f32.mrf.mxu1  ;;  %v3734_v59 = vpop.f32.mrf.mxu0 }
 0x1fc   : > { %6549 = vst [vmem:[#allocation16_spill] sm:$0xff] %v3734_v59  ;;  %1138 = vmax.xlane.f32.xlu0 %v3729_v52  ;;  %1166 = vmax.xlane.f32.xlu1 %v3720_v49  ;;  %v759_v43 = vpack.c.b16 %v751_v1, %v750_v62 }
 0x1fd   : > { %1078 = vmax.xlane.f32.xlu2 %v3732_v58 }
 0x202   : > { %v3739_v0 = vpop.f32.mrf.mxu3 }
 0x203   : > { %v3741_v2 = vpop.f32.mrf.mxu1  ;;  %v3743_v3 = vpop.f32.mrf.mxu0 }
 0x204   : > { %6550 = vst [vmem:[#allocation17_spill] sm:$0xff] %v3743_v3  ;;  %1168 = vmax.xlane.f32.xlu1 %v3734_v59 }
 0x205   : > { %1080 = vmax.xlane.f32.xlu2 %v3741_v2 }
 0x206   : > { %2979 = vmatmul.msk.bf16.gmra.mxu2 %vm642_vm2, %v755_v54 }
 0x20a   : > { %v3749_v5 = vpop.f32.mrf.mxu3 }
 0x20b   : > { %v3752_v7 = vpop.f32.mrf.mxu1  ;;  %v3754_v9 = vpop.f32.mrf.mxu0 }
 0x20c   : > { %1140 = vmax.xlane.f32.xlu1 %v3739_v0  ;;  %1082 = vmax.xlane.f32.xlu0 %v3752_v7 }
 0x20d   : > { %1170 = vmax.xlane.f32.xlu2 %v3743_v3 }
 0x212   : > { %v3759_v13 = vpop.f32.mrf.mxu3 }
 0x213   : > { %v3761_v15 = vpop.f32.mrf.mxu1  ;;  %v3763_v56 = vpop.f32.mrf.mxu0 }
 0x214   : > { %6551 = vst [vmem:[#allocation18_spill] sm:$0xff] %v3763_v56  ;;  %1174 = vmax.xlane.f32.xlu1 %v3763_v56  ;;  %1172 = vmax.xlane.f32.xlu0 %v3754_v9 }
 0x215   : > { %1142 = vmax.xlane.f32.xlu2 %v3749_v5 }
 0x216   : > { %2980 = vmatmul.msk.bf16.gmra.mxu2 %vm642_vm2, %v756_v16 }
 0x21a   : > { %v3770_v19 = vpop.f32.mrf.mxu3 }
 0x21b   : > { %v3773_v21 = vpop.f32.mrf.mxu1  ;;  %v3775_v23 = vpop.f32.mrf.mxu0 }
 0x21c   : > { %1084 = vmax.xlane.f32.xlu0 %v3761_v15  ;;  %1086 = vmax.xlane.f32.xlu1 %v3773_v21 }
 0x21d   : > { %1144 = vmax.xlane.f32.xlu2 %v3759_v13 }
 0x222   : > { %v3780_v29 = vpop.f32.mrf.mxu3 }
 0x223   : > { %v3782_v30 = vpop.f32.mrf.mxu1  ;;  %v3784_v33 = vpop.f32.mrf.mxu0 }
 0x224   : > { %1146 = vmax.xlane.f32.xlu0 %v3770_v19  ;;  %1088 = vmax.xlane.f32.xlu1 %v3782_v30 }
 0x225   : > { %1176 = vmax.xlane.f32.xlu2 %v3775_v23 }
 0x226   : > { %2981 = vmatmul.msk.bf16.gmra.mxu2 %vm642_vm2, %v757_v42 }
 0x22a   : > { %v3790_v8 = vpop.f32.mrf.mxu3 }
 0x22b   : > { %v3792_v17 = vpop.f32.mrf.mxu1  ;;  %v3794_v36 = vpop.f32.mrf.mxu0 }
 0x22c   : > { %1178 = vmax.xlane.f32.xlu0 %v3784_v33  ;;  %1150 = vmax.xlane.f32.xlu1 %v3790_v8 }
 0x22d   : > { %1090 = vmax.xlane.f32.xlu2 %v3792_v17 }
 0x232   : > { %v3799_v44 = vpop.f32.mrf.mxu3 }
 0x233   : > { %v3801_v45 = vpop.f32.mrf.mxu1  ;;  %v3803_v46 = vpop.f32.mrf.mxu0 }
 0x234   : > { %1148 = vmax.xlane.f32.xlu0 %v3780_v29  ;;  %1092 = vmax.xlane.f32.xlu1 %v3801_v45 }
 0x236   : > { %2982 = vmatmul.msk.bf16.gmra.mxu2 %vm642_vm2, %v3670_v39 }
 0x23a   : > { %v3811_v50 = vpop.f32.mrf.mxu3 }
 0x23b   : > { %v3813_v53 = vpop.f32.mrf.mxu0  ;;  %1154 = vmax.xlane.f32.xlu2 %v3811_v50  ;;  %v3820_v39 = vpop.f32.mrf.mxu1 }
 0x23c   : > { %1180 = vmax.xlane.f32.xlu0 %v3794_v36  ;;  %1182 = vmax.xlane.f32.xlu1 %v3803_v46 }
 0x242   : > { %v3826_v57 = vpop.f32.mrf.mxu3 }
 0x243   : > { %v3818_v54 = vpop.f32.mrf.mxu0 }
 0x244   : > { %1186 = vmax.xlane.f32.xlu2 %v3818_v54  ;;  %1152 = vmax.xlane.f32.xlu1 %v3799_v44 }
 0x245   : > { %1094 = vmax.xlane.f32.xlu0 %v3820_v39 }
 0x246   : > { %2983 = vmatmul.msk.bf16.gmra.mxu2 %vm642_vm2, %v759_v43 }
 0x247   : > { %v3845_v16 = vpop.xlane.xlu1 %1068 }
 0x248   : > { %6552 = vst [vmem:[#allocation19_spill] sm:$0xff] %v3845_v16 }
 0x249   : > { %v3828_v4 = vpop.f32.mrf.mxu2 }
 0x24a   : > { %v3837_v11 = vpop.f32.mrf.mxu3 }
 0x24b   : > { %v3830_v6 = vpop.f32.mrf.mxu0 }
 0x24c   : > { %1156 = vmax.xlane.f32.xlu2 %v3826_v57  ;;  %1184 = vmax.xlane.f32.xlu1 %v3813_v53 }
 0x24d   : > { %1096 = vmax.xlane.f32.xlu0 %v3828_v4 }
 0x24f   : > { %v3841_v26 = vpop.xlane.xlu2 %1070 }
 0x251   : > { %v3835_v10 = vpop.f32.mrf.mxu2 }
 0x252   : > { %v3862_v42 = vpop.f32.mrf.mxu3 }
 0x253   : > { %v3839_v63 = vpop.f32.mrf.mxu0 }
 0x254   : > { %1188 = vmax.xlane.f32.xlu2 %v3830_v6 }
 0x255   : > { %1158 = vmax.xlane.f32.xlu0 %v3837_v11 }
 0x257   : > { %v3847_v18 = vpop.xlane.xlu0 %1072  ;;  %v3856_v27 = vpop.xlane.xlu2 %1132 }
 0x258   : > { %6554 = vst [vmem:[#allocation21_spill] sm:$0xff] %v3856_v27 }
 0x259   : > { %v3849_v20 = vpop.f32.mrf.mxu2 }
 0x25a   : > { %6553 = vst [vmem:[#allocation20_spill] sm:$0xff] %v3849_v20  ;;  %1100 = vmax.xlane.f32.xlu1 %v3849_v20  ;;  %v3886_v20 = vpop.f32.mrf.mxu3 }
 0x25b   : > { %v3852_v24 = vpop.f32.mrf.mxu0 }
 0x25c   : > { %1098 = vmax.xlane.f32.xlu2 %v3835_v10 }
 0x25d   : > { %1190 = vmax.xlane.f32.xlu0 %v3839_v63 }
 0x25f   : > { %v3858_v28 = vpop.xlane.xlu1 %1074  ;;  %v3864_v48 = vpop.xlane.xlu0 %1164 }
 0x260   : > { %6556 = vst [vmem:[#allocation23_spill] sm:$0xff] %v3864_v48 }
 0x261   : > { %v3860_v51 = vpop.f32.mrf.mxu2 }
 0x262   : > { %6555 = vst [vmem:[#allocation22_spill] sm:$0xff] %v3860_v51 }
 0x263   : > { %v3866_v31 = vpop.f32.mrf.mxu0 }
 0x264   : > { %1194 = vmax.xlane.f32.xlu1 %v3866_v31  ;;  %1102 = vmax.xlane.f32.xlu2 %v3860_v51 }
 0x265   : > { %1160 = vmax.xlane.f32.xlu0 %v3862_v42 }
 0x266   : > { %v3871_v60 = vpop.xlane.xlu2 %1136 }
 0x267   : > { %6557 = vst [vmem:[#allocation24_spill] sm:$0xff] %v3871_v60  ;;  %v1077_v61 = vpop.xlane.xlu1 %1076  ;;  %v3877_v55 = vpop.xlane.xlu0 %1134 }
 0x268   : > { %v1200_v62 = vsub.f32 %v3723_v40, %v1077_v61  ;;  %6559 = vst [vmem:[#allocation26_spill] sm:$0xff] %v3877_v55 }
 0x269   : > { %v3874_v1 = vpop.f32.mrf.mxu2 }
 0x26a   : > { %6558 = vst [vmem:[#allocation25_spill] sm:$0xff] %v3874_v1  ;;  %v1268_v43 = vmul.f32 1.442695, %v1200_v62 }
 0x26c   : > { %3156 = vpow2.f32 %v1268_v43  ;;  %1104 = vmax.xlane.f32.xlu2 %v3874_v1 }
 0x26d   : > { %1192 = vmax.xlane.f32.xlu0 %v3852_v24 }
 0x26f   : > { %v3880_v22 = vpop.xlane.xlu1 %1166  ;;  %v3891_v61 = vpop.xlane.xlu0 %1138 }
 0x270   : > { %6560 = vst [vmem:[#allocation27_spill] sm:$0xff] %v3880_v22  ;;  %v1079_v37 = vpop.xlane.xlu2 %1078 }
 0x271   : > { %v3882_v12 = vpop.f32.mrf.mxu2  ;;  %v1201_v40 = vsub.f32 %v3732_v58, %v1079_v37  ;;  %6563 = vst [vmem:[#allocation30_spill] sm:$0xff] %v3891_v61 }
 0x272   : > { %6561 = vst [vmem:[#allocation28_spill] sm:$0xff] %v3882_v12  ;;  %v3884_v51 = vpop.eup %3156 }
 0x273   : > { %6562 = vst [vmem:[#allocation29_spill] sm:$0xff] %v3884_v51  ;;  %v1270_v56 = vmul.f32 1.442695, %v1201_v40 }
 0x274   : > { %1396 = vadd.xlane.f32.xlu2 %v3884_v51 }
 0x275   : > { %1162 = vmax.xlane.f32.xlu0 %v3886_v20  ;;  %3158 = vpow2.f32 %v1270_v56 }
 0x277   : > { %v3893_v62 = vpop.xlane.xlu1 %1168 }
 0x278   : > { %6564 = vst [vmem:[#allocation31_spill] sm:$0xff] %v3893_v62  ;;  %v1081_v43 = vpop.xlane.xlu2 %1080 }
 0x279   : > { %v3895_v1 = vpop.f32.mrf.mxu2  ;;  %v1202_v40 = vsub.f32 %v3741_v2, %v1081_v43 }
 0x27b   : > { %v3906_v58 = vpop.eup %3158 }
 0x27c   : > { %1108 = vmax.xlane.f32.xlu2 %v3895_v1  ;;  %6566 = vst [vmem:[#allocation33_spill] sm:$0xff] %v3906_v58 }
 0x27d   : > { %1106 = vmax.xlane.f32.xlu0 %v3882_v12 }
 0x27f   : > { %v3899_v3 = vpop.xlane.xlu1 %1140  ;;  %v1083_v51 = vpop.xlane.xlu0 %1082 }
 0x280   : > { %v3901_v49 = vpop.xlane.xlu2 %1170  ;;  %v1203_v37 = vsub.f32 %v3752_v7, %v1083_v51 }
 0x281   : > { %6565 = vst [vmem:[#allocation32_spill] sm:$0xff] %v3901_v49  ;;  %v3903_v22 = vpop.f32.mrf.mxu2  ;;  %v1272_v49 = vmul.f32 1.442695, %v1202_v40 }
 0x282   : > { %v1274_v35 = vmul.f32 1.442695, %v1203_v37 }
 0x284   : > { %3160 = vpow2.f32 %v1274_v35 }
 0x285   : > { %1398 = vadd.xlane.f32.xlu0 %v3906_v58  ;;  %3162 = vpow2.f32 %v1272_v49 }
 0x287   : > { %v3910_v55 = vpop.xlane.xlu1 %1174  ;;  %v3912_v12 = vpop.xlane.xlu0 %1172 }
 0x288   : > { %6567 = vst [vmem:[#allocation34_spill] sm:$0xff] %v3910_v55  ;;  %v3914_v56 = vpop.xlane.xlu2 %1142 }
 0x289   : > { %v3916_v47 = vpop.f32.mrf.mxu2 }
 0x28a   : > { %1112 = vmax.xlane.f32.xlu1 %v3916_v47  ;;  %v3923_v43 = vpop.eup %3160 }
 0x28b   : > { %v3930_v40 = vpop.eup %3162 }
 0x28d   : > { %1110 = vmax.xlane.f32.xlu0 %v3903_v22 }
 0x28f   : > { %v1087_v7 = vpop.xlane.xlu1 %1086  ;;  %v1085_v51 = vpop.xlane.xlu0 %1084 }
 0x290   : > { %v3920_v58 = vpop.xlane.xlu2 %1144  ;;  %v1204_v2 = vsub.f32 %v3761_v15, %v1085_v51  ;;  %v1205_v35 = vsub.f32 %v3773_v21, %v1087_v7 }
 0x291   : > { %v3925_v37 = vpop.f32.mrf.mxu2 }
 0x292   : > { %v1276_v55 = vmul.f32 1.442695, %v1204_v2  ;;  %1114 = vmax.xlane.f32.xlu2 %v3925_v37  ;;  %1402 = vadd.xlane.f32.xlu1 %v3923_v43  ;;  %v1278_v49 = vmul.f32 1.442695, %v1205_v35 }
 0x294   : > { %3164 = vpow2.f32 %v1276_v55 }
 0x295   : > { %1400 = vadd.xlane.f32.xlu0 %v3930_v40  ;;  %3166 = vpow2.f32 %v1278_v49 }
 0x297   : > { %v1089_v60 = vpop.xlane.xlu1 %1088  ;;  %v3933_v41 = vpop.xlane.xlu0 %1146 }
 0x298   : > { %v3935_v15 = vpop.xlane.xlu2 %1176  ;;  %v1206_v51 = vsub.f32 %v3782_v30, %v1089_v60 }
 0x299   : > { %v3938_v2 = vpop.f32.mrf.mxu2 }
 0x29a   : > { %v1280_v48 = vmul.f32 1.442695, %v1206_v51  ;;  %1116 = vmax.xlane.f32.xlu2 %v3938_v2  ;;  %v3941_v21 = vpop.eup %3164 }
 0x29b   : > { %1404 = vadd.xlane.f32.xlu1 %v3941_v21  ;;  %v3946_v59 = vpop.eup %3166 }
 0x29c   : > { %3168 = vpow2.f32 %v1280_v48 }
 0x29f   : > { %v1151_v55 = vpop.xlane.xlu1 %1150  ;;  %v3944_v7 = vpop.xlane.xlu0 %1178 }
 0x2a0   : > { %v1091_v35 = vpop.xlane.xlu2 %1090  ;;  %v1237_v48 = vsub.f32 %v3790_v8, %v1151_v55 }
 0x2a1   : > { %v1207_v62 = vsub.f32 %v3792_v17, %v1091_v35  ;;  %v3949_v30 = vpop.f32.mrf.mxu2 }
 0x2a2   : > { %v3951_v60 = vpop.eup %3168  ;;  %1406 = vadd.xlane.f32.xlu2 %v3946_v59  ;;  %1118 = vmax.xlane.f32.xlu0 %v3949_v30  ;;  %v1342_v27 = vmul.f32 1.442695, %v1237_v48 }
 0x2a3   : > { %v1282_v49 = vmul.f32 1.442695, %v1207_v62  ;;  %1408 = vadd.xlane.f32.xlu1 %v3951_v60 }
 0x2a5   : > { %3170 = vpow2.f32 %v1282_v49 }
 0x2a6   : > { %3172 = vpow2.f32 %v1342_v27 }
 0x2a7   : > { %v1093_v51 = vpop.xlane.xlu1 %1092  ;;  %v1149_v32 = vpop.xlane.xlu0 %1148 }
 0x2a8   : > { %v1236_v14 = vsub.f32 %v3780_v29, %v1149_v32 }
 0x2a9   : > { %v3958_v17 = vpop.f32.mrf.mxu2 }
 0x2aa   : > { %v1340_v35 = vmul.f32 1.442695, %v1236_v14  ;;  %1120 = vmax.xlane.f32.xlu0 %v3958_v17 }
 0x2ab   : > { %v3961_v16 = vpop.eup %3170 }
 0x2ac   : > { %1410 = vadd.xlane.f32.xlu2 %v3961_v16  ;;  %3174 = vpow2.f32 %v1340_v35  ;;  %v3968_v29 = vpop.eup %3172 }
 0x2ad   : > { %6568 = vst [vmem:[#allocation35_spill] sm:$0xff] %v3968_v29 }
 0x2ae   : > { %v1155_v8 = vpop.xlane.xlu2 %1154 }
 0x2af   : > { %v1239_v62 = vsub.f32 %v3811_v50, %v1155_v8  ;;  %v3965_v55 = vpop.xlane.xlu1 %1182  ;;  %v1181_v49 = vpop.xlane.xlu0 %1180 }
 0x2b0   : > { %v1252_v48 = vsub.f32 %v3794_v36, %v1181_v49 }
 0x2b1   : > { %v1346_v32 = vmul.f32 1.442695, %v1239_v62 }
 0x2b2   : > { %v1372_v14 = vmul.f32 1.442695, %v1252_v48  ;;  %v3970_v52 = vpop.eup %3174 }
 0x2b3   : > { %6569 = vst [vmem:[#allocation36_spill] sm:$0xff] %v3970_v52  ;;  %3176 = vpow2.f32 %v1346_v32  ;;  %1468 = vadd.xlane.f32.xlu1 %v3970_v52  ;;  %v1208_v32 = vsub.f32 %v3801_v45, %v1093_v51 }
 0x2b4   : > { %1470 = vadd.xlane.f32.xlu2 %v3968_v29  ;;  %3178 = vpow2.f32 %v1372_v14 }
 0x2b7   : > { %v1187_v27 = vpop.xlane.xlu2 %1186  ;;  %v1153_v35 = vpop.xlane.xlu1 %1152 }
 0x2b8   : > { %v1255_v50 = vsub.f32 %v3818_v54, %v1187_v27  ;;  %v1238_v8 = vsub.f32 %v3799_v44, %v1153_v35  ;;  %v1095_v61 = vpop.xlane.xlu0 %1094  ;;  %v1284_v54 = vmul.f32 1.442695, %v1208_v32 }
 0x2b9   : > { %v3976_v36 = vpop.eup %3176  ;;  %v1209_v14 = vsub.f32 %v3820_v39, %v1095_v61 }
 0x2ba   : > { %6570 = vst [vmem:[#allocation37_spill] sm:$0xff] %v3976_v36  ;;  %v1378_v62 = vmul.f32 1.442695, %v1255_v50  ;;  %v1344_v49 = vmul.f32 1.442695, %v1238_v8  ;;  %1474 = vadd.xlane.f32.xlu0 %v3976_v36  ;;  %v3979_v48 = vpop.eup %3178  ;;  %v3989_v36 = vpop.f32.mrf.mxu2 }
 0x2bb   : > { %6571 = vst [vmem:[#allocation38_spill] sm:$0xff] %v3979_v48  ;;  %1500 = vadd.xlane.f32.xlu1 %v3979_v48  ;;  %v1286_v44 = vmul.f32 1.442695, %v1209_v14 }
 0x2bc   : > { %3180 = vpow2.f32 %v1378_v62 }
 0x2bd   : > { %3182 = vpow2.f32 %v1344_v49 }
 0x2be   : > { %3184 = vpow2.f32 %v1284_v54 }
 0x2bf   : > { %v1157_v35 = vpop.xlane.xlu2 %1156  ;;  %v1185_v8 = vpop.xlane.xlu1 %1184  ;;  %3186 = vpow2.f32 %v1286_v44 }
 0x2c0   : > { %v1097_v27 = vpop.xlane.xlu0 %1096  ;;  %v1254_v39 = vsub.f32 %v3813_v53, %v1185_v8  ;;  %v1235_v53 = vsub.f32 %v3770_v19, %v3933_v41  ;;  %v1198_v41 = vsub.f32 %v3703_v34, %v3847_v18  ;;  %v1240_v19 = vsub.f32 %v3826_v57, %v1157_v35 }
 0x2c1   : > { %v1210_v29 = vsub.f32 %v3828_v4, %v1097_v27  ;;  %v1234_v4 = vsub.f32 %v3759_v13, %v3920_v58  ;;  %v1250_v13 = vsub.f32 %v3775_v23, %v3935_v15  ;;  %v1233_v15 = vsub.f32 %v3749_v5, %v3914_v56 }
 0x2c2   : > { %v3985_v50 = vpop.eup %3180  ;;  %v1376_v51 = vmul.f32 1.442695, %v1254_v39  ;;  %v1338_v54 = vmul.f32 1.442695, %v1235_v53  ;;  %v4014_v27 = vpop.f32.mrf.mxu2  ;;  %v1264_v39 = vmul.f32 1.442695, %v1198_v41  ;;  %v1251_v5 = vsub.f32 %v3784_v33, %v3944_v7 }
 0x2c3   : > { %6572 = vst [vmem:[#allocation39_spill] sm:$0xff] %v3985_v50  ;;  %v3987_v52 = vpop.eup %3182  ;;  %v1288_v45 = vmul.f32 1.442695, %v1210_v29  ;;  %1506 = vadd.xlane.f32.xlu0 %v3985_v50  ;;  %1122 = vmax.xlane.f32.xlu1 %v3989_v36  ;;  %v1336_v29 = vmul.f32 1.442695, %v1234_v4  ;;  %v1253_v33 = vsub.f32 %v3803_v46, %v3965_v55 }
 0x2c4   : > { %1472 = vadd.xlane.f32.xlu2 %v3987_v52  ;;  %v3999_v62 = vpop.eup %3184  ;;  %v1368_v44 = vmul.f32 1.442695, %v1250_v13  ;;  %v1370_v13 = vmul.f32 1.442695, %v1251_v5 }
 0x2c5   : > { %3188 = vpow2.f32 %v1288_v45  ;;  %v4001_v49 = vpop.eup %3186 }
 0x2c6   : > { %3190 = vpow2.f32 %v1376_v51  ;;  %v1348_v51 = vmul.f32 1.442695, %v1240_v19 }
 0x2c7   : > { %v1189_v32 = vpop.xlane.xlu2 %1188  ;;  %3192 = vpow2.f32 %v1336_v29  ;;  %v1334_v29 = vmul.f32 1.442695, %v1233_v15 }
 0x2c8   : > { %v3997_v61 = vpop.xlane.xlu0 %1158  ;;  %3194 = vpow2.f32 %v1338_v54  ;;  %v1256_v57 = vsub.f32 %v3830_v6, %v1189_v32  ;;  %v1374_v32 = vmul.f32 1.442695, %v1253_v33 }
 0x2c9   : > { %3196 = vpow2.f32 %v1368_v44  ;;  %v1241_v7 = vsub.f32 %v3837_v11, %v3997_v61 }
 0x2ca   : > { %v4032_v18 = vpop.f32.mrf.mxu2  ;;  %3198 = vpow2.f32 %v1264_v39  ;;  %v1380_v44 = vmul.f32 1.442695, %v1256_v57 }
 0x2cb   : > { %v4003_v14 = vpop.eup %3188  ;;  %1412 = vadd.xlane.f32.xlu1 %v3999_v62  ;;  %3200 = vpow2.f32 %v1348_v51 }
 0x2cc   : > { %1414 = vadd.xlane.f32.xlu2 %v4001_v49  ;;  %1416 = vadd.xlane.f32.xlu0 %v4003_v14  ;;  %v4016_v8 = vpop.eup %3190  ;;  %3202 = vpow2.f32 %v1334_v29  ;;  %v1350_v29 = vmul.f32 1.442695, %v1241_v7 }
 0x2cd   : > { %6573 = vst [vmem:[#allocation40_spill] sm:$0xff] %v4016_v8  ;;  %v4018_v45 = vpop.eup %3192  ;;  %3204 = vpow2.f32 %v1370_v13  ;;  %v4072_v11 = vpop.xlane.xlu1 %1100 }
 0x2ce   : > { %6574 = vst [vmem:[#allocation41_spill] sm:$0xff] %v4018_v45  ;;  %v4030_v34 = vpop.eup %3194  ;;  %3206 = vpow2.f32 %v1380_v44 }
 0x2cf   : > { %v1099_v23 = vpop.xlane.xlu2 %1098  ;;  %6575 = vst [vmem:[#allocation42_spill] sm:$0xff] %v4030_v34  ;;  %v4034_v53 = vpop.eup %3196  ;;  %3208 = vpow2.f32 %v1374_v32 }
 0x2d0   : > { %v4012_v58 = vpop.xlane.xlu0 %1190  ;;  %6576 = vst [vmem:[#allocation43_spill] sm:$0xff] %v4034_v53  ;;  %v4046_v54 = vpop.eup %3198  ;;  %v1211_v6 = vsub.f32 %v3835_v10, %v1099_v23  ;;  %v1199_v10 = vsub.f32 %v3712_v38, %v3858_v28 }
 0x2d1   : > { %6577 = vst [vmem:[#allocation44_spill] sm:$0xff] %v4046_v54  ;;  %v4048_v41 = vpop.eup %3200  ;;  %v1257_v61 = vsub.f32 %v3839_v63, %v4012_v58 }
 0x2d2   : > { %v4050_v19 = vpop.eup %3202  ;;  %v1290_v39 = vmul.f32 1.442695, %v1211_v6  ;;  %v4064_v55 = vpop.f32.mrf.mxu2  ;;  %v1266_v23 = vmul.f32 1.442695, %v1199_v10  ;;  %v1232_v6 = vsub.f32 %v3739_v0, %v3899_v3 }
 0x2d3   : > { %1124 = vmax.xlane.f32.xlu1 %v4014_v27  ;;  %6578 = vst [vmem:[#allocation45_spill] sm:$0xff] %v4050_v19  ;;  %v4062_v46 = vpop.eup %3204  ;;  %v1382_v13 = vmul.f32 1.442695, %v1257_v61 }
 0x2d4   : > { %1504 = vadd.xlane.f32.xlu2 %v4016_v8  ;;  %1464 = vadd.xlane.f32.xlu0 %v4018_v45  ;;  %6579 = vst [vmem:[#allocation46_spill] sm:$0xff] %v4062_v46  ;;  %v4066_v5 = vpop.eup %3206  ;;  %3210 = vpow2.f32 %v1290_v39  ;;  %v1332_v32 = vmul.f32 1.442695, %v1232_v6 }
 0x2d5   : > { %6580 = vst [vmem:[#allocation47_spill] sm:$0xff] %v4066_v5  ;;  %3212 = vpow2.f32 %v1350_v29  ;;  %v4079_v44 = vpop.eup %3208 }
 0x2d6   : > { %6581 = vst [vmem:[#allocation48_spill] sm:$0xff] %v4079_v44  ;;  %3214 = vpow2.f32 %v1266_v23 }
 0x2d7   : > { %v4042_v56 = vpop.xlane.xlu2 %1102  ;;  %3216 = vpow2.f32 %v1382_v13  ;;  %v1195_v63 = vpop.xlane.xlu1 %1194 }
 0x2d8   : > { %v4028_v4 = vpop.xlane.xlu0 %1160  ;;  %3218 = vpow2.f32 %v1332_v32  ;;  %v1259_v23 = vsub.f32 %v3866_v31, %v1195_v63 }
 0x2d9   : > { %v1242_v7 = vsub.f32 %v3862_v42, %v4028_v4 }
 0x2da   : > { %v4081_v38 = vpop.eup %3210  ;;  %v4101_v61 = vpop.f32.mrf.mxu2 }
 0x2db   : > { %1466 = vadd.xlane.f32.xlu1 %v4030_v34  ;;  %v4085_v33 = vpop.eup %3212  ;;  %v1352_v0 = vmul.f32 1.442695, %v1242_v7 }
 0x2dc   : > { %1126 = vmax.xlane.f32.xlu2 %v4032_v18  ;;  %1496 = vadd.xlane.f32.xlu0 %v4034_v53  ;;  %v4097_v10 = vpop.eup %3214 }
 0x2dd   : > { %6582 = vst [vmem:[#allocation49_spill] sm:$0xff] %v4097_v10  ;;  %v4099_v3 = vpop.eup %3216 }
 0x2de   : > { %6583 = vst [vmem:[#allocation50_spill] sm:$0xff] %v4099_v3 }
 0x2df   : > { %v4060_v51 = vpop.xlane.xlu2 %1104 }
 0x2e0   : > { %v4044_v35 = vpop.xlane.xlu0 %1192 }
 0x2e1   : > { %v1258_v4 = vsub.f32 %v3852_v24, %v4044_v35 }
 0x2e3   : > { %1392 = vadd.xlane.f32.xlu1 %v4046_v54  ;;  %v1384_v31 = vmul.f32 1.442695, %v1258_v4 }
 0x2e4   : > { %1476 = vadd.xlane.f32.xlu2 %v4048_v41  ;;  %1462 = vadd.xlane.f32.xlu0 %v4050_v19 }
 0x2e7   : > { %v4083_v28 = vpop.xlane.xlu2 %1396 }
 0x2e8   : > { %v1163_v15 = vpop.xlane.xlu0 %1162 }
 0x2e9   : > { %v1243_v58 = vsub.f32 %v3886_v20, %v1163_v15  ;;  %v1386_v15 = vmul.f32 1.442695, %v1259_v23 }
 0x2eb   : > { %1498 = vadd.xlane.f32.xlu1 %v4062_v46  ;;  %v1354_v29 = vmul.f32 1.442695, %v1243_v58  ;;  %v4110_v58 = vpop.eup %3218 }
 0x2ec   : > { %1128 = vmax.xlane.f32.xlu2 %v4064_v55  ;;  %1508 = vadd.xlane.f32.xlu0 %v4066_v5  ;;  %6584 = vst [vmem:[#allocation51_spill] sm:$0xff] %v4110_v58 }
 0x2ed   : > { %3220 = vpow2.f32 %v1354_v29 }
 0x2ee   : > { %3222 = vpow2.f32 %v1352_v0 }
 0x2ef   : > { %v1109_v20 = vpop.xlane.xlu2 %1108  ;;  %3224 = vpow2.f32 %v1386_v15 }
 0x2f0   : > { %v4077_v57 = vpop.xlane.xlu0 %1106  ;;  %v1216_v29 = vsub.f32 %v3895_v1, %v1109_v20 }
 0x2f2   : > { %v1300_v23 = vmul.f32 1.442695, %v1216_v29 }
 0x2f3   : > { %1418 = vadd.xlane.f32.xlu1 %v4081_v38  ;;  %v4112_v63 = vpop.eup %3220 }
 0x2f4   : > { %1502 = vadd.xlane.f32.xlu2 %v4079_v44  ;;  %1478 = vadd.xlane.f32.xlu0 %v4085_v33  ;;  %v4114_v32 = vpop.eup %3222 }
 0x2f5   : > { %v4124_v15 = vpop.eup %3224 }
 0x2f6   : > { %6585 = vst [vmem:[#allocation52_spill] sm:$0xff] %v4124_v15 }
 0x2f8   : > { %v4095_v39 = vpop.xlane.xlu0 %1398 }
 0x2fb   : > { %1510 = vadd.xlane.f32.xlu1 %v4099_v3 }
 0x2fc   : > { %1394 = vadd.xlane.f32.xlu2 %v4097_v10  ;;  %1130 = vmax.xlane.f32.xlu0 %v4101_v61 }
 0x2fd   : > { %v1113_v42 = vpop.xlane.xlu1 %1112 }
 0x2fe   : > { %v1218_v24 = vsub.f32 %v3916_v47, %v1113_v42 }
 0x300   : > { %v1111_v13 = vpop.xlane.xlu0 %1110  ;;  %v1304_v4 = vmul.f32 1.442695, %v1218_v24 }
 0x301   : > { %v1217_v6 = vsub.f32 %v3903_v22, %v1111_v13 }
 0x303   : > { %v1302_v7 = vmul.f32 1.442695, %v1217_v6  ;;  %1482 = vadd.xlane.f32.xlu1 %v4112_v63 }
 0x304   : > { %1460 = vadd.xlane.f32.xlu2 %v4110_v58  ;;  %1480 = vadd.xlane.f32.xlu0 %v4114_v32 }
 0x305   : > { %3226 = vpow2.f32 %v1302_v7  ;;  %v1115_v22 = vpop.xlane.xlu2 %1114  ;;  %v4122_v0 = vpop.xlane.xlu1 %1402 }
 0x306   : > { %3228 = vpow2.f32 %v1384_v31  ;;  %v1219_v35 = vsub.f32 %v3925_v37, %v1115_v22  ;;  %vm1626_vm8 = vweird.f32 %v4122_v0 }
 0x307   : > { %3230 = vpow2.f32 %v1300_v23 }
 0x308   : > { %v1306_v1 = vmul.f32 1.442695, %v1219_v35  ;;  %3232 = vpow2.f32 %v1304_v4  ;;  %v4132_v47 = vpop.xlane.xlu0 %1400 }
 0x309   : > { %v1617_v50 = vand.u32 2147483648, %v4132_v47  ;;  %vm1611_vm12 = vweird.f32 %v4132_v47 }
 0x30a   : > { %3234 = vpow2.f32 %v1306_v1 }
 0x30b   : > { %v4126_v20 = vpop.eup %3226  ;;  %1514 = vadd.xlane.f32.xlu1 %v4124_v15 }
 0x30c   : > { %6586 = vst [vmem:[#allocation53_spill] sm:$0xff] %v4126_v20  ;;  %v4128_v13 = vpop.eup %3228  ;;  %1430 = vadd.xlane.f32.xlu2 %v4126_v20  ;;  %v1197_v20 = vsub.f32 %v3697_v25, %v3841_v26 }
 0x30d   : > { %6587 = vst [vmem:[#allocation54_spill] sm:$0xff] %v4128_v13  ;;  %1512 = vadd.xlane.f32.xlu0 %v4128_v13  ;;  %v1117_v37 = vpop.xlane.xlu2 %1116  ;;  %v4139_v7 = vpop.eup %3230 }
 0x30e   : > { %v1220_v42 = vsub.f32 %v3938_v2, %v1117_v37  ;;  %v4136_v6 = vpop.xlane.xlu1 %1404  ;;  %6588 = vst [vmem:[#allocation55_spill] sm:$0xff] %v4139_v7  ;;  %v4142_v29 = vpop.eup %3232  ;;  %v1262_v46 = vmul.f32 1.442695, %v1197_v20 }
 0x30f   : > { %3236 = vrcp.f32 %v4136_v6  ;;  %6589 = vst [vmem:[#allocation56_spill] sm:$0xff] %v4142_v29  ;;  %vm1641_vm3 = vweird.f32 %v4136_v6  ;;  %v1647_v26 = vand.u32 2147483648, %v4136_v6 }
 0x310   : > { %v1308_v31 = vmul.f32 1.442695, %v1220_v42  ;;  %3238 = vrcp.f32 %v4132_v47  ;;  %v4144_v24 = vpop.eup %3234 }
 0x311   : > { %6590 = vst [vmem:[#allocation57_spill] sm:$0xff] %v4144_v24  ;;  %3240 = vrcp.f32 %v4122_v0 }
 0x312   : > { %3242 = vpow2.f32 %v1308_v31 }
 0x313   : > { %1428 = vadd.xlane.f32.xlu1 %v4139_v7 }
 0x314   : > { %1432 = vadd.xlane.f32.xlu2 %v4142_v29 }
 0x315   : > { %1434 = vadd.xlane.f32.xlu0 %v4144_v24  ;;  %v1407_v2 = vpop.xlane.xlu2 %1406  ;;  %v1119_v22 = vpop.xlane.xlu0 %1118 }
 0x316   : > { %3244 = vrcp.f32 %v1407_v2  ;;  %v1221_v35 = vsub.f32 %v3949_v30, %v1119_v22  ;;  %v3237_v23 = vpop.eup %3236  ;;  %v4154_v42 = vpop.xlane.xlu1 %1408  ;;  %vm1656_vm7 = vweird.f32 %v1407_v2 }
 0x317   : > { %v4151_v4 = vpop.eup %3238  ;;  %v1637_v1 = vmul.f32 %v3237_v23, %v4136_v6  ;;  %3246 = vrcp.f32 %v4154_v42  ;;  %vm1642_vm4 = vweird.f32 %v3237_v23  ;;  %vm1671_vm2 = vweird.f32 %v4154_v42 }
 0x318   : > { %v1310_v37 = vmul.f32 1.442695, %v1221_v35  ;;  %v4159_v31 = vpop.eup %3240  ;;  %v1607_v30 = vmul.f32 %v4151_v4, %v4132_v47  ;;  %vm4185_vm6 = vmor %vm1641_vm3, %vm1642_vm4  ;;  %vm1612_vm13 = vweird.f32 %v4151_v4 }
 0x319   : > { %v1638_v7 = vsub.f32 1.0, %v1637_v1  ;;  %v4161_v24 = vpop.eup %3242  ;;  %v1622_v25 = vmul.f32 %v4159_v31, %v4122_v0  ;;  %vm1627_vm15 = vweird.f32 %v4159_v31  ;;  %vm4219_vm1 = vmor %vm1611_vm12, %vm1612_vm13 }
 0x31a   : > { %3248 = vpow2.f32 %v1310_v37  ;;  %6591 = vst [vmem:[#allocation58_spill] sm:$0xff] %v4161_v24  ;;  %v1608_v3 = vsub.f32 1.0, %v1607_v30 }
 0x31b   : > { %v1639_v29 = vmul.f32 %v3237_v23, %v1638_v7  ;;  %v1623_v30 = vsub.f32 1.0, %v1622_v25  ;;  %v1648_v25 = vor.u32 1.1754944e-38, %v1647_v26 }
 0x31c   : > { %v3245_v22 = vpop.eup %3244 }
 0x31d   : > { %v1652_v35 = vmul.f32 %v3245_v22, %v1407_v2  ;;  %1436 = vadd.xlane.f32.xlu0 %v4161_v24  ;;  %v1121_v44 = vpop.xlane.xlu0 %1120  ;;  %v4171_v37 = vpop.eup %3246  ;;  %v1640_v20 = vadd.f32 %v3237_v23, %v1639_v29  ;;  %v1662_v24 = vand.u32 2147483648, %v1407_v2  ;;  %vm1657_vm5 = vweird.f32 %v3245_v22 }
 0x31e   : > { %v1222_v1 = vsub.f32 %v3958_v17, %v1121_v44  ;;  %v1667_v13 = vmul.f32 %v4171_v37, %v4154_v42  ;;  %v1645_v17 = vand.u32 2147483647, %v4136_v6  ;;  %v1660_v44 = vand.u32 2147483647, %v1407_v2  ;;  %vm1658_vm9 = vmor %vm1656_vm7, %vm1657_vm5 }
 0x31f   : > { %v1653_v5 = vsub.f32 1.0, %v1652_v35  ;;  %v4173_v7 = vpop.xlane.xlu2 %1410  ;;  %v1663_v6 = vor.u32 1.1754944e-38, %v1662_v24  ;;  %vm1672_vm14 = vweird.f32 %v4171_v37  ;;  %v1618_v29 = vor.u32 1.1754944e-38, %v1617_v50  ;;  %vm4245_vm5 = vmor %vm1626_vm8, %vm1627_vm15 }
 0x320   : > { %v4175_v15 = vpop.eup %3248  ;;  %v1312_v53 = vmul.f32 1.442695, %v1222_v1  ;;  %3250 = vrcp.f32 %v4173_v7  ;;  %v1668_v35 = vsub.f32 1.0, %v1667_v13  ;;  %vm1646_vm10 = vcmp.eq.f32.partialorder %v1645_v17, 8.507059e+37  ;;  %vm4229_vm3 = vmor %vm1671_vm2, %vm1672_vm14 }
 0x321   : > { %6592 = vst [vmem:[#allocation59_spill] sm:$0xff] %v4175_v15  ;;  %v1654_v48 = vmul.f32 %v3245_v22, %v1653_v5  ;;  %1438 = vadd.xlane.f32.xlu1 %v4175_v15  ;;  %v1644_v5 = vsel %vm4185_vm6, %v3237_v23, %v1640_v20  ;;  %v1609_v15 = vmul.f32 %v4151_v4, %v1608_v3  ;;  %vm1661_vm11 = vcmp.eq.f32.partialorder %v1660_v44, 8.507059e+37 }
 0x322   : > { %3252 = vpow2.f32 %v1312_v53  ;;  %v1669_v8 = vmul.f32 %v4171_v37, %v1668_v35  ;;  %v1624_v13 = vmul.f32 %v4159_v31, %v1623_v30  ;;  %v1649_v2 = vsel %vm1646_vm10, %v1648_v25, %v1644_v5 }
 0x323   : > { %3254 = vpow2.f32 %v1262_v46  ;;  %v1655_v1 = vadd.f32 %v3245_v22, %v1654_v48  ;;  %v1632_v48 = vand.u32 2147483648, %v4122_v0  ;;  %v1610_v44 = vadd.f32 %v4151_v4, %v1609_v15 }
 0x324   : > { %v1670_v17 = vadd.f32 %v4171_v37, %v1669_v8  ;;  %v1675_v8 = vand.u32 2147483647, %v4154_v42  ;;  %v1615_v15 = vand.u32 2147483647, %v4132_v47  ;;  %v1625_v50 = vadd.f32 %v4159_v31, %v1624_v13 }
 0x325   : > { %v1659_v53 = vsel %vm1658_vm9, %v3245_v22, %v1655_v1  ;;  %v1677_v22 = vand.u32 2147483648, %v4154_v42  ;;  %v1614_v42 = vsel %vm4219_vm1, %v4151_v4, %v1610_v44  ;;  %vm1686_vm6 = vweird.f32 %v4173_v7 }
 0x326   : > { %v3251_v46 = vpop.eup %3250  ;;  %v1664_v23 = vsel %vm1661_vm11, %v1663_v6, %v1659_v53  ;;  %v4201_v24 = vpop.xlane.xlu1 %1468  ;;  %v1630_v6 = vand.u32 2147483647, %v4122_v0  ;;  %v1674_v47 = vsel %vm4229_vm3, %v4171_v37, %v1670_v17  ;;  %vm1676_vm9 = vcmp.eq.f32.partialorder %v1675_v8, 8.507059e+37 }
 0x327   : > { %v1682_v3 = vmul.f32 %v3251_v46, %v4173_v7  ;;  %v1665_v26 = vmul.f32 %v3946_v59, %v1664_v23  ;;  %v1650_v59 = vmul.f32 %v3941_v21, %v1649_v2  ;;  %vm1687_vm4 = vweird.f32 %v3251_v46  ;;  %v4260_v4 = vpop.xlane.xlu2 %1470 }
 0x328   : > { %v4204_v20 = vpop.eup %3252  ;;  %v1678_v53 = vor.u32 1.1754944e-38, %v1677_v22  ;;  %v1692_v2 = vand.u32 2147483648, %v4173_v7  ;;  %v1633_v22 = vor.u32 1.1754944e-38, %v1632_v48  ;;  %vm4253_vm7 = vmor %vm1686_vm6, %vm1687_vm4  ;;  %vm1616_vm10 = vcmp.eq.f32.partialorder %v1615_v15, 8.507059e+37 }
 0x329   : > { %6595 = vst [vmem:[#allocation60_spill] sm:$0xff] %v4204_v20  ;;  %v4210_v30 = vpop.eup %3254  ;;  %v1683_v35 = vsub.f32 1.0, %v1682_v3  ;;  %1440 = vadd.xlane.f32.xlu1 %v4204_v20  ;;  %v2485_v25 = vpack.c.bf16 %v1665_v26, %v1665_v26  ;;  %v1690_v26 = vand.u32 2147483647, %v4173_v7  ;;  %v2484_v37 = vpack.c.bf16 %v1650_v59, %v1650_v59 }
 0x32a   : > { %6596 = vst [vmem:[#allocation61_spill] sm:$0xff] %v4210_v30  ;;  %v1629_v0 = vsel %vm4245_vm5, %v4159_v31, %v1625_v50  ;;  %v1619_v48 = vsel %vm1616_vm10, %v1618_v29, %v1614_v42  ;;  %v1693_v5 = vor.u32 1.1754944e-38, %v1692_v2  ;;  %vm1631_vm8 = vcmp.eq.f32.partialorder %v1630_v6, 8.507059e+37 }
 0x32b   : > { %v1684_v1 = vmul.f32 %v3251_v46, %v1683_v35  ;;  %v1679_v35 = vsel %vm1676_vm9, %v1678_v53, %v1674_v47  ;;  %v4266_v59 = vunpack.c.l.b16 %v2485_v25  ;;  %vm1691_vm11 = vcmp.eq.f32.partialorder %v1690_v26, 8.507059e+37 }
 0x32c   : > { %v4269_v8 = vunpack.c.l.b16 %v2484_v37  ;;  %v1634_v15 = vsel %vm1631_vm8, %v1633_v22, %v1629_v0  ;;  %v1680_v31 = vmul.f32 %v3951_v60, %v1679_v35  ;;  %v1620_v21 = vmul.f32 %v3930_v40, %v1619_v48 }
 0x32d   : > { %v4250_v23 = vpop.xlane.xlu0 %1474  ;;  %v1685_v3 = vadd.f32 %v3251_v46, %v1684_v1  ;;  %6606 = vst [vmem:[#allocation63_spill] sm:$0xff] %v4266_v59  ;;  %v1635_v29 = vmul.f32 %v3923_v43, %v1634_v15  ;;  %v6617_v43 = vld [vmem:[#allocation30_spill] sm:$0xff] }
 0x32e   : > { %v4262_v44 = vpop.xlane.xlu1 %1500  ;;  %6607 = vst [vmem:[#allocation64_spill] sm:$0xff] %v4269_v8  ;;  %v2486_v6 = vpack.c.bf16 %v1680_v31, %v1680_v31  ;;  %v2482_v2 = vpack.c.bf16 %v1620_v21, %v1620_v21  ;;  %v2172_v8 = vand.u32 2147483648, %v4250_v23 }
 0x32f   : > { %6605 = vst [vmem:[#allocation62_spill] sm:$0xff] %v4262_v44  ;;  %v1689_v7 = vsel %vm4253_vm7, %v3251_v46, %v1685_v3  ;;  %v2483_v13 = vpack.c.bf16 %v1635_v29, %v1635_v29 }
 0x330   : > { %v1694_v50 = vsel %vm1691_vm11, %v1693_v5, %v1689_v7  ;;  %v4282_v3 = vunpack.c.l.b16 %v2486_v6  ;;  %v1248_v6 = vsub.f32 %v3754_v9, %v3912_v12  ;;  %v6618_v12 = vld [vmem:[#allocation15_spill] sm:$0xff] }
 0x331   : > { %1390 = vadd.xlane.f32.xlu1 %v4210_v30  ;;  %v1695_v1 = vmul.f32 %v3961_v16, %v1694_v50  ;;  %v4286_v16 = vunpack.c.l.b16 %v2482_v2  ;;  %v4290_v37 = vunpack.c.l.b16 %v2483_v13  ;;  %v1231_v9 = vsub.f32 %v6618_v12, %v6617_v43 }
 0x332   : > { %6609 = vst [vmem:[#allocation66_spill] sm:$0xff] %v4282_v3 }
 0x333   : > { %v2487_v53 = vpack.c.bf16 %v1695_v1, %v1695_v1  ;;  %6611 = vst [vmem:[#allocation68_spill] sm:$0xff] %v4286_v16 }
 0x334   : > { %6612 = vst [vmem:[#allocation69_spill] sm:$0xff] %v4290_v37 }
 0x335   : > { %v4284_v40 = vunpack.c.l.b16 %v2487_v53 }
 0x336   : > { %v4277_v25 = vpop.xlane.xlu0 %1506  ;;  %v1123_v42 = vpop.xlane.xlu1 %1122 }
 0x337   : > { %6608 = vst [vmem:[#allocation65_spill] sm:$0xff] %v4277_v25  ;;  %v4279_v47 = vpop.xlane.xlu2 %1472  ;;  %v1223_v60 = vsub.f32 %v3989_v36, %v1123_v42 }
 0x338   : > { %6610 = vst [vmem:[#allocation67_spill] sm:$0xff] %v4284_v40 }
 0x339   : > { %v1314_v26 = vmul.f32 1.442695, %v1223_v60  ;;  %v1364_v60 = vmul.f32 1.442695, %v1248_v6  ;;  %v1330_v6 = vmul.f32 1.442695, %v1231_v9 }
 0x33b   : > { %3256 = vpow2.f32 %v1314_v26 }
 0x33e   : > { %v1413_v17 = vpop.xlane.xlu1 %1412 }
 0x33f   : > { %v1415_v0 = vpop.xlane.xlu2 %1414  ;;  %v4294_v35 = vpop.xlane.xlu0 %1416  ;;  %3258 = vrcp.f32 %v1413_v17  ;;  %vm1701_vm14 = vweird.f32 %v1413_v17 }
 0x340   : > { %3260 = vrcp.f32 %v1415_v0  ;;  %vm1716_vm1 = vweird.f32 %v1415_v0  ;;  %vm1731_vm7 = vweird.f32 %v4294_v35 }
 0x341   : > { %v4296_v36 = vpop.eup %3256 }
 0x342   : > { %6613 = vst [vmem:[#allocation70_spill] sm:$0xff] %v4296_v36  ;;  %1442 = vadd.xlane.f32.xlu2 %v4296_v36  ;;  %v6620_v36 = vld [vmem:[#allocation8_spill] sm:$0xff] }
 0x345   : > { %v3259_v7 = vpop.eup %3258 }
 0x346   : > { %v1125_v48 = vpop.xlane.xlu1 %1124  ;;  %v3261_v15 = vpop.eup %3260  ;;  %v1697_v1 = vmul.f32 %v3259_v7, %v1413_v17  ;;  %vm1702_vm12 = vweird.f32 %v3259_v7 }
 0x347   : > { %v4299_v5 = vpop.xlane.xlu2 %1504  ;;  %v1224_v31 = vsub.f32 %v4014_v27, %v1125_v48  ;;  %v4302_v50 = vpop.xlane.xlu0 %1464  ;;  %v1712_v29 = vmul.f32 %v3261_v15, %v1415_v0  ;;  %vm1717_vm13 = vweird.f32 %v3261_v15  ;;  %vm4324_vm15 = vmor %vm1701_vm14, %vm1702_vm12  ;;  %vm1581_vm14 = vweird.f32 %v4083_v28 }
 0x348   : > { %6614 = vst [vmem:[#allocation71_spill] sm:$0xff] %v4299_v5  ;;  %v1698_v53 = vsub.f32 1.0, %v1697_v1  ;;  %vm4333_vm2 = vmor %vm1716_vm1, %vm1717_vm13  ;;  %v6631_v5 = vld [vmem:[#allocation23_spill] sm:$0xff] }
 0x349   : > { %v1316_v21 = vmul.f32 1.442695, %v1224_v31  ;;  %v1713_v2 = vsub.f32 1.0, %v1712_v29 }
 0x34a   : > { %v1699_v48 = vmul.f32 %v3259_v7, %v1698_v53  ;;  %v1707_v53 = vand.u32 2147483648, %v1413_v17 }
 0x34b   : > { %3262 = vpow2.f32 %v1316_v21  ;;  %v1714_v31 = vmul.f32 %v3261_v15, %v1713_v2  ;;  %v1722_v2 = vand.u32 2147483648, %v1415_v0 }
 0x34c   : > { %3264 = vpow2.f32 %v1364_v60  ;;  %v1700_v29 = vadd.f32 %v3259_v7, %v1699_v48  ;;  %v1720_v60 = vand.u32 2147483647, %v1415_v0  ;;  %v6624_v48 = vld [vmem:[#allocation21_spill] sm:$0xff]  ;;  %v6629_v0 = vld [vmem:[#allocation31_spill] sm:$0xff] }
 0x34e   : > { %v4306_v42 = vpop.xlane.xlu1 %1466  ;;  %vm1721_vm4 = vcmp.eq.f32.partialorder %v1720_v60, 8.507059e+37 }
 0x34f   : > { %v1127_v13 = vpop.xlane.xlu2 %1126  ;;  %v4308_v26 = vpop.xlane.xlu0 %1496 }
 0x350   : > { %6615 = vst [vmem:[#allocation72_spill] sm:$0xff] %v4308_v26  ;;  %v1225_v22 = vsub.f32 %v4032_v18, %v1127_v13  ;;  %v1715_v18 = vadd.f32 %v3261_v15, %v1714_v31  ;;  %v6619_v13 = vld [vmem:[#allocation19_spill] sm:$0xff]  ;;  %v6625_v31 = vld [vmem:[#allocation10_spill] sm:$0xff] }
 0x351   : > { %v4311_v27 = vpop.eup %3262  ;;  %v1196_v20 = vsub.f32 %v6620_v36, %v6619_v13  ;;  %v1228_v9 = vsub.f32 %v6625_v31, %v6624_v48  ;;  %v1704_v36 = vsel %vm4324_vm15, %v3259_v7, %v1700_v29  ;;  %v6630_v13 = vld [vmem:[#allocation16_spill] sm:$0xff]  ;;  %v1708_v48 = vor.u32 1.1754944e-38, %v1707_v53 }
 0x352   : > { %6616 = vst [vmem:[#allocation73_spill] sm:$0xff] %v4311_v27  ;;  %v1318_v46 = vmul.f32 1.442695, %v1225_v22  ;;  %1444 = vadd.xlane.f32.xlu2 %v4311_v27  ;;  %v4328_v12 = vpop.eup %3264  ;;  %v1246_v19 = vsub.f32 %v6630_v13, %v6629_v0  ;;  %v1723_v31 = vor.u32 1.1754944e-38, %v1722_v2  ;;  %v6633_v29 = vld [vmem:[#allocation24_spill] sm:$0xff]  ;;  %v6634_v27 = vld [vmem:[#allocation13_spill] sm:$0xff] }
 0x353   : > { %6623 = vst [vmem:[#allocation30_spill] sm:$0xff] %v4328_v12  ;;  %v1260_v58 = vmul.f32 1.442695, %v1196_v20  ;;  %v1324_v26 = vmul.f32 1.442695, %v1228_v9  ;;  %v6639_v9 = vld [vmem:[#allocation11_spill] sm:$0xff] }
 0x354   : > { %3266 = vpow2.f32 %v1318_v46  ;;  %v1705_v46 = vand.u32 2147483647, %v1413_v17  ;;  %v1719_v17 = vsel %vm4333_vm2, %v3261_v15, %v1715_v18  ;;  %v1230_v15 = vsub.f32 %v6634_v27, %v6633_v29  ;;  %v6640_v13 = vld [vmem:[#allocation27_spill] sm:$0xff] }
 0x355   : > { %3268 = vpow2.f32 %v1330_v6  ;;  %v1724_v7 = vsel %vm1721_vm4, %v1723_v31, %v1719_v17  ;;  %v1360_v0 = vmul.f32 1.442695, %v1246_v19  ;;  %vm2151_vm2 = vweird.f32 %v4279_v47 }
 0x356   : > { %v4316_v21 = vpop.xlane.xlu1 %1392  ;;  %vm1706_vm3 = vcmp.eq.f32.partialorder %v1705_v46, 8.507059e+37  ;;  %3270 = vpow2.f32 %v1260_v58  ;;  %v1725_v46 = vmul.f32 %v4001_v49, %v1724_v7  ;;  %v1328_v17 = vmul.f32 1.442695, %v1230_v15 }
 0x357   : > { %v4318_v1 = vpop.xlane.xlu2 %1476  ;;  %v4320_v22 = vpop.xlane.xlu0 %1462  ;;  %v1709_v43 = vsel %vm1706_vm3, %v1708_v48, %v1704_v36  ;;  %3272 = vpow2.f32 %v1324_v26  ;;  %v6641_v48 = vld [vmem:[#allocation14_spill] sm:$0xff]  ;;  %vm2166_vm3 = vweird.f32 %v4250_v23 }
 0x358   : > { %v1710_v2 = vmul.f32 %v3999_v62, %v1709_v43  ;;  %v1245_v19 = vsub.f32 %v6641_v48, %v6640_v13  ;;  %3274 = vrcp.f32 %v4294_v35  ;;  %v6642_v62 = vld [vmem:[#allocation32_spill] sm:$0xff]  ;;  %v2489_v26 = vpack.c.bf16 %v1725_v46, %v1725_v46  ;;  %v6650_v13 = vld [vmem:[#allocation22_spill] sm:$0xff] }
 0x359   : > { %3276 = vpow2.f32 %v1360_v0  ;;  %v6648_v46 = vld [vmem:[#allocation20_spill] sm:$0xff]  ;;  %v1213_v48 = vsub.f32 %v6650_v13, %v4042_v56 }
 0x35a   : > { %v4337_v30 = vpop.eup %3266  ;;  %1492 = vadd.xlane.f32.xlu2 %v4328_v12  ;;  %v6632_v12 = vld [vmem:[#allocation12_spill] sm:$0xff]  ;;  %v2488_v31 = vpack.c.bf16 %v1710_v2, %v1710_v2  ;;  %v1358_v7 = vmul.f32 1.442695, %v1245_v19 }
 0x35b   : > { %6628 = vst [vmem:[#allocation15_spill] sm:$0xff] %v4337_v30  ;;  %1446 = vadd.xlane.f32.xlu0 %v4337_v30  ;;  %v1244_v54 = vsub.f32 %v6632_v12, %v6631_v5  ;;  %v4358_v60 = vpop.eup %3268  ;;  %v6638_v12 = vld [vmem:[#allocation26_spill] sm:$0xff] }
 0x35c   : > { %6637 = vst [vmem:[#allocation21_spill] sm:$0xff] %v4358_v60  ;;  %v1229_v36 = vsub.f32 %v6639_v9, %v6638_v12  ;;  %v4368_v43 = vpop.eup %3270  ;;  %v4384_v9 = vunpack.c.l.b16 %v2488_v31 }
 0x35d   : > { %v1356_v5 = vmul.f32 1.442695, %v1244_v54  ;;  %6644 = vst [vmem:[#allocation10_spill] sm:$0xff] %v4368_v43  ;;  %v4372_v27 = vpop.eup %3272 }
 0x35e   : > { %v4351_v18 = vpop.xlane.xlu1 %1498  ;;  %v1326_v54 = vmul.f32 1.442695, %v1229_v36  ;;  %6645 = vst [vmem:[#allocation31_spill] sm:$0xff] %v4372_v27  ;;  %v4379_v2 = vpop.eup %3274  ;;  %v4386_v36 = vunpack.c.l.b16 %v2489_v26  ;;  %v6655_v26 = vld [vmem:[#allocation28_spill] sm:$0xff] }
 0x35f   : > { %6635 = vst [vmem:[#allocation19_spill] sm:$0xff] %v4351_v18  ;;  %v1129_v6 = vpop.xlane.xlu2 %1128  ;;  %v4353_v53 = vpop.xlane.xlu0 %1508  ;;  %vm1732_vm5 = vweird.f32 %v4379_v2 }
 0x360   : > { %6636 = vst [vmem:[#allocation8_spill] sm:$0xff] %v4353_v53  ;;  %v1226_v20 = vsub.f32 %v4064_v55, %v1129_v6  ;;  %v6643_v55 = vld [vmem:[#allocation17_spill] sm:$0xff]  ;;  %v6646_v6 = vld [vmem:[#allocation34_spill] sm:$0xff]  ;;  %vm4474_vm9 = vmor %vm1731_vm7, %vm1732_vm5 }
 0x361   : > { %v1247_v49 = vsub.f32 %v6643_v55, %v6642_v62  ;;  %v6653_v62 = vld [vmem:[#allocation25_spill] sm:$0xff] }
 0x362   : > { %v1320_v58 = vmul.f32 1.442695, %v1226_v20  ;;  %1458 = vadd.xlane.f32.xlu2 %v4358_v60  ;;  %v6647_v20 = vld [vmem:[#allocation18_spill] sm:$0xff]  ;;  %v1214_v55 = vsub.f32 %v6653_v62, %v4060_v51  ;;  %v1587_v60 = vand.u32 2147483648, %v4083_v28 }
 0x363   : > { %v1362_v15 = vmul.f32 1.442695, %v1247_v49  ;;  %v1249_v0 = vsub.f32 %v6647_v20, %v6646_v6  ;;  %v1727_v49 = vmul.f32 %v4379_v2, %v4294_v35  ;;  %v1294_v6 = vmul.f32 1.442695, %v1213_v48 }
 0x364   : > { %3278 = vpow2.f32 %v1320_v58 }
 0x365   : > { %3280 = vpow2.f32 %v1356_v5  ;;  %v1212_v5 = vsub.f32 %v6648_v46, %v4072_v11  ;;  %v1366_v11 = vmul.f32 1.442695, %v1249_v0  ;;  %v1296_v46 = vmul.f32 1.442695, %v1214_v55 }
 0x366   : > { %3282 = vpow2.f32 %v1328_v17  ;;  %v4370_v29 = vpop.xlane.xlu1 %1418  ;;  %v4388_v17 = vpop.eup %3276 }
 0x367   : > { %3284 = vrcp.f32 %v4370_v29  ;;  %v4377_v12 = vpop.xlane.xlu0 %1478  ;;  %6649 = vst [vmem:[#allocation16_spill] sm:$0xff] %v4388_v17  ;;  %v1292_v56 = vmul.f32 1.442695, %v1212_v5  ;;  %v1728_v5 = vsub.f32 1.0, %v1727_v49  ;;  %vm1746_vm10 = vweird.f32 %v4370_v29 }
 0x368   : > { %3286 = vrcp.f32 %v4083_v28  ;;  %v1750_v10 = vand.u32 2147483647, %v4370_v29 }
 0x369   : > { %3288 = vpow2.f32 %v1326_v54  ;;  %v1215_v54 = vsub.f32 %v6655_v26, %v4077_v57  ;;  %v1729_v49 = vmul.f32 %v4379_v2, %v1728_v5 }
 0x36a   : > { %v4392_v19 = vpop.eup %3278  ;;  %3290 = vpow2.f32 %v1358_v7  ;;  %1488 = vadd.xlane.f32.xlu2 %v4388_v17  ;;  %vm1751_vm13 = vcmp.eq.f32.partialorder %v1750_v10, 8.507059e+37 }
 0x36b   : > { %6651 = vst [vmem:[#allocation23_spill] sm:$0xff] %v4392_v19  ;;  %v4395_v58 = vpop.eup %3280  ;;  %3292 = vpow2.f32 %v1362_v15  ;;  %1448 = vadd.xlane.f32.xlu0 %v4392_v19  ;;  %v1298_v48 = vmul.f32 1.442695, %v1215_v54 }
 0x36c   : > { %6652 = vst [vmem:[#allocation12_spill] sm:$0xff] %v4395_v58  ;;  %v4402_v31 = vpop.eup %3282  ;;  %3294 = vrcp.f32 %v4095_v39 }
 0x36d   : > { %6654 = vst [vmem:[#allocation24_spill] sm:$0xff] %v4402_v31  ;;  %v4409_v15 = vpop.eup %3284  ;;  %3296 = vrcp.f32 %v4260_v4 }
 0x36e   : > { %v4412_v51 = vpop.eup %3286  ;;  %3298 = vrcp.f32 %v4201_v24  ;;  %v1742_v20 = vmul.f32 %v4409_v15, %v4370_v29  ;;  %v4417_v0 = vpop.xlane.xlu1 %1510  ;;  %vm1747_vm6 = vweird.f32 %v4409_v15 }
 0x36f   : > { %6656 = vst [vmem:[#allocation13_spill] sm:$0xff] %v4417_v0  ;;  %v4419_v57 = vpop.eup %3288  ;;  %3300 = vpow2.f32 %v1366_v11  ;;  %v1131_v13 = vpop.xlane.xlu0 %1130  ;;  %v1577_v17 = vmul.f32 %v4412_v51, %v4083_v28  ;;  %v4442_v0 = vor.u32 1.1754944e-38, %v1587_v60  ;;  %vm4487_vm8 = vmor %vm1746_vm10, %vm1747_vm6  ;;  %vm1582_vm11 = vweird.f32 %v4412_v51 }
 0x370   : > { %6657 = vst [vmem:[#allocation26_spill] sm:$0xff] %v4419_v57  ;;  %v4421_v62 = vpop.eup %3290  ;;  %3302 = vpow2.f32 %v1292_v56  ;;  %v1743_v26 = vsub.f32 1.0, %v1742_v20  ;;  %v1227_v11 = vsub.f32 %v4101_v61, %v1131_v13  ;;  %v1602_v61 = vand.u32 2147483648, %v4095_v39  ;;  %vm4574_vm1 = vmor %vm1581_vm14, %vm1582_vm11 }
 0x371   : > { %6658 = vst [vmem:[#allocation11_spill] sm:$0xff] %v4421_v62  ;;  %v4423_v7 = vpop.eup %3292  ;;  %3304 = vpow2.f32 %v1294_v6  ;;  %v1578_v19 = vsub.f32 1.0, %v1577_v17 }
 0x372   : > { %6659 = vst [vmem:[#allocation27_spill] sm:$0xff] %v4423_v7  ;;  %v4428_v30 = vpop.eup %3294  ;;  %3306 = vrcp.f32 %v4250_v23  ;;  %1454 = vadd.xlane.f32.xlu2 %v4419_v57  ;;  %v1744_v56 = vmul.f32 %v4409_v15, %v1743_v26  ;;  %v1322_v6 = vmul.f32 1.442695, %v1227_v11  ;;  %v1730_v26 = vadd.f32 %v4379_v2, %v1729_v49 }
 0x373   : > { %v4433_v55 = vpop.eup %3296  ;;  %3308 = vpow2.f32 %v1296_v46  ;;  %1388 = vadd.xlane.f32.xlu0 %v4368_v43  ;;  %v1592_v5 = vmul.f32 %v4428_v30, %v4095_v39  ;;  %v1737_v43 = vand.u32 2147483648, %v4294_v35  ;;  %v1579_v16 = vmul.f32 %v4412_v51, %v1578_v19 }
 0x374   : > { %v4438_v54 = vpop.eup %3298  ;;  %3310 = vpow2.f32 %v1298_v48  ;;  %v2132_v13 = vmul.f32 %v4433_v55, %v4260_v4  ;;  %v1745_v11 = vadd.f32 %v4409_v15, %v1744_v56  ;;  %v1735_v56 = vand.u32 2147483647, %v4294_v35 }
 0x375   : > { %v4440_v20 = vpop.eup %3300  ;;  %3312 = vrcp.f32 %v4279_v47  ;;  %v2117_v60 = vmul.f32 %v4438_v54, %v4201_v24  ;;  %v1593_v37 = vsub.f32 1.0, %v1592_v5  ;;  %v4510_v40 = vor.u32 1.1754944e-38, %v1602_v61 }
 0x376   : > { %6660 = vst [vmem:[#allocation14_spill] sm:$0xff] %v4440_v20  ;;  %v4446_v46 = vpop.eup %3302  ;;  %3314 = vpow2.f32 %v1322_v6  ;;  %v4453_v48 = vpop.xlane.xlu1 %1482  ;;  %v1752_v6 = vand.u32 2147483648, %v4370_v29  ;;  %v2133_v45 = vsub.f32 1.0, %v2132_v13  ;;  %v1734_v29 = vsel %vm4474_vm9, %v4379_v2, %v1730_v26 }
 0x377   : > { %6661 = vst [vmem:[#allocation32_spill] sm:$0xff] %v4446_v46  ;;  %v4455_v17 = vpop.eup %3304  ;;  %3316 = vrcp.f32 %v4318_v1  ;;  %v4468_v53 = vpop.xlane.xlu0 %1480  ;;  %v1749_v19 = vsel %vm4487_vm8, %v4409_v15, %v1745_v11  ;;  %v2142_v13 = vand.u32 2147483648, %v4260_v4  ;;  %vm1736_vm12 = vcmp.eq.f32.partialorder %v1735_v56, 8.507059e+37 }
 0x378   : > { %6662 = vst [vmem:[#allocation17_spill] sm:$0xff] %v4455_v17  ;;  %v4462_v57 = vpop.eup %3306  ;;  %3318 = vrcp.f32 %v4453_v48  ;;  %v1738_v17 = vor.u32 1.1754944e-38, %v1737_v43  ;;  %v1753_v3 = vor.u32 1.1754944e-38, %v1752_v6  ;;  %v4522_v61 = vmul.f32 %v4428_v30, %v1593_v37 }
 0x379   : > { %v4470_v18 = vpop.eup %3308  ;;  %3320 = vrcp.f32 %v4377_v12  ;;  %v2162_v35 = vmul.f32 %v4462_v57, %v4250_v23  ;;  %6670 = vst [vmem:[#allocation22_spill] sm:$0xff] %v4510_v40  ;;  %v4528_v56 = vor.u32 1.1754944e-38, %v2142_v13  ;;  %v4543_v13 = vor.u32 1.1754944e-38, %v2172_v8 }
 0x37a   : > { %6663 = vst [vmem:[#allocation34_spill] sm:$0xff] %v4470_v18  ;;  %v4482_v34 = vpop.eup %3310  ;;  %1484 = vadd.xlane.f32.xlu2 %v4395_v58  ;;  %3322 = vrcp.f32 %v4468_v53  ;;  %v2127_v58 = vand.u32 2147483648, %v4201_v24  ;;  %v1739_v26 = vsel %vm1736_vm12, %v1738_v17, %v1734_v29  ;;  %v1754_v11 = vsel %vm1751_vm13, %v1753_v3, %v1749_v19  ;;  %v4533_v17 = vpop.xlane.xlu2 %1502 }
 0x37b   : > { %6666 = vst [vmem:[#allocation18_spill] sm:$0xff] %v4482_v34  ;;  %v4493_v59 = vpop.eup %3312  ;;  %1494 = vadd.xlane.f32.xlu0 %v4440_v20  ;;  %v2118_v20 = vsub.f32 1.0, %v2117_v60  ;;  %v2134_v60 = vmul.f32 %v4433_v55, %v2133_v45  ;;  %v2163_v6 = vsub.f32 1.0, %v2162_v35  ;;  %v1740_v35 = vmul.f32 %v4003_v14, %v1739_v26 }
 0x37c   : > { %v4505_v5 = vpop.eup %3314  ;;  %v2147_v15 = vmul.f32 %v4493_v59, %v4279_v47  ;;  %6671 = vst [vmem:[#allocation25_spill] sm:$0xff] %v4528_v56  ;;  %v4531_v40 = vor.u32 1.1754944e-38, %v2127_v58  ;;  %v1755_v19 = vmul.f32 %v4081_v38, %v1754_v11  ;;  %3324 = vrcp.f32 %v4262_v44 }
 0x37d   : > { %6669 = vst [vmem:[#allocation20_spill] sm:$0xff] %v4505_v5  ;;  %1450 = vadd.xlane.f32.xlu1 %v4505_v5  ;;  %v4513_v2 = vpop.eup %3316  ;;  %v2119_v45 = vmul.f32 %v4438_v54, %v2118_v20  ;;  %v2164_v20 = vmul.f32 %v4462_v57, %v2163_v6  ;;  %v2157_v14 = vand.u32 2147483648, %v4279_v47  ;;  %3326 = vrcp.f32 %v4277_v25 }
 0x37e   : > { %v4519_v43 = vpop.eup %3318  ;;  %6672 = vst [vmem:[#allocation28_spill] sm:$0xff] %v4533_v17  ;;  %v2148_v10 = vsub.f32 1.0, %v2147_v15  ;;  %v2177_v58 = vmul.f32 %v4513_v2, %v4318_v1  ;;  %v4550_v17 = vadd.f32 %v4433_v55, %v2134_v60  ;;  %v4559_v15 = vadd.f32 %v4412_v51, %v1579_v16 }
 0x37f   : > { %v4526_v49 = vpop.eup %3320  ;;  %v2222_v3 = vmul.f32 %v4519_v43, %v4453_v48  ;;  %v4562_v26 = vadd.f32 %v4438_v54, %v2119_v45  ;;  %v2490_v11 = vpack.c.bf16 %v1740_v35, %v1740_v35  ;;  %v2491_v60 = vpack.c.bf16 %v1755_v19, %v1755_v19 }
 0x380   : > { %v4537_v37 = vpop.eup %3322  ;;  %v2192_v38 = vmul.f32 %v4526_v49, %v4377_v12  ;;  %vm2167_vm15 = vweird.f32 %v4462_v57  ;;  %v2149_v6 = vmul.f32 %v4493_v59, %v2148_v10  ;;  %v4579_v45 = vadd.f32 %v4462_v57, %v2164_v20 }
 0x381   : > { %v2207_v5 = vmul.f32 %v4537_v37, %v4468_v53  ;;  %v2223_v29 = vsub.f32 1.0, %v2222_v3  ;;  %v2155_v3 = vand.u32 2147483647, %v4279_v47  ;;  %v4585_v19 = vor.u32 1.1754944e-38, %v2157_v14 }
 0x382   : > { %v4591_v25 = vpop.eup %3324  ;;  %vm2152_vm4 = vweird.f32 %v4493_v59  ;;  %3328 = vrcp.f32 %v4302_v50  ;;  %vm2227_vm6 = vweird.f32 %v4519_v43  ;;  %vm2212_vm9 = vweird.f32 %v4537_v37 }
 0x383   : > { %1424 = vadd.xlane.f32.xlu0 %v4470_v18  ;;  %v2208_v8 = vsub.f32 1.0, %v2207_v5  ;;  %v2178_v18 = vsub.f32 1.0, %v2177_v58  ;;  %v1585_v5 = vand.u32 2147483647, %v4083_v28  ;;  %v2224_v10 = vmul.f32 %v4519_v43, %v2223_v29  ;;  %6675 = vst [vmem:[#allocation74_spill] sm:$0xff] %v4591_v25  ;;  %vm4620_vm10 = vmor %vm2151_vm2, %vm2152_vm4 }
 0x384   : > { %v2193_v58 = vsub.f32 1.0, %v2192_v38  ;;  %v2570_v29 = vunpack.c.l.b16 %v2490_v11  ;;  %vm4597_vm5 = vcmp.eq.f32.partialorder %v2155_v3, 8.507059e+37  ;;  %3330 = vrcp.f32 %v4306_v42  ;;  %v4610_v11 = vpop.eup %3326 }
 0x385   : > { %1456 = vadd.xlane.f32.xlu1 %v4402_v31  ;;  %v2209_v35 = vmul.f32 %v4537_v37, %v2208_v8  ;;  %v2571_v31 = vunpack.c.l.b16 %v2491_v60  ;;  %v2150_v8 = vadd.f32 %v4493_v59, %v2149_v6  ;;  %v2179_v38 = vmul.f32 %v4513_v2, %v2178_v18  ;;  %v4603_v60 = vpop.xlane.xlu2 %1394  ;;  %6680 = vst [vmem:[#allocation75_spill] sm:$0xff] %v4610_v11 }
 0x386   : > { %vm4606_vm7 = vcmp.eq.f32.partialorder %v1585_v5, 8.507059e+37  ;;  %v2225_v6 = vadd.f32 %v4519_v43, %v2224_v10  ;;  %v2194_v5 = vmul.f32 %v4526_v49, %v2193_v58  ;;  %vm2226_vm8 = vweird.f32 %v4453_v48 }
 0x387   : > { %v2210_v3 = vadd.f32 %v4537_v37, %v2209_v35  ;;  %v2579_v20 = vpack.c.b16 %v2571_v31, %v2570_v29  ;;  %v2232_v10 = vand.u32 2147483648, %v4453_v48  ;;  %v2217_v35 = vand.u32 2147483648, %v4468_v53  ;;  %vm4629_vm11 = vmor %vm2226_vm8, %vm2227_vm6 }
 0x388   : > { %3332 = vrcp.f32 %v4316_v21  ;;  %v2230_v47 = vand.u32 2147483647, %v4453_v48  ;;  %vm2211_vm12 = vweird.f32 %v4468_v53  ;;  %v2215_v29 = vand.u32 2147483647, %v4468_v53  ;;  %v4649_v53 = vpop.eup %3328 }
 0x389   : > { %2588 = vmatpush.bf16.xpose.msrb.mxu1 %v2579_v20  ;;  %vm2181_vm13 = vweird.f32 %v4318_v1  ;;  %v2185_v58 = vand.u32 2147483647, %v4318_v1  ;;  %vm4642_vm14 = vmor %vm2211_vm12, %vm2212_vm9  ;;  %v2154_v48 = vsel %vm4620_vm10, %v4493_v59, %v2150_v8  ;;  %v6687_v20 = vand.u32 2147483647, %v4250_v23  ;;  %v252_v8 = vld [vmem:[%s6408_s2 + $0x50] sm:$0xff] }
 0x38a   : > { %v2180_v25 = vadd.f32 %v4513_v2, %v2179_v38  ;;  %vm2182_vm4 = vweird.f32 %v4513_v2  ;;  %v2229_v44 = vsel %vm4629_vm11, %v4519_v43, %v2225_v6  ;;  %v2214_v59 = vsel %vm4642_vm14, %v4537_v37, %v2210_v3  ;;  %v4668_v18 = vpop.eup %3330  ;;  %vm4677_vm10 = vmor %vm2166_vm3, %vm2167_vm15 }
 0x38b   : > { %1490 = vadd.xlane.f32.xlu0 %v4423_v7  ;;  %v2187_v7 = vand.u32 2147483648, %v4318_v1  ;;  %vm4653_vm2 = vcmp.eq.f32.partialorder %v6687_v20, 8.507059e+37  ;;  %vm1597_vm6 = vweird.f32 %v4428_v30  ;;  %v2195_v38 = vadd.f32 %v4526_v49, %v2194_v5  ;;  %vm4688_vm14 = vmor %vm2181_vm13, %vm2182_vm4 }
 0x38c   : > { %vm2197_vm9 = vweird.f32 %v4526_v49  ;;  %v2233_v20 = vor.u32 1.1754944e-38, %v2232_v10  ;;  %v2218_v56 = vor.u32 1.1754944e-38, %v2217_v35  ;;  %v2202_v37 = vand.u32 2147483648, %v4377_v12  ;;  %v6707_v10 = vld [vmem:[#allocation37_spill] sm:$0xff] }
 0x38d   : > { %1426 = vadd.xlane.f32.xlu1 %v4482_v34  ;;  %3334 = vrcp.f32 %v4603_v60  ;;  %vm2231_vm8 = vcmp.eq.f32.partialorder %v2230_v47, 8.507059e+37  ;;  %vm2216_vm11 = vcmp.eq.f32.partialorder %v2215_v29, 8.507059e+37  ;;  %vm1596_vm12 = vweird.f32 %v4095_v39  ;;  %v6723_v29 = vld [vmem:[#allocation22_spill] sm:$0xff]  ;;  %v6727_v34 = vld [vmem:[#allocation35_spill] sm:$0xff] }
 0x38e   : > { %vm2196_vm15 = vweird.f32 %v4377_v12  ;;  %v2200_v23 = vand.u32 2147483647, %v4377_v12  ;;  %v2234_v6 = vsel %vm2231_vm8, %v2233_v20, %v2229_v44  ;;  %v2219_v3 = vsel %vm2216_vm11, %v2218_v56, %v2214_v59  ;;  %v4694_v5 = vpop.eup %3332 }
 0x38f   : > { %vm4698_vm3 = vmor %vm2196_vm15, %vm2197_vm9  ;;  %v2184_v1 = vsel %vm4688_vm14, %v4513_v2, %v2180_v25  ;;  %v2159_v44 = vsel %vm4597_vm5, %v4585_v19, %v2154_v48  ;;  %v2169_v12 = vsel %vm4677_vm10, %v4462_v57, %v4579_v45  ;;  %v6696_v56 = vsel %vm4574_vm1, %v4412_v51, %v4559_v15  ;;  %v4725_v19 = vpop.xlane.xlu2 %1460 }
 0x390   : > { %v1589_v35 = vsel %vm4606_vm7, %v4442_v0, %v6696_v56  ;;  %vm2137_vm13 = vweird.f32 %v4433_v55  ;;  %v2087_v25 = vmul.f32 %v4649_v53, %v4302_v50  ;;  %v2188_v2 = vor.u32 1.1754944e-38, %v2187_v7 }
 0x391   : > { %3336 = vrcp.f32 %v4320_v22  ;;  %v2199_v57 = vsel %vm4698_vm3, %v4526_v49, %v2195_v38  ;;  %vm2122_vm1 = vweird.f32 %v4438_v54  ;;  %vm2186_vm5 = vcmp.eq.f32.partialorder %v2185_v58, 8.507059e+37 }
 0x392   : > { %306 = vperm.xlu2 %3073, %v252_v8   ;;  %v2203_v51 = vor.u32 1.1754944e-38, %v2202_v37  ;;  %v6697_v0 = vpack.c.b16 %v4386_v36, %v4384_v9  ;;  %v2220_v15 = vmul.f32 %v4114_v32, %v2219_v3  ;;  %v2235_v7 = vmul.f32 %v4112_v63, %v2234_v6  ;;  %v2791_v36 = vld [vmem:[%s6410_s4 + $0x8] sm:$0xff]  ;;  %v6701_v8 = vld [vmem:[#allocation29_spill] sm:$0xff] }
 0x393   : > { %1420 = vadd.xlane.f32.xlu0 %v4446_v46  ;;  %vm2136_vm7 = vweird.f32 %v4260_v4  ;;  %vm2201_vm4 = vcmp.eq.f32.partialorder %v2200_v23, 8.507059e+37  ;;  %v2189_v16 = vsel %vm2186_vm5, %v2188_v2, %v2184_v1  ;;  %v2160_v49 = vmul.f32 %v3987_v52, %v2159_v44  ;;  %v4743_v28 = vpop.eup %3334 }
 0x394   : > { %2589 = vmatpush.bf16.xpose.msrb.mxu1 %v6697_v0  ;;  %v4741_v45 = vadd.f32 %v4428_v30, %v4522_v61  ;;  %vm2121_vm9 = vweird.f32 %v4201_v24  ;;  %3338 = vrcp.f32 %v4725_v19  ;;  %v2522_v32 = vpack.c.bf16 %v2220_v15, %v2220_v15  ;;  %v6712_v0 = vld [vmem:[#allocation66_spill] sm:$0xff]  ;;  %vm4822_vm15 = vmor %vm2136_vm7, %vm2137_vm13 }
 0x395   : > { %1452 = vadd.xlane.f32.xlu1 %v4372_v27  ;;  %v2523_v63 = vpack.c.bf16 %v2235_v7, %v2235_v7  ;;  %v2204_v9 = vsel %vm2201_vm4, %v2203_v51, %v2199_v57  ;;  %v2088_v14 = vsub.f32 1.0, %v2087_v25  ;;  %v2097_v52 = vand.u32 2147483648, %v4302_v50  ;;  %v6711_v51 = vld [vmem:[#allocation67_spill] sm:$0xff]  ;;  %vm2123_vm5 = vmor %vm2121_vm9, %vm2122_vm1 }
 0x396   : > { %v2102_v61 = vmul.f32 %v4668_v18, %v4306_v42  ;;  %v2174_v31 = vsel %vm4653_vm2, %v4543_v13, %v2169_v12  ;;  %v6698_v47 = vand.u32 2147483647, %v4201_v24  ;;  %v2692_v58 = vunpack.c.l.b16 %v2522_v32  ;;  %vm4783_vm2 = vmor %vm1596_vm12, %vm1597_vm6  ;;  %v6714_v32 = vld [vmem:[#allocation17_spill] sm:$0xff] }
 0x397   : > { %v2693_v48 = vunpack.c.l.b16 %v2523_v63  ;;  %v2190_v59 = vmul.f32 %v4048_v41, %v2189_v16  ;;  %v4764_v38 = vmul.f32 %v6701_v8, %v1589_v35  ;;  %v4766_v20 = vpop.eup %3336  ;;  %v6702_v43 = vand.u32 2147483647, %v4260_v4 }
 0x398   : > { %vm4758_vm10 = vcmp.eq.f32.partialorder %v6698_v47, 8.507059e+37  ;;  %v2095_v13 = vand.u32 2147483647, %v4302_v50  ;;  %v2112_v37 = vand.u32 2147483648, %v4306_v42  ;;  %v1562_v11 = vmul.f32 %v4743_v28, %v4603_v60 }
 0x399   : > { %vm4770_vm8 = vcmp.eq.f32.partialorder %v6702_v43, 8.507059e+37  ;;  %v2205_v41 = vmul.f32 %v4085_v33, %v2204_v9  ;;  %v1547_v6 = vmul.f32 %v4694_v5, %v4316_v21  ;;  %v2701_v3 = vpack.c.b16 %v2693_v48, %v2692_v58  ;;  %v6738_v58 = vld [vmem:[#allocation41_spill] sm:$0xff] }
 0x39a   : > { %2801 = vperm.xlu2 %3073, %v2791_v36   ;;  %v2175_v1 = vmul.f32 %v6707_v10, %v2174_v31  ;;  %v2518_v44 = vpack.c.bf16 %v2160_v49, %v2160_v49  ;;  %v6708_v33 = vand.u32 2147483647, %v4095_v39  ;;  %v2089_v56 = vmul.f32 %v4649_v53, %v2088_v14  ;;  %v4804_v57 = vpop.eup %3338 }
 0x39b   : > { %1486 = vadd.xlane.f32.xlu0 %v4421_v62  ;;  %v4798_v35 = vor.u32 1.1754944e-38, %v2097_v52  ;;  %v2103_v25 = vsub.f32 1.0, %v2102_v61  ;;  %v1599_v2 = vsel %vm4783_vm2, %v4428_v30, %v4741_v45  ;;  %vm2091_vm6 = vweird.f32 %v4302_v50  ;;  %2710 = vmatpush.bf16.xpose.msra.mxu3 %v2701_v3  ;;  %v6732_v50 = vld [vmem:[#allocation33_spill] sm:$0xff] }
 0x39c   : > { %vm4793_vm11 = vcmp.eq.f32.partialorder %v6708_v33, 8.507059e+37  ;;  %vm2092_vm12 = vweird.f32 %v4649_v53  ;;  %v2110_v39 = vand.u32 2147483647, %v4306_v42  ;;  %v6713_v15 = vpack.c.b16 %v6711_v51, %v6712_v0 }
 0x39d   : > { %v2520_v7 = vpack.c.bf16 %v2190_v59, %v2190_v59  ;;  %v2521_v16 = vpack.c.bf16 %v2205_v41, %v2205_v41  ;;  %vm2106_vm14 = vweird.f32 %v4306_v42  ;;  %v4813_v49 = vor.u32 1.1754944e-38, %v2112_v37  ;;  %1422 = vadd.xlane.f32.xlu1 %v6714_v32  ;;  %v6721_v41 = vld [vmem:[#allocation36_spill] sm:$0xff] }
 0x39e   : > { %2590 = vmatpush.bf16.xpose.msrb.mxu1 %v6713_v15  ;;  %v2072_v30 = vmul.f32 %v4766_v20, %v4320_v22  ;;  %v1563_v45 = vsub.f32 1.0, %v1562_v11  ;;  %v2519_v63 = vpack.c.bf16 %v2175_v1, %v2175_v1  ;;  %vm2107_vm3 = vweird.f32 %v4668_v18  ;;  %v6724_v1 = vld [vmem:[#allocation63_spill] sm:$0xff]  ;;  %v6743_v11 = vld [vmem:[#allocation49_spill] sm:$0xff] }
 0x39f   : > { %v1548_v36 = vsub.f32 1.0, %v1547_v6  ;;  %v2691_v14 = vunpack.c.l.b16 %v2521_v16  ;;  %v4827_v52 = vunpack.c.l.b16 %v2518_v44  ;;  %v2090_v61 = vadd.f32 %v4649_v53, %v2089_v56  ;;  %v6722_v6 = vld [vmem:[#allocation25_spill] sm:$0xff]  ;;  %v6725_v44 = vld [vmem:[#allocation64_spill] sm:$0xff]  ;;  %vm4889_vm2 = vmor %vm2106_vm14, %vm2107_vm3 }
 0x3a0   : > { %v2104_v31 = vmul.f32 %v4668_v18, %v2103_v25  ;;  %v2057_v4 = vmul.f32 %v4804_v57, %v4725_v19  ;;  %v2689_v47 = vunpack.c.l.b16 %v2519_v63  ;;  %vm4837_vm13 = vcmp.eq.f32.partialorder %v2095_v13, 8.507059e+37 }
 0x3a1   : > { %vm1551_vm7 = vweird.f32 %v4316_v21  ;;  %v2690_v48 = vunpack.c.l.b16 %v2520_v7  ;;  %v2124_v59 = vsel %vm2123_vm5, %v4438_v54, %v4562_v26  ;;  %v2139_v24 = vsel %vm4822_vm15, %v4433_v55, %v4550_v17 }
 0x3a2   : > { %v2073_v8 = vsub.f32 1.0, %v2072_v30  ;;  %v1564_v43 = vmul.f32 %v4743_v28, %v1563_v45  ;;  %v2699_v37 = vpack.c.b16 %v2689_v47, %v4827_v52  ;;  %v2129_v13 = vsel %vm4758_vm10, %v4531_v40, %v2124_v59  ;;  %vm4877_vm10 = vmor %vm2091_vm6, %vm2092_vm12 }
 0x3a3   : > { %vm4853_vm1 = vcmp.eq.f32.partialorder %v2110_v39, 8.507059e+37  ;;  %v1549_v54 = vmul.f32 %v4694_v5, %v1548_v36  ;;  %v2700_v26 = vpack.c.b16 %v2691_v14, %v2690_v48  ;;  %v2130_v23 = vmul.f32 %v6721_v41, %v2129_v13  ;;  %v6747_v39 = vld [vmem:[#allocation71_spill] sm:$0xff] }
 0x3a4   : > { %v2144_v55 = vsel %vm4770_vm8, %v6722_v6, %v2139_v24  ;;  %v2105_v17 = vadd.f32 %v4668_v18, %v2104_v31  ;;  %v1557_v3 = vand.u32 2147483648, %v4316_v21  ;;  %v2058_v10 = vsub.f32 1.0, %v2057_v4  ;;  %v251_v24 = vld [vmem:[%s6408_s2 + $0x48] sm:$0xff] }
 0x3a5   : > { %v1604_v40 = vsel %vm4793_vm11, %v6723_v29, %v1599_v2  ;;  %vm1552_vm4 = vweird.f32 %v4694_v5  ;;  %vm1567_vm9 = vweird.f32 %v4743_v28  ;;  %v6726_v33 = vpack.c.b16 %v6724_v1, %v6725_v44  ;;  %2711 = vmatpush.bf16.xpose.msra.mxu3 %v2700_v26  ;;  %v4962_v44 = vpop.xlane.xlu1 %1514 }
 0x3a6   : > { %v2145_v56 = vmul.f32 %v6727_v34, %v2144_v55  ;;  %v2516_v25 = vpack.c.bf16 %v2130_v23, %v2130_v23  ;;  %v2074_v12 = vmul.f32 %v4766_v20, %v2073_v8  ;;  %vm1566_vm8 = vweird.f32 %v4603_v60  ;;  %vm4919_vm6 = vmor %vm1551_vm7, %vm1552_vm4 }
 0x3a7   : > { %2591 = vmatpush.bf16.xpose.msrb.mxu1 %v6726_v33  ;;  %v1572_v2 = vand.u32 2147483648, %v4603_v60  ;;  %v1565_v51 = vadd.f32 %v4743_v28, %v1564_v43  ;;  %v1605_v15 = vmul.f32 %v6732_v50, %v1604_v40  ;;  %v1550_v30 = vadd.f32 %v4694_v5, %v1549_v54  ;;  %vm4899_vm11 = vmor %vm1566_vm8, %vm1567_vm9  ;;  %v6740_v54 = vld [vmem:[#allocation68_spill] sm:$0xff] }
 0x3a8   : > { %v2517_v7 = vpack.c.bf16 %v2145_v56, %v2145_v56  ;;  %v4894_v16 = vunpack.c.l.b16 %v2516_v25  ;;  %v1558_v45 = vor.u32 1.1754944e-38, %v1557_v3  ;;  %v2059_v42 = vmul.f32 %v4804_v57, %v2058_v10 }
 0x3a9   : > { %v1555_v9 = vand.u32 2147483647, %v4316_v21  ;;  %v1570_v36 = vand.u32 2147483647, %v4603_v60  ;;  %v1569_v52 = vsel %vm4899_vm11, %v4743_v28, %v1565_v51  ;;  %v2094_v31 = vsel %vm4877_vm10, %v4649_v53, %v2090_v61  ;;  %v4928_v61 = vpop.xlane.xlu2 %1430 }
 0x3aa   : > { %v2687_v14 = vunpack.c.l.b16 %v2517_v7  ;;  %v2109_v4 = vsel %vm4889_vm2, %v4668_v18, %v2105_v17  ;;  %v2075_v60 = vadd.f32 %v4766_v20, %v2074_v12  ;;  %vm2077_vm12 = vweird.f32 %v4766_v20  ;;  %6737 = vst [vmem:[#allocation29_spill] sm:$0xff] %v4928_v61  ;;  %v250_v7 = vld [vmem:[%s6408_s2 + $0x40] sm:$0xff] }
 0x3ab   : > { %v1573_v28 = vor.u32 1.1754944e-38, %v1572_v2  ;;  %v2099_v53 = vsel %vm4837_vm13, %v4798_v35, %v2094_v31  ;;  %v2481_v18 = vpack.c.bf16 %v1605_v15, %v1605_v15  ;;  %v1554_v21 = vsel %vm4919_vm6, %v4694_v5, %v1550_v30  ;;  %v6739_v5 = vld [vmem:[#allocation69_spill] sm:$0xff]  ;;  %v6750_v15 = vld [vmem:[#allocation72_spill] sm:$0xff] }
 0x3ac   : > { %v2698_v48 = vpack.c.b16 %v2687_v14, %v4894_v16  ;;  %vm1571_vm14 = vcmp.eq.f32.partialorder %v1570_v36, 8.507059e+37  ;;  %v2480_v59 = vpack.c.bf16 %v4764_v38, %v4764_v38  ;;  %v2100_v35 = vmul.f32 %v6738_v58, %v2099_v53  ;;  %v6742_v38 = vld [vmem:[#allocation42_spill] sm:$0xff]  ;;  %v2790_v16 = vld [vmem:[%s6410_s4] sm:$0xff]  ;;  %v6760_v58 = vld [vmem:[#allocation28_spill] sm:$0xff] }
 0x3ad   : > { %v1574_v8 = vsel %vm1571_vm14, %v1573_v28, %v1569_v52  ;;  %v2114_v43 = vsel %vm4853_vm1, %v4813_v49, %v2109_v4  ;;  %v2060_v13 = vadd.f32 %v4804_v57, %v2059_v42  ;;  %vm2062_vm15 = vweird.f32 %v4804_v57  ;;  %2712 = vmatpush.bf16.xpose.msra.mxu3 %v2699_v37  ;;  %v6753_v52 = vld [vmem:[#allocation19_spill] sm:$0xff]  ;;  %v6754_v4 = vld [vmem:[#allocation45_spill] sm:$0xff]  ;;  %v6755_v28 = vld [vmem:[#allocation62_spill] sm:$0xff] }
 0x3ae   : > { %v6741_v26 = vpack.c.b16 %v6739_v5, %v6740_v54  ;;  %vm1556_vm3 = vcmp.eq.f32.partialorder %v1555_v9, 8.507059e+37  ;;  %v2115_v41 = vmul.f32 %v6742_v38, %v2114_v43  ;;  %v2065_v23 = vand.u32 2147483647, %v4725_v19  ;;  %v6752_v9 = vld [vmem:[#allocation51_spill] sm:$0xff]  ;;  %v6756_v53 = vld [vmem:[#allocation74_spill] sm:$0xff]  ;;  %v6762_v54 = vld [vmem:[#allocation13_spill] sm:$0xff] }
 0x3af   : > { %v2067_v6 = vand.u32 2147483648, %v4725_v19  ;;  %v1559_v55 = vsel %vm1556_vm3, %v1558_v45, %v1554_v21  ;;  %v2514_v17 = vpack.c.bf16 %v2100_v35, %v2100_v35  ;;  %vm2061_vm5 = vweird.f32 %v4725_v19  ;;  %301 = vperm.xlu0 %3071, %v251_v24   ;;  %v6746_v19 = vld [vmem:[#allocation44_spill] sm:$0xff]  ;;  %v4997_v21 = vpop.xlane.xlu0 %1512  ;;  %v6759_v24 = vld [vmem:[#allocation75_spill] sm:$0xff]  ;;  %v5002_v35 = vpop.xlane.xlu1 %1428 }
 0x3b0   : > { %2592 = vmatpush.bf16.xpose.msrb.mxu1 %v6741_v26  ;;  %v2561_v49 = vunpack.c.l.b16 %v2481_v18  ;;  %v1575_v3 = vmul.f32 %v6743_v11, %v1574_v8  ;;  %v2515_v10 = vpack.c.bf16 %v2115_v41, %v2115_v41  ;;  %vm2076_vm13 = vweird.f32 %v4320_v22  ;;  %vm4958_vm7 = vmor %vm2061_vm5, %vm2062_vm15  ;;  %6761 = vst [vmem:[#allocation67_spill] sm:$0xff] %v5002_v35  ;;  %v253_v26 = vld [vmem:[%s6408_s2 + $0x58] sm:$0xff] }
 0x3b1   : > { %v2080_v37 = vand.u32 2147483647, %v4320_v22  ;;  %v2082_v29 = vand.u32 2147483648, %v4320_v22  ;;  %v2560_v1 = vunpack.c.l.b16 %v2480_v59  ;;  %v1560_v33 = vmul.f32 %v6746_v19, %v1559_v55  ;;  %vm4971_vm1 = vmor %vm2076_vm13, %vm2077_vm12  ;;  %v4985_v45 = vpop.xlane.xlu2 %1432  ;;  %v6758_v59 = vld [vmem:[#allocation65_spill] sm:$0xff]  ;;  %v2793_v38 = vld [vmem:[%s6410_s4 + $0x18] sm:$0xff] }
 0x3b2   : > { %v2684_v34 = vunpack.c.l.b16 %v2514_v17  ;;  %v2685_v56 = vunpack.c.l.b16 %v2515_v10  ;;  %v2064_v25 = vsel %vm4958_vm7, %v4804_v57, %v2060_v13  ;;  %3340 = vrcp.f32 %v6747_v39  ;;  %6751 = vst [vmem:[#allocation37_spill] sm:$0xff] %v4985_v45 }
 0x3b3   : > { %vm2066_vm4 = vcmp.eq.f32.partialorder %v2065_v23, 8.507059e+37  ;;  %v2068_v12 = vor.u32 1.1754944e-38, %v2067_v6  ;;  %v2574_v2 = vpack.c.b16 %v2561_v49, %v2560_v1  ;;  %v2479_v51 = vpack.c.bf16 %v1575_v3, %v1575_v3 }
 0x3b4   : > { %v2697_v0 = vpack.c.b16 %v2685_v56, %v2684_v34  ;;  %v2079_v50 = vsel %vm4971_vm1, %v4766_v20, %v2075_v60  ;;  %3342 = vrcp.f32 %v6750_v15  ;;  %v2083_v57 = vor.u32 1.1754944e-38, %v2082_v29 }
 0x3b5   : > { %v2069_v30 = vsel %vm2066_vm4, %v2068_v12, %v2064_v25  ;;  %vm2081_vm9 = vcmp.eq.f32.partialorder %v2080_v37, 8.507059e+37  ;;  %2713 = vmatpush.bf16.xpose.msra.mxu3 %v2698_v48  ;;  %v2478_v63 = vpack.c.bf16 %v1560_v33, %v1560_v33  ;;  %v2559_v20 = vunpack.c.l.b16 %v2479_v51  ;;  %v6757_v48 = vld [vmem:[#allocation8_spill] sm:$0xff] }
 0x3b6   : > { %v2084_v42 = vsel %vm2081_vm9, %v2083_v57, %v2079_v50  ;;  %296 = vperm.xlu1 %3072, %v250_v7   ;;  %v2070_v36 = vmul.f32 %v6752_v9, %v2069_v30  ;;  %3344 = vrcp.f32 %v6753_v52  ;;  %v2357_v18 = vmul.f32 %v6756_v53, %v6755_v28 }
 0x3b7   : > { %2796 = vperm.xlu0 %3071, %v2790_v16   ;;  %v2558_v31 = vunpack.c.l.b16 %v2478_v63  ;;  %v2085_v47 = vmul.f32 %v6754_v4, %v2084_v42  ;;  %3346 = vrcp.f32 %v6757_v48  ;;  %v2402_v8 = vmul.f32 %v6759_v24, %v6758_v59  ;;  %v5039_v51 = vpop.xlane.xlu1 %1438  ;;  %v5047_v30 = vpop.xlane.xlu0 %1434  ;;  %v2792_v63 = vld [vmem:[%s6410_s4 + $0x10] sm:$0xff] }
 0x3b8   : > { %2593 = vmatpush.bf16.xpose.msrb.mxu1 %v2574_v2  ;;  %v4988_v14 = vpop.eup %3340  ;;  %3348 = vrcp.f32 %v6760_v58  ;;  %v2512_v13 = vpack.c.bf16 %v2070_v36, %v2070_v36  ;;  %v2358_v55 = vsub.f32 1.0, %v2357_v18  ;;  %v2367_v10 = vand.u32 2147483648, %v6755_v28  ;;  %6765 = vst [vmem:[#allocation25_spill] sm:$0xff] %v5039_v51 }
 0x3b9   : > { %v2573_v43 = vpack.c.b16 %v2559_v20, %v2558_v31  ;;  %v2387_v5 = vmul.f32 %v4988_v14, %v6747_v39  ;;  %3350 = vrcp.f32 %v6762_v54  ;;  %v5016_v23 = vpop.xlane.xlu2 %1442  ;;  %v2513_v6 = vpack.c.bf16 %v2085_v47, %v2085_v47  ;;  %6766 = vst [vmem:[#allocation22_spill] sm:$0xff] %v5047_v30 }
 0x3ba   : > { %v4992_v60 = vpop.eup %3342  ;;  %3352 = vrcp.f32 %v4962_v44  ;;  %v2403_v49 = vsub.f32 1.0, %v2402_v8  ;;  %v2682_v11 = vunpack.c.l.b16 %v2512_v13  ;;  %v2359_v34 = vmul.f32 %v6756_v53, %v2358_v55 }
 0x3bb   : > { %v2327_v41 = vmul.f32 %v4992_v60, %v6750_v15  ;;  %v2388_v37 = vsub.f32 1.0, %v2387_v5  ;;  %v2683_v19 = vunpack.c.l.b16 %v2513_v6  ;;  %v2412_v56 = vand.u32 2147483648, %v6758_v59 }
 0x3bc   : > { %v5018_v17 = vpop.eup %3344  ;;  %3354 = vrcp.f32 %v4997_v21  ;;  %v2404_v12 = vmul.f32 %v6759_v24, %v2403_v49  ;;  %v5041_v50 = vor.u32 1.1754944e-38, %v2367_v10  ;;  %v2397_v7 = vand.u32 2147483648, %v6747_v39 }
 0x3bd   : > { %2714 = vmatpush.bf16.xpose.msra.mxu3 %v2697_v0  ;;  %6763 = vst [vmem:[#allocation66_spill] sm:$0xff] %v5018_v17  ;;  %v5020_v3 = vpop.eup %3346  ;;  %v2328_v1 = vsub.f32 1.0, %v2327_v41  ;;  %v2342_v25 = vmul.f32 %v5018_v17, %v6753_v52  ;;  %3356 = vrcp.f32 %v4928_v61  ;;  %v2696_v0 = vpack.c.b16 %v2683_v19, %v2682_v11 }
 0x3be   : > { %311 = vperm.xlu1 %3072, %v253_v26   ;;  %v5023_v29 = vpop.eup %3348  ;;  %v2417_v2 = vmul.f32 %v5020_v3, %v6757_v48  ;;  %v2389_v57 = vmul.f32 %v4988_v14, %v2388_v37  ;;  %v2337_v9 = vand.u32 2147483648, %v6750_v15  ;;  %v5060_v4 = vadd.f32 %v6756_v53, %v2359_v34 }
 0x3bf   : > { %2811 = vperm.xlu0 %3071, %v2793_v38   ;;  %6764 = vst [vmem:[#allocation36_spill] sm:$0xff] %v5023_v29  ;;  %v5026_v33 = vpop.eup %3350  ;;  %v2372_v16 = vmul.f32 %v5023_v29, %v6760_v58  ;;  %v2329_v20 = vmul.f32 %v4992_v60, %v2328_v1  ;;  %v5062_v47 = vor.u32 1.1754944e-38, %v2412_v56  ;;  %v2343_v18 = vsub.f32 1.0, %v2342_v25  ;;  %v5119_v56 = vpop.xlane.xlu0 %1436 }
 0x3c0   : > { %2594 = vmatpush.bf16.xpose.msrb.mxu1 %v2573_v43  ;;  %v5033_v22 = vpop.eup %3352  ;;  %v2432_v36 = vmul.f32 %v5026_v33, %v6762_v54  ;;  %v5067_v43 = vadd.f32 %v6759_v24, %v2404_v12  ;;  %v2352_v5 = vand.u32 2147483648, %v6753_v52  ;;  %v2418_v26 = vsub.f32 1.0, %v2417_v2  ;;  %6772 = vst [vmem:[#allocation69_spill] sm:$0xff] %v5119_v56 }
 0x3c1   : > { %v2462_v8 = vmul.f32 %v5033_v22, %v4962_v44  ;;  %v5074_v41 = vadd.f32 %v4988_v14, %v2389_v57  ;;  %v5076_v6 = vor.u32 1.1754944e-38, %v2397_v7  ;;  %v2373_v49 = vsub.f32 1.0, %v2372_v16 }
 0x3c2   : > { %v5071_v38 = vpop.eup %3354  ;;  %v5082_v10 = vadd.f32 %v4992_v60, %v2329_v20  ;;  %v5084_v37 = vor.u32 1.1754944e-38, %v2337_v9  ;;  %v2427_v1 = vand.u32 2147483648, %v6757_v48  ;;  %v2433_v19 = vsub.f32 1.0, %v2432_v36 }
 0x3c3   : > { %v5079_v11 = vpop.eup %3356  ;;  %v2344_v34 = vmul.f32 %v5018_v17, %v2343_v18  ;;  %v2382_v25 = vand.u32 2147483648, %v6760_v58  ;;  %v2463_v12 = vsub.f32 1.0, %v2462_v8  ;;  %v5090_v2 = vor.u32 1.1754944e-38, %v2352_v5  ;;  %v5107_v8 = vpop.xlane.xlu1 %1440 }
 0x3c4   : > { %6767 = vst [vmem:[#allocation63_spill] sm:$0xff] %v5079_v11  ;;  %v2447_v57 = vmul.f32 %v5071_v38, %v4997_v21  ;;  %3358 = vrcp.f32 %v5002_v35  ;;  %vm2407_vm10 = vweird.f32 %v6759_v24  ;;  %v2374_v16 = vmul.f32 %v5023_v29, %v2373_v49 }
 0x3c5   : > { %2715 = vmatpush.bf16.xpose.msra.mxu3 %v2696_v0  ;;  %v5057_v31 = vpop.xlane.xlu2 %1444  ;;  %6768 = vst [vmem:[#allocation64_spill] sm:$0xff] %v5090_v2  ;;  %v2419_v0 = vmul.f32 %v5020_v3, %v2418_v26  ;;  %v1832_v20 = vmul.f32 %v5079_v11, %v4928_v61  ;;  %v5102_v9 = vor.u32 1.1754944e-38, %v2427_v1  ;;  %v2434_v18 = vmul.f32 %v5026_v33, %v2433_v19 }
 0x3c6   : > { %2806 = vperm.xlu1 %3072, %v2792_v63   ;;  %v2442_v63 = vand.u32 2147483648, %v6762_v54  ;;  %3360 = vrcp.f32 %v4985_v45  ;;  %vm2406_vm8 = vweird.f32 %v6758_v59  ;;  %v5113_v26 = vadd.f32 %v5018_v17, %v2344_v34 }
 0x3c7   : > { %v5115_v49 = vor.u32 1.1754944e-38, %v2382_v25  ;;  %v2464_v1 = vmul.f32 %v5033_v22, %v2463_v12  ;;  %3362 = vrcp.f32 %v5047_v30  ;;  %v5122_v19 = vadd.f32 %v5020_v3, %v2419_v0  ;;  %vm5202_vm4 = vmor %vm2406_vm8, %vm2407_vm10 }
 0x3c8   : > { %6770 = vst [vmem:[#allocation33_spill] sm:$0xff] %v5113_v26  ;;  %v2470_v36 = vand.u32 2147483647, %v4962_v44  ;;  %v2472_v7 = vand.u32 2147483648, %v4962_v44  ;;  %v2448_v55 = vsub.f32 1.0, %v2447_v57  ;;  %vm2392_vm2 = vweird.f32 %v4988_v14 }
 0x3c9   : > { %6771 = vst [vmem:[#allocation41_spill] sm:$0xff] %v5115_v49  ;;  %v5128_v34 = vadd.f32 %v5023_v29, %v2374_v16  ;;  %v5131_v12 = vor.u32 1.1754944e-38, %v2442_v63  ;;  %v1833_v40 = vsub.f32 1.0, %v1832_v20  ;;  %v5136_v0 = vadd.f32 %v5026_v33, %v2434_v18 }
 0x3ca   : > { %v5133_v13 = vpop.eup %3358  ;;  %vm2466_vm11 = vweird.f32 %v4962_v44  ;;  %v1842_v42 = vand.u32 2147483648, %v4928_v61  ;;  %v2455_v57 = vand.u32 2147483647, %v4997_v21  ;;  %v6775_v46 = vand.u32 2147483647, %v6758_v59 }
 0x3cb   : > { %6773 = vst [vmem:[#allocation68_spill] sm:$0xff] %v5128_v34  ;;  %vm2391_vm12 = vweird.f32 %v6747_v39  ;;  %v2465_v63 = vadd.f32 %v5033_v22, %v2464_v1  ;;  %vm2467_vm14 = vweird.f32 %v5033_v22  ;;  %v2457_v20 = vand.u32 2147483648, %v4997_v21 }
 0x3cc   : > { %6774 = vst [vmem:[#allocation42_spill] sm:$0xff] %v5133_v13  ;;  %vm5143_vm6 = vcmp.eq.f32.partialorder %v6775_v46, 8.507059e+37  ;;  %3364 = vrcp.f32 %v5119_v56  ;;  %v5152_v18 = vpop.eup %3360  ;;  %vm5154_vm15 = vcmp.eq.f32.partialorder %v2470_v36, 8.507059e+37  ;;  %v2473_v46 = vor.u32 1.1754944e-38, %v2472_v7  ;;  %vm5175_vm5 = vmor %vm2466_vm11, %vm2467_vm14 }
 0x3cd   : > { %v5109_v5 = vpop.xlane.xlu2 %1492  ;;  %6778 = vst [vmem:[#allocation49_spill] sm:$0xff] %v5152_v18  ;;  %v2449_v32 = vmul.f32 %v5071_v38, %v2448_v55  ;;  %3366 = vrcp.f32 %v5039_v51  ;;  %v5160_v62 = vpop.eup %3362  ;;  %v6782_v1 = vand.u32 2147483647, %v6747_v39  ;;  %v1834_v26 = vmul.f32 %v5079_v11, %v1833_v40  ;;  %vm2393_vm11 = vmor %vm2391_vm12, %vm2392_vm2 }
 0x3ce   : > { %6769 = vst [vmem:[#allocation35_spill] sm:$0xff] %v5109_v5  ;;  %v1817_v27 = vmul.f32 %v5133_v13, %v5002_v35  ;;  %3368 = vrcp.f32 %v5107_v8  ;;  %v5179_v7 = vor.u32 1.1754944e-38, %v1842_v42  ;;  %vm2451_vm13 = vweird.f32 %v4997_v21 }
 0x3cf   : > { %6781 = vst [vmem:[#allocation44_spill] sm:$0xff] %v5160_v62  ;;  %vm5164_vm3 = vcmp.eq.f32.partialorder %v6782_v1, 8.507059e+37  ;;  %v1827_v1 = vand.u32 2147483648, %v5002_v35  ;;  %v1857_v40 = vand.u32 2147483648, %v4985_v45  ;;  %v2469_v61 = vsel %vm5175_vm5, %v5033_v22, %v2465_v63  ;;  %v5210_v63 = vpop.xlane.xlu1 %1390  ;;  %v6817_v35 = vld [vmem:[#allocation38_spill] sm:$0xff] }
 0x3d0   : > { %6787 = vst [vmem:[#allocation71_spill] sm:$0xff] %v5179_v7  ;;  %vm5189_vm7 = vcmp.eq.f32.partialorder %v2455_v57, 8.507059e+37  ;;  %v2458_v49 = vor.u32 1.1754944e-38, %v2457_v20  ;;  %v1847_v42 = vmul.f32 %v5152_v18, %v4985_v45  ;;  %v5195_v7 = vpop.xlane.xlu0 %1446  ;;  %vm2362_vm1 = vweird.f32 %v6756_v53 }
 0x3d1   : > { %v2450_v22 = vadd.f32 %v5071_v38, %v2449_v32  ;;  %vm2452_vm9 = vweird.f32 %v5071_v38  ;;  %v1862_v57 = vmul.f32 %v5160_v62, %v5047_v30  ;;  %3370 = vrcp.f32 %v5016_v23 }
 0x3d2   : > { %v5213_v20 = vpop.eup %3364  ;;  %v5216_v55 = vadd.f32 %v5079_v11, %v1834_v26  ;;  %v1818_v59 = vsub.f32 1.0, %v1817_v27  ;;  %v2409_v32 = vsel %vm5202_vm4, %v6759_v24, %v5067_v43  ;;  %vm2361_vm10 = vweird.f32 %v6755_v28  ;;  %vm5241_vm8 = vmor %vm2451_vm13, %vm2452_vm9  ;;  %v6801_v24 = vld [vmem:[#allocation39_spill] sm:$0xff] }
 0x3d3   : > { %v5223_v17 = vpop.eup %3366  ;;  %v5228_v58 = vsel %vm5154_vm15, %v2473_v46, %v2469_v61  ;;  %v5230_v29 = vor.u32 1.1754944e-38, %v1827_v1  ;;  %v5233_v27 = vor.u32 1.1754944e-38, %v1857_v40  ;;  %v1848_v43 = vsub.f32 1.0, %v1847_v42 }
 0x3d4   : > { %6792 = vst [vmem:[#allocation72_spill] sm:$0xff] %v5216_v55  ;;  %v5235_v52 = vpop.eup %3368  ;;  %v1872_v34 = vand.u32 2147483648, %v5047_v30  ;;  %3372 = vrcp.f32 %v5210_v63  ;;  %v2454_v21 = vsel %vm5241_vm8, %v5071_v38, %v2450_v22  ;;  %v1863_v25 = vsub.f32 1.0, %v1862_v57 }
 0x3d5   : > { %v5184_v36 = vpop.xlane.xlu2 %1458  ;;  %6793 = vst [vmem:[#allocation51_spill] sm:$0xff] %v5230_v29  ;;  %v1887_v46 = vand.u32 2147483648, %v5119_v56  ;;  %v2414_v1 = vsel %vm5143_vm6, %v5062_v47, %v2409_v32  ;;  %v1819_v40 = vmul.f32 %v5133_v13, %v1818_v59  ;;  %v1877_v42 = vmul.f32 %v5213_v20, %v5119_v56  ;;  %vm5314_vm6 = vmor %vm2361_vm10, %vm2362_vm1 }
 0x3d6   : > { %6794 = vst [vmem:[#allocation45_spill] sm:$0xff] %v5233_v27  ;;  %3374 = vrcp.f32 %v5057_v31  ;;  %v2394_v39 = vsel %vm2393_vm11, %v4988_v14, %v5074_v41  ;;  %v6797_v38 = vand.u32 2147483647, %v6755_v28  ;;  %v1892_v47 = vmul.f32 %v5223_v17, %v5039_v51  ;;  %v6804_v27 = vld [vmem:[#allocation40_spill] sm:$0xff] }
 0x3d7   : > { %v5265_v61 = vpop.eup %3370  ;;  %v1907_v16 = vmul.f32 %v5235_v52, %v5107_v8  ;;  %3376 = vrcp.f32 %v5109_v5  ;;  %v2399_v14 = vsel %vm5164_vm3, %v5076_v6, %v2394_v39  ;;  %v1849_v41 = vmul.f32 %v5152_v18, %v1848_v43 }
 0x3d8   : > { %vm5269_vm2 = vcmp.eq.f32.partialorder %v6797_v38, 8.507059e+37  ;;  %3378 = vrcp.f32 %v5195_v7  ;;  %v2415_v38 = vmul.f32 %v6801_v24, %v2414_v1  ;;  %v5291_v26 = vsel %vm5189_vm7, %v2458_v49, %v2454_v21 }
 0x3d9   : > { %v1864_v29 = vmul.f32 %v5160_v62, %v1863_v25  ;;  %v5294_v2 = vor.u32 1.1754944e-38, %v1872_v34  ;;  %v1902_v6 = vand.u32 2147483648, %v5039_v51  ;;  %v1878_v39 = vsub.f32 1.0, %v1877_v42 }
 0x3da   : > { %v5297_v43 = vpop.eup %3372  ;;  %v5299_v57 = vor.u32 1.1754944e-38, %v1887_v46  ;;  %v1922_v55 = vmul.f32 %v5265_v61, %v5016_v23  ;;  %v2400_v1 = vmul.f32 %v6804_v27, %v2399_v14  ;;  %v5305_v44 = vadd.f32 %v5133_v13, %v1819_v40 }
 0x3db   : > { %6802 = vst [vmem:[#allocation74_spill] sm:$0xff] %v5294_v2  ;;  %v1893_v49 = vsub.f32 1.0, %v1892_v47  ;;  %v1908_v21 = vsub.f32 1.0, %v1907_v16  ;;  %v5319_v46 = vadd.f32 %v5152_v18, %v1849_v41  ;;  %v2535_v42 = vpack.c.bf16 %v2415_v38, %v2415_v38 }
 0x3dc   : > { %6803 = vst [vmem:[#allocation8_spill] sm:$0xff] %v5299_v57  ;;  %v5308_v34 = vpop.eup %3374  ;;  %v2534_v40 = vpack.c.bf16 %v2400_v1, %v2400_v1  ;;  %v5325_v16 = vadd.f32 %v5160_v62, %v1864_v29  ;;  %v5327_v14 = vor.u32 1.1754944e-38, %v1902_v6  ;;  %v1532_v28 = vmul.f32 %v5297_v43, %v5210_v63 }
 0x3dd   : > { %v5284_v59 = vpop.xlane.xlu2 %1488  ;;  %6805 = vst [vmem:[#allocation65_spill] sm:$0xff] %v5305_v44  ;;  %v5322_v47 = vpop.eup %3376  ;;  %v2364_v41 = vsel %vm5314_vm6, %v6756_v53, %v5060_v4  ;;  %v1879_v1 = vmul.f32 %v5213_v20, %v1878_v39  ;;  %v1923_v27 = vsub.f32 1.0, %v1922_v55  ;;  %v1894_v29 = vmul.f32 %v5223_v17, %v1893_v49 }
 0x3de   : > { %6800 = vst [vmem:[#allocation62_spill] sm:$0xff] %v5284_v59  ;;  %v5286_v32 = vpop.xlane.xlu0 %1448  ;;  %v5335_v24 = vpop.eup %3378  ;;  %v5339_v44 = vunpack.c.l.b16 %v2534_v40  ;;  %v1909_v6 = vmul.f32 %v5235_v52, %v1908_v21  ;;  %v1917_v2 = vand.u32 2147483648, %v5107_v8  ;;  %v1937_v53 = vmul.f32 %v5308_v34, %v5057_v31 }
 0x3df   : > { %3380 = vrcp.f32 %v5286_v32  ;;  %6808 = vst [vmem:[#allocation75_spill] sm:$0xff] %v5319_v46  ;;  %v5350_v39 = vunpack.c.l.b16 %v2535_v42  ;;  %v2369_v55 = vsel %vm5269_vm2, %v5041_v50, %v2364_v41  ;;  %v1533_v21 = vsub.f32 1.0, %v1532_v28 }
 0x3e0   : > { %6809 = vst [vmem:[#allocation13_spill] sm:$0xff] %v5322_v47  ;;  %3382 = vrcp.f32 %v5184_v36  ;;  %v2297_v25 = vmul.f32 %v5322_v47, %v5109_v5  ;;  %v1952_v40 = vmul.f32 %v5335_v24, %v5195_v7  ;;  %v1924_v38 = vmul.f32 %v5265_v61, %v1923_v27 }
 0x3e1   : > { %6810 = vst [vmem:[#allocation39_spill] sm:$0xff] %v5325_v16  ;;  %v1542_v16 = vand.u32 2147483648, %v5210_v63  ;;  %v1932_v42 = vand.u32 2147483648, %v5016_v23  ;;  %v5370_v22 = vadd.f32 %v5213_v20, %v1879_v1  ;;  %v5373_v28 = vadd.f32 %v5223_v17, %v1894_v29 }
 0x3e2   : > { %6811 = vst [vmem:[#allocation40_spill] sm:$0xff] %v5327_v14  ;;  %v5375_v41 = vor.u32 1.1754944e-38, %v1917_v2  ;;  %v2370_v14 = vmul.f32 %v6817_v35, %v2369_v55  ;;  %v1938_v13 = vsub.f32 1.0, %v1937_v53  ;;  %v1947_v57 = vand.u32 2147483648, %v5057_v31 }
 0x3e3   : > { %6812 = vst [vmem:[#allocation76_spill] sm:$0xff] %v5339_v44  ;;  %v5378_v27 = vor.u32 1.1754944e-38, %v1542_v16  ;;  %vm2332_vm12 = vweird.f32 %v4992_v60  ;;  %v5385_v1 = vadd.f32 %v5235_v52, %v1909_v6  ;;  %v5388_v29 = vmul.f32 %v5297_v43, %v1533_v21 }
 0x3e4   : > { %6813 = vst [vmem:[#allocation77_spill] sm:$0xff] %v5350_v39  ;;  %v2298_v2 = vsub.f32 1.0, %v2297_v25  ;;  %v1953_v50 = vsub.f32 1.0, %v1952_v40  ;;  %v5393_v35 = vadd.f32 %v5265_v61, %v1924_v38  ;;  %v5396_v53 = vor.u32 1.1754944e-38, %v1932_v42 }
 0x3e5   : > { %v5355_v49 = vpop.eup %3380  ;;  %v5365_v46 = vpop.xlane.xlu2 %1454  ;;  %6814 = vst [vmem:[#allocation78_spill] sm:$0xff] %v5370_v22  ;;  %v2307_v55 = vand.u32 2147483648, %v5109_v5  ;;  %vm2331_vm14 = vweird.f32 %v6750_v15  ;;  %v1962_v21 = vand.u32 2147483648, %v5195_v7  ;;  %v2532_v25 = vpack.c.bf16 %v2370_v14, %v2370_v14 }
 0x3e6   : > { %v5348_v4 = vpop.xlane.xlu0 %1388  ;;  %6815 = vst [vmem:[#allocation79_spill] sm:$0xff] %v5373_v28  ;;  %v1967_v30 = vmul.f32 %v5355_v49, %v5286_v32  ;;  %v5390_v28 = vpop.eup %3382  ;;  %v1939_v38 = vmul.f32 %v5308_v34, %v1938_v13  ;;  %v5408_v16 = vor.u32 1.1754944e-38, %v1947_v57  ;;  %v2299_v11 = vmul.f32 %v5322_v47, %v2298_v2  ;;  %vm5468_vm13 = vmor %vm2331_vm14, %vm2332_vm12 }
 0x3e7   : > { %3384 = vrcp.f32 %v5348_v4  ;;  %6816 = vst [vmem:[#allocation80_spill] sm:$0xff] %v5375_v41  ;;  %v1954_v6 = vmul.f32 %v5335_v24, %v1953_v50  ;;  %v2042_v45 = vmul.f32 %v5390_v28, %v5184_v36  ;;  %v2052_v14 = vand.u32 2147483648, %v5184_v36 }
 0x3e8   : > { %3386 = vrcp.f32 %v5284_v59  ;;  %6818 = vst [vmem:[#allocation38_spill] sm:$0xff] %v5385_v1  ;;  %v1968_v42 = vsub.f32 1.0, %v1967_v30  ;;  %v5420_v13 = vor.u32 1.1754944e-38, %v2307_v55  ;;  %v6823_v18 = vand.u32 2147483647, %v6750_v15 }
 0x3e9   : > { %6819 = vst [vmem:[#allocation81_spill] sm:$0xff] %v5393_v35  ;;  %3388 = vrcp.f32 %v5365_v46  ;;  %v5431_v50 = vor.u32 1.1754944e-38, %v1962_v21  ;;  %v5436_v55 = vunpack.c.l.b16 %v2532_v25  ;;  %v5449_v5 = vadd.f32 %v5322_v47, %v2299_v11 }
 0x3ea   : > { %6820 = vst [vmem:[#allocation82_spill] sm:$0xff] %v5396_v53  ;;  %vm5427_vm15 = vcmp.eq.f32.partialorder %v6823_v18, 8.507059e+37  ;;  %v5439_v53 = vadd.f32 %v5308_v34, %v1939_v38  ;;  %v1969_v30 = vmul.f32 %v5355_v49, %v1968_v42  ;;  %v5452_v41 = vadd.f32 %v5335_v24, %v1954_v6 }
 0x3eb   : > { %6821 = vst [vmem:[#allocation83_spill] sm:$0xff] %v5408_v16  ;;  %v2043_v25 = vsub.f32 1.0, %v2042_v45  ;;  %v1975_v42 = vand.u32 2147483647, %v5286_v32  ;;  %vm1537_vm3 = vweird.f32 %v5297_v43  ;;  %vm1972_vm7 = vweird.f32 %v5355_v49 }
 0x3ec   : > { %6822 = vst [vmem:[#allocation84_spill] sm:$0xff] %v5420_v13  ;;  %v1970_v6 = vadd.f32 %v5355_v49, %v1969_v30  ;;  %vm1536_vm1 = vweird.f32 %v5210_v63  ;;  %vm1521_vm4 = vweird.f32 %v5348_v4  ;;  %v2334_v30 = vsel %vm5468_vm13, %v4992_v60, %v5082_v10 }
 0x3ed   : > { %v5399_v44 = vpop.eup %3384  ;;  %6826 = vst [vmem:[#allocation85_spill] sm:$0xff] %v5431_v50  ;;  %v5444_v13 = vpop.xlane.xlu2 %1484  ;;  %v2044_v15 = vmul.f32 %v5390_v28, %v2043_v25  ;;  %vm1971_vm9 = vweird.f32 %v5286_v32  ;;  %v2022_v47 = vand.u32 2147483648, %v5365_v46  ;;  %vm5510_vm11 = vcmp.eq.f32.partialorder %v1975_v42, 8.507059e+37  ;;  %vm5562_vm6 = vmor %vm1536_vm1, %vm1537_vm3 }
 0x3ee   : > { %v5405_v40 = vpop.eup %3386  ;;  %v1517_v39 = vmul.f32 %v5399_v44, %v5348_v4  ;;  %v5412_v22 = vpop.xlane.xlu0 %1494  ;;  %6827 = vst [vmem:[#allocation86_spill] sm:$0xff] %v5436_v55  ;;  %v5454_v55 = vor.u32 1.1754944e-38, %v2052_v14  ;;  %vm1522_vm5 = vweird.f32 %v5399_v44  ;;  %v1527_v14 = vand.u32 2147483648, %v5348_v4  ;;  %vm5506_vm8 = vmor %vm1971_vm9, %vm1972_vm7 }
 0x3ef   : > { %v2267_v35 = vmul.f32 %v5405_v40, %v5284_v59  ;;  %6828 = vst [vmem:[#allocation87_spill] sm:$0xff] %v5444_v13  ;;  %v5446_v21 = vpop.eup %3388  ;;  %vm5495_vm10 = vmor %vm1521_vm4, %vm1522_vm5  ;;  %v2339_v50 = vsel %vm5427_vm15, %v5084_v37, %v2334_v30  ;;  %v5527_v51 = vadd.f32 %v5390_v28, %v2044_v15  ;;  %v1535_v2 = vadd.f32 %v5297_v43, %v5388_v29  ;;  %v6843_v29 = vld [vmem:[#allocation10_spill] sm:$0xff] }
 0x3f0   : > { %v1518_v57 = vsub.f32 1.0, %v1517_v39  ;;  %v5423_v62 = vpop.xlane.xlu1 %1450  ;;  %6829 = vst [vmem:[#allocation88_spill] sm:$0xff] %v5449_v5  ;;  %v2277_v39 = vand.u32 2147483648, %v5284_v59  ;;  %v1525_v5 = vand.u32 2147483647, %v5348_v4  ;;  %vm2422_vm14 = vweird.f32 %v5020_v3 }
 0x3f1   : > { %3390 = vrcp.f32 %v5423_v62  ;;  %6830 = vst [vmem:[#allocation89_spill] sm:$0xff] %v5454_v55  ;;  %v2268_v1 = vsub.f32 1.0, %v2267_v35  ;;  %v2012_v35 = vmul.f32 %v5446_v21, %v5365_v46  ;;  %v5530_v55 = vor.u32 1.1754944e-38, %v2022_v47 }
 0x3f2   : > { %v1519_v18 = vmul.f32 %v5399_v44, %v1518_v57  ;;  %v1977_v57 = vand.u32 2147483648, %v5286_v32  ;;  %3392 = vrcp.f32 %v5444_v13  ;;  %v5489_v59 = vor.u32 1.1754944e-38, %v2277_v39 }
 0x3f3   : > { %v2269_v45 = vmul.f32 %v5405_v40, %v2268_v1  ;;  %3394 = vrcp.f32 %v5412_v22  ;;  %v1974_v1 = vsel %vm5506_vm8, %v5355_v49, %v1970_v6  ;;  %v2013_v39 = vsub.f32 1.0, %v2012_v35 }
 0x3f4   : > { %v1520_v11 = vadd.f32 %v5399_v44, %v1519_v18  ;;  %6833 = vst [vmem:[#allocation90_spill] sm:$0xff] %v5489_v59  ;;  %v1528_v59 = vor.u32 1.1754944e-38, %v1527_v14  ;;  %v1978_v16 = vor.u32 1.1754944e-38, %v1977_v57  ;;  %vm1526_vm2 = vcmp.eq.f32.partialorder %v1525_v5, 8.507059e+37  ;;  %v6841_v57 = vld [vmem:[#allocation43_spill] sm:$0xff] }
 0x3f5   : > { %v2247_v49 = vand.u32 2147483648, %v5444_v13  ;;  %v5534_v6 = vadd.f32 %v5405_v40, %v2269_v45  ;;  %v5543_v35 = vmul.f32 %v6841_v57, %v2339_v50  ;;  %v2014_v5 = vmul.f32 %v5446_v21, %v2013_v39  ;;  %v307_v14 = vpop.permute.xlu2 %306  ;;  %v6847_v39 = vld [vmem:[#allocation7_spill] sm:$0xff] }
 0x3f6   : > { %v5477_v38 = vpop.xlane.xlu0 %1424  ;;  %v1524_v32 = vsel %vm5495_vm10, %v5399_v44, %v1520_v11  ;;  %v5538_v37 = vsel %vm5510_vm11, %v1978_v16, %v1974_v1  ;;  %vm1986_vm12 = vweird.f32 %v5423_v62  ;;  %v1992_v10 = vand.u32 2147483648, %v5423_v62  ;;  %v6853_v44 = vld [vmem:[#allocation52_spill] sm:$0xff] }
 0x3f7   : > { %v5479_v18 = vpop.eup %3390  ;;  %v1529_v11 = vsel %vm1526_vm2, %v1528_v59, %v1524_v32  ;;  %6840 = vst [vmem:[#allocation91_spill] sm:$0xff] %v5534_v6  ;;  %3396 = vrcp.f32 %v5477_v38  ;;  %v5566_v60 = vor.u32 1.1754944e-38, %v2247_v49  ;;  %v2322_v1 = vand.u32 2147483648, %v5412_v22  ;;  %v6849_v49 = vld [vmem:[#allocation54_spill] sm:$0xff] }
 0x3f8   : > { %v1982_v4 = vmul.f32 %v5479_v18, %v5423_v62  ;;  %v5501_v25 = vpop.xlane.xlu1 %1456  ;;  %v5524_v42 = vpop.eup %3392  ;;  %6842 = vst [vmem:[#allocation43_spill] sm:$0xff] %v5543_v35  ;;  %v1530_v50 = vmul.f32 %v6843_v29, %v1529_v11  ;;  %v5575_v11 = vadd.f32 %v6847_v39, %v307_v14  ;;  %v2460_v57 = vmul.f32 %v6849_v49, %v5291_v26 }
 0x3f9   : > { %v2237_v47 = vmul.f32 %v5524_v42, %v5444_v13  ;;  %v5552_v16 = vpop.eup %3394  ;;  %3398 = vrcp.f32 %v5501_v25  ;;  %6846 = vst [vmem:[#allocation10_spill] sm:$0xff] %v5566_v60  ;;  %vm1987_vm15 = vweird.f32 %v5479_v18  ;;  %vm2437_vm3 = vweird.f32 %v5026_v33 }
 0x3fa   : > { %v1983_v56 = vsub.f32 1.0, %v1982_v4  ;;  %v1540_v4 = vand.u32 2147483647, %v5210_v63  ;;  %6848 = vst [vmem:[#allocation7_spill] sm:$0xff] %v5575_v11  ;;  %v1539_v63 = vsel %vm5562_vm6, %v5297_v43, %v1535_v2  ;;  %v2312_v59 = vmul.f32 %v5552_v16, %v5412_v22  ;;  %vm5619_vm9 = vmor %vm1986_vm12, %vm1987_vm15 }
 0x3fb   : > { %v2238_v29 = vsub.f32 1.0, %v2237_v47  ;;  %v2476_v43 = vpack.c.bf16 %v1530_v50, %v1530_v50  ;;  %vm2421_vm13 = vweird.f32 %v6757_v48  ;;  %v5594_v26 = vadd.f32 %v5446_v21, %v2014_v5 }
 0x3fc   : > { %v1984_v30 = vmul.f32 %v5479_v18, %v1983_v56  ;;  %v1990_v56 = vand.u32 2147483647, %v5423_v62  ;;  %vm1541_vm5 = vcmp.eq.f32.partialorder %v1540_v4, 8.507059e+37  ;;  %vm2436_vm1 = vweird.f32 %v6762_v54  ;;  %v6852_v4 = vld [vmem:[#allocation61_spill] sm:$0xff] }
 0x3fd   : > { %v5590_v2 = vpop.eup %3396  ;;  %v1544_v39 = vsel %vm1541_vm5, %v5378_v27, %v1539_v63  ;;  %v1993_v50 = vor.u32 1.1754944e-38, %v1992_v10  ;;  %v2475_v60 = vmul.f32 %v6853_v44, %v5228_v58  ;;  %v2538_v5 = vpack.c.bf16 %v2460_v57, %v2460_v57  ;;  %v6864_v58 = vld [vmem:[#allocation23_spill] sm:$0xff]  ;;  %vm5673_vm5 = vmor %vm2421_vm13, %vm2422_vm14 }
 0x3fe   : > { %v5550_v15 = vpop.xlane.xlu0 %1490  ;;  %v1985_v14 = vadd.f32 %v5479_v18, %v1984_v30  ;;  %vm5596_vm7 = vcmp.eq.f32.partialorder %v1990_v56, 8.507059e+37  ;;  %v1545_v49 = vmul.f32 %v6852_v4, %v1544_v39  ;;  %v6854_v56 = vand.u32 2147483647, %v6757_v48 }
 0x3ff   : > { %3400 = vrcp.f32 %v5550_v15  ;;  %v5602_v30 = vpop.eup %3398  ;;  %v2239_v45 = vmul.f32 %v5524_v42, %v2238_v29  ;;  %v2313_v10 = vsub.f32 1.0, %v2312_v59  ;;  %v5623_v63 = vor.u32 1.1754944e-38, %v2322_v1 }
 0x400   : > { %v5571_v32 = vpop.xlane.xlu1 %1426  ;;  %vm5610_vm4 = vcmp.eq.f32.partialorder %v6854_v56, 8.507059e+37  ;;  %v1989_v44 = vsel %vm5619_vm9, %v5479_v18, %v1985_v14  ;;  %v2477_v57 = vpack.c.bf16 %v1545_v49, %v1545_v49  ;;  %v2556_v29 = vunpack.c.l.b16 %v2476_v43  ;;  %vm5688_vm9 = vmor %vm2436_vm1, %vm2437_vm3  ;;  %v6888_v56 = vld [vmem:[#allocation50_spill] sm:$0xff] }
 0x401   : > { %3402 = vrcp.f32 %v5571_v32  ;;  %6859 = vst [vmem:[#allocation54_spill] sm:$0xff] %v5623_v63  ;;  %v2539_v39 = vpack.c.bf16 %v2475_v60, %v2475_v60  ;;  %v6860_v62 = vand.u32 2147483647, %v6762_v54  ;;  %v2027_v59 = vmul.f32 %v5602_v30, %v5501_v25 }
 0x402   : > { %v2037_v1 = vand.u32 2147483648, %v5501_v25  ;;  %v1787_v27 = vmul.f32 %v5590_v2, %v5477_v38  ;;  %v2753_v18 = vunpack.c.l.b16 %v2538_v5  ;;  %vm1942_vm8 = vweird.f32 %v5308_v34 }
 0x403   : > { %vm5634_vm10 = vcmp.eq.f32.partialorder %v6860_v62, 8.507059e+37  ;;  %v2557_v49 = vunpack.c.l.b16 %v2477_v57  ;;  %v2754_v62 = vunpack.c.l.b16 %v2539_v39  ;;  %v1980_v11 = vmul.f32 %v6864_v58, %v5538_v37 }
 0x404   : > { %vm1957_vm11 = vweird.f32 %v5335_v24  ;;  %v1994_v5 = vsel %vm5596_vm7, %v1993_v50, %v1989_v44  ;;  %v2314_v63 = vmul.f32 %v5552_v16, %v2313_v10  ;;  %v2035_v13 = vand.u32 2147483647, %v5501_v25 }
 0x405   : > { %v5630_v4 = vpop.eup %3400  ;;  %v1797_v35 = vand.u32 2147483648, %v5477_v38  ;;  %vm1912_vm2 = vweird.f32 %v5235_v52  ;;  %vm1941_vm6 = vweird.f32 %v5057_v31  ;;  %v2572_v58 = vpack.c.b16 %v2557_v49, %v2556_v29 }
 0x406   : > { %v5645_v60 = vpop.xlane.xlu0 %1420  ;;  %v2282_v37 = vmul.f32 %v5630_v4, %v5550_v15  ;;  %vm1956_vm12 = vweird.f32 %v5195_v7  ;;  %vm2047_vm15 = vweird.f32 %v5390_v28  ;;  %v2028_v47 = vsub.f32 1.0, %v2027_v59  ;;  %v6868_v59 = vld [vmem:[#allocation20_spill] sm:$0xff]  ;;  %vm5764_vm0 = vmor %vm1941_vm6, %vm1942_vm8 }
 0x407   : > { %6863 = vst [vmem:[#allocation61_spill] sm:$0xff] %v5645_v60  ;;  %v5647_v43 = vpop.eup %3402  ;;  %v1788_v50 = vsub.f32 1.0, %v1787_v27  ;;  %v2762_v44 = vpack.c.b16 %v2754_v62, %v2753_v18  ;;  %vm1911_vm7 = vweird.f32 %v5107_v8  ;;  %v5679_v29 = vadd.f32 %v5524_v42, %v2239_v45  ;;  %2595 = vmatpush.bf16.xpose.msrb.mxu1 %v2572_v58  ;;  %vm5781_vm8 = vmor %vm1956_vm12, %vm1957_vm11  ;;  %v6914_v62 = vld [vmem:[#allocation73_spill] sm:$0xff] }
 0x408   : > { %v5643_v14 = vpop.xlane.xlu1 %1452  ;;  %v1802_v10 = vmul.f32 %v5647_v43, %v5571_v32  ;;  %v5681_v49 = vor.u32 1.1754944e-38, %v2037_v1  ;;  %v1995_v27 = vmul.f32 %v6868_v59, %v1994_v5  ;;  %v2506_v57 = vpack.c.bf16 %v1980_v11, %v1980_v11  ;;  %vm5795_vm11 = vmor %vm1911_vm7, %vm1912_vm2 }
 0x409   : > { %3404 = vrcp.f32 %v5643_v14  ;;  %6867 = vst [vmem:[#allocation52_spill] sm:$0xff] %v5679_v29  ;;  %v6871_v18 = vand.u32 2147483647, %v5057_v31  ;;  %vm2046_vm13 = vweird.f32 %v5184_v36  ;;  %v5700_v45 = vadd.f32 %v5552_v16, %v2314_v63  ;;  %v6979_v29 = vld [vmem:[#allocation42_spill] sm:$0xff] }
 0x40a   : > { %3406 = vrcp.f32 %v5645_v60  ;;  %v5702_v11 = vor.u32 1.1754944e-38, %v1797_v35  ;;  %v2292_v1 = vand.u32 2147483648, %v5550_v15  ;;  %v2424_v54 = vsel %vm5673_vm5, %v5020_v3, %v5122_v19  ;;  %vm5818_vm7 = vmor %vm2046_vm13, %vm2047_vm15 }
 0x40b   : > { %vm5694_vm14 = vcmp.eq.f32.partialorder %v6871_v18, 8.507059e+37  ;;  %v2283_v58 = vsub.f32 1.0, %v2282_v37  ;;  %v2507_v59 = vpack.c.bf16 %v1995_v27, %v1995_v27  ;;  %v2429_v63 = vsel %vm5610_vm4, %v5102_v9, %v2424_v54  ;;  %v6878_v27 = vld [vmem:[#allocation47_spill] sm:$0xff] }
 0x40c   : > { %6874 = vst [vmem:[#allocation23_spill] sm:$0xff] %v5702_v11  ;;  %v2439_v35 = vsel %vm5688_vm9, %v5026_v33, %v5136_v0  ;;  %v2029_v3 = vmul.f32 %v5602_v30, %v2028_v47  ;;  %v1789_v19 = vmul.f32 %v5590_v2, %v1788_v50  ;;  %v1803_v37 = vsub.f32 1.0, %v1802_v10 }
 0x40d   : > { %v2430_v18 = vmul.f32 %v6878_v27, %v2429_v63  ;;  %v2631_v9 = vunpack.c.l.b16 %v2506_v57  ;;  %v2632_v0 = vunpack.c.l.b16 %v2507_v59  ;;  %v2444_v48 = vsel %vm5634_vm10, %v5131_v12, %v2439_v35  ;;  %v6889_v35 = vld [vmem:[#allocation36_spill] sm:$0xff] }
 0x40e   : > { %v6880_v47 = vand.u32 2147483647, %v5107_v8  ;;  %v6883_v10 = vand.u32 2147483647, %v5184_v36  ;;  %vm5749_vm4 = vcmp.eq.f32.partialorder %v2035_v13, 8.507059e+37  ;;  %v2445_v59 = vmul.f32 %v6888_v56, %v2444_v48  ;;  %v6893_v12 = vld [vmem:[#allocation28_spill] sm:$0xff] }
 0x40f   : > { %2771 = vmatpush.bf16.xpose.msra.mxu1 %v2762_v44  ;;  %v5709_v5 = vpop.eup %3404  ;;  %v6875_v44 = vand.u32 2147483647, %v5195_v7  ;;  %v2536_v63 = vpack.c.bf16 %v2430_v18, %v2430_v18  ;;  %v1812_v27 = vand.u32 2147483648, %v5571_v32  ;;  %v5769_v18 = vadd.f32 %v5590_v2, %v1789_v19  ;;  %v6909_v36 = vld [vmem:[#allocation25_spill] sm:$0xff]  ;;  %v6929_v7 = vld [vmem:[#allocation80_spill] sm:$0xff] }
 0x410   : > { %v5728_v6 = vpop.eup %3406  ;;  %v1997_v33 = vmul.f32 %v5709_v5, %v5643_v14  ;;  %vm5738_vm5 = vcmp.eq.f32.partialorder %v6880_v47, 8.507059e+37  ;;  %vm5744_vm9 = vcmp.eq.f32.partialorder %v6883_v10, 8.507059e+37  ;;  %v2284_v47 = vmul.f32 %v5630_v4, %v2283_v58  ;;  %v6936_v57 = vld [vmem:[#allocation24_spill] sm:$0xff] }
 0x411   : > { %vm5721_vm1 = vcmp.eq.f32.partialorder %v6875_v44, 8.507059e+37  ;;  %6879 = vst [vmem:[#allocation20_spill] sm:$0xff] %v5728_v6  ;;  %v2640_v10 = vpack.c.b16 %v2632_v0, %v2631_v9  ;;  %v5771_v48 = vor.u32 1.1754944e-38, %v2292_v1  ;;  %v1757_v56 = vmul.f32 %v5728_v6, %v5645_v60  ;;  %v5788_v0 = vpop.xlane.xlu0 %1486  ;;  %v6901_v60 = vld [vmem:[#allocation69_spill] sm:$0xff] }
 0x412   : > { %6892 = vst [vmem:[#allocation47_spill] sm:$0xff] %v5769_v18  ;;  %v2537_v44 = vpack.c.bf16 %v2445_v59, %v2445_v59  ;;  %vm2376_vm10 = vweird.f32 %v6893_v12  ;;  %vm1882_vm3 = vweird.f32 %v5213_v20  ;;  %v2030_v58 = vadd.f32 %v5602_v30, %v2029_v3 }
 0x413   : > { %v1804_v1 = vmul.f32 %v5647_v43, %v1803_v37  ;;  %v1998_v19 = vsub.f32 1.0, %v1997_v33  ;;  %v2007_v9 = vand.u32 2147483648, %v5643_v14  ;;  %2649 = vmatpush.bf16.xpose.msra.mxu2 %v2640_v10  ;;  %v6898_v3 = vand.u32 2147483647, %v5016_v23  ;;  %v6977_v37 = vld [vmem:[#allocation8_spill] sm:$0xff] }
 0x414   : > { %v2751_v33 = vunpack.c.l.b16 %v2536_v63  ;;  %v2752_v59 = vunpack.c.l.b16 %v2537_v44  ;;  %v1944_v10 = vsel %vm5764_vm0, %v5308_v34, %v5439_v53  ;;  %v1959_v8 = vsel %vm5781_vm8, %v5335_v24, %v5452_v41  ;;  %v6905_v53 = vld [vmem:[#allocation83_spill] sm:$0xff] }
 0x415   : > { %vm5801_vm12 = vcmp.eq.f32.partialorder %v6898_v3, 8.507059e+37  ;;  %v5822_v63 = vor.u32 1.1754944e-38, %v1812_v27  ;;  %v5825_v44 = vadd.f32 %v5630_v4, %v2284_v47  ;;  %v2005_v34 = vand.u32 2147483647, %v5643_v14 }
 0x416   : > { %v1949_v24 = vsel %vm5694_vm14, %v6905_v53, %v1944_v10  ;;  %v6906_v41 = vand.u32 2147483647, %v6893_v12  ;;  %vm6910_vm13 = vweird.f32 %v5602_v30  ;;  %vm6911_vm8 = vweird.f32 %v5501_v25  ;;  %v6918_v25 = vld [vmem:[#allocation85_spill] sm:$0xff] }
 0x417   : > { %6904 = vst [vmem:[#allocation50_spill] sm:$0xff] %v5822_v63  ;;  %vm5842_vm6 = vmor %vm6911_vm8, %vm6910_vm13  ;;  %v1758_v47 = vsub.f32 1.0, %v1757_v56  ;;  %v2761_v31 = vpack.c.b16 %v2752_v59, %v2751_v33  ;;  %3408 = vrcp.f32 %v5788_v0  ;;  %v1950_v10 = vmul.f32 %v6914_v62, %v1949_v24  ;;  %v6919_v59 = vld [vmem:[#allocation38_spill] sm:$0xff] }
 0x418   : > { %vm5833_vm0 = vcmp.eq.f32.partialorder %v6906_v41, 8.507059e+37  ;;  %v6915_v53 = vand.u32 2147483647, %v6901_v60  ;;  %vm2001_vm2 = vweird.f32 %v5643_v14  ;;  %v1964_v11 = vsel %vm5721_vm1, %v6918_v25, %v1959_v8  ;;  %v6920_v62 = vld [vmem:[#allocation66_spill] sm:$0xff]  ;;  %v6978_v14 = vld [vmem:[#allocation29_spill] sm:$0xff] }
 0x419   : > { %v2034_v56 = vsel %vm5842_vm6, %v5602_v30, %v2030_v58  ;;  %v2049_v33 = vsel %vm5818_vm7, %v5390_v28, %v5527_v51  ;;  %v1914_v24 = vsel %vm5795_vm11, %v5235_v52, %v6919_v59  ;;  %v1999_v39 = vmul.f32 %v5709_v5, %v1998_v19  ;;  %2772 = vmatpush.bf16.xpose.msra.mxu1 %v2761_v31  ;;  %v5877_v30 = vpop.xlane.xlu1 %1422  ;;  %v6922_v58 = vld [vmem:[#allocation15_spill] sm:$0xff]  ;;  %v7000_v52 = vld [vmem:[#allocation62_spill] sm:$0xff] }
 0x41a   : > { %vm5850_vm14 = vcmp.eq.f32.partialorder %v6915_v53, 8.507059e+37  ;;  %v5872_v53 = vadd.f32 %v5647_v43, %v1804_v1  ;;  %v5875_v8 = vor.u32 1.1754944e-38, %v2007_v9  ;;  %v1965_v3 = vmul.f32 %v6922_v58, %v1964_v11  ;;  %v6928_v9 = vld [vmem:[#allocation89_spill] sm:$0xff]  ;;  %v6930_v31 = vld [vmem:[#allocation19_spill] sm:$0xff] }
 0x41b   : > { %v6923_v51 = vand.u32 2147483647, %v6909_v36  ;;  %vm5887_vm11 = vcmp.eq.f32.partialorder %v2005_v34, 8.507059e+37  ;;  %v2504_v1 = vpack.c.bf16 %v1950_v10, %v1950_v10  ;;  %v2039_v19 = vsel %vm5749_vm4, %v5681_v49, %v2034_v56  ;;  %v6950_v34 = vld [vmem:[#allocation44_spill] sm:$0xff] }
 0x41c   : > { %6921 = vst [vmem:[#allocation36_spill] sm:$0xff] %v5872_v53  ;;  %v2054_v11 = vsel %vm5744_vm9, %v6928_v9, %v2049_v33  ;;  %v1919_v27 = vsel %vm5738_vm5, %v6929_v7, %v1914_v24  ;;  %vm6931_vm8 = vweird.f32 %v5265_v61  ;;  %vm6932_vm13 = vweird.f32 %v5016_v23  ;;  %v6940_v23 = vld [vmem:[#allocation21_spill] sm:$0xff]  ;;  %v6941_v33 = vld [vmem:[#allocation60_spill] sm:$0xff] }
 0x41d   : > { %vm5882_vm1 = vcmp.eq.f32.partialorder %v6923_v51, 8.507059e+37  ;;  %vm5905_vm6 = vmor %vm6932_vm13, %vm6931_vm8  ;;  %vm2002_vm4 = vweird.f32 %v5709_v5  ;;  %v5911_v49 = vmul.f32 %v5728_v6, %v1758_v47  ;;  %v2505_v54 = vpack.c.bf16 %v1965_v3, %v1965_v3  ;;  %v6942_v24 = vld [vmem:[#allocation81_spill] sm:$0xff]  ;;  %v5927_v58 = vpop.eup %3408  ;;  %v6959_v3 = vld [vmem:[#allocation63_spill] sm:$0xff] }
 0x41e   : > { %v2040_v10 = vmul.f32 %v6936_v57, %v2039_v19  ;;  %v6937_v50 = vand.u32 2147483647, %v5365_v46  ;;  %3410 = vrcp.f32 %v5877_v30  ;;  %v2055_v56 = vmul.f32 %v6940_v23, %v2054_v11  ;;  %v6946_v51 = vld [vmem:[#allocation49_spill] sm:$0xff]  ;;  %v6951_v57 = vld [vmem:[#allocation82_spill] sm:$0xff]  ;;  %v6981_v6 = vld [vmem:[#allocation79_spill] sm:$0xff] }
 0x41f   : > { %6935 = vst [vmem:[#allocation28_spill] sm:$0xff] %v5911_v49  ;;  %v1920_v59 = vmul.f32 %v6941_v33, %v1919_v27  ;;  %v1929_v47 = vsel %vm5905_vm6, %v5265_v61, %v6942_v24  ;;  %vm6943_vm9 = vweird.f32 %v6889_v35  ;;  %v2000_v19 = vadd.f32 %v5709_v5, %v1999_v39  ;;  %v6952_v33 = vld [vmem:[#allocation68_spill] sm:$0xff]  ;;  %v6958_v24 = vld [vmem:[#allocation70_spill] sm:$0xff] }
 0x420   : > { %vm5916_vm5 = vcmp.eq.f32.partialorder %v6937_v50, 8.507059e+37  ;;  %vm5933_vm13 = vmor %vm2376_vm10, %vm6943_vm9  ;;  %v2629_v9 = vunpack.c.l.b16 %v2504_v1  ;;  %v2630_v11 = vunpack.c.l.b16 %v2505_v54  ;;  %v2510_v7 = vpack.c.bf16 %v2040_v10, %v2040_v10  ;;  %v6953_v1 = vld [vmem:[#allocation37_spill] sm:$0xff] }
 0x421   : > { %v6947_v27 = vand.u32 2147483647, %v6930_v31  ;;  %v2511_v12 = vpack.c.bf16 %v2055_v56, %v2055_v56  ;;  %v1934_v50 = vsel %vm5801_vm12, %v6951_v57, %v1929_v47  ;;  %v2502_v23 = vpack.c.bf16 %v1920_v59, %v1920_v59  ;;  %v6957_v10 = vld [vmem:[#allocation13_spill] sm:$0xff]  ;;  %v6966_v57 = vld [vmem:[#allocation78_spill] sm:$0xff] }
 0x422   : > { %v2379_v39 = vsel %vm5933_vm13, %v6889_v35, %v6952_v33  ;;  %vm6954_vm9 = vweird.f32 %v6901_v60  ;;  %vm2302_vm7 = vweird.f32 %v6957_v10  ;;  %v2639_v56 = vpack.c.b16 %v2630_v11, %v2629_v9  ;;  %v6960_v35 = vld [vmem:[#allocation22_spill] sm:$0xff]  ;;  %v6965_v11 = vld [vmem:[#allocation41_spill] sm:$0xff]  ;;  %v7041_v33 = vld [vmem:[#allocation88_spill] sm:$0xff] }
 0x423   : > { %vm5941_vm6 = vcmp.eq.f32.partialorder %v6947_v27, 8.507059e+37  ;;  %vm5958_vm8 = vmor %vm6954_vm9, %vm1882_vm3  ;;  %v2680_v59 = vunpack.c.l.b16 %v2510_v7  ;;  %v1935_v47 = vmul.f32 %v6958_v24, %v1934_v50  ;;  %vm1866_vm13 = vweird.f32 %v6960_v35  ;;  %v6970_v24 = vld [vmem:[#allocation35_spill] sm:$0xff] }
 0x424   : > { %vm6961_vm10 = vweird.f32 %v5223_v17  ;;  %vm6962_vm15 = vweird.f32 %v6909_v36  ;;  %v5977_v27 = vmul.f32 %v5927_v58, %v5788_v0  ;;  %v2681_v9 = vunpack.c.l.b16 %v2511_v12  ;;  %2650 = vmatpush.bf16.xpose.msra.mxu2 %v2639_v56  ;;  %v6974_v12 = vld [vmem:[#allocation76_spill] sm:$0xff]  ;;  %v6009_v63 = vpop.eup %3410  ;;  %v6980_v56 = vld [vmem:[#allocation58_spill] sm:$0xff] }
 0x425   : > { %vm5971_vm3 = vmor %vm6962_vm15, %vm6961_vm10  ;;  %v2384_v7 = vsel %vm5833_vm0, %v6965_v11, %v2379_v39  ;;  %v1884_v50 = vsel %vm5958_vm8, %v5213_v20, %v6966_v57  ;;  %v6967_v36 = vand.u32 2147483647, %v6953_v1  ;;  %vm2301_vm10 = vweird.f32 %v6970_v24  ;;  %v6973_v20 = vld [vmem:[#allocation77_spill] sm:$0xff]  ;;  %v6976_v57 = vld [vmem:[#allocation48_spill] sm:$0xff] }
 0x426   : > { %vm5998_vm0 = vmor %vm2001_vm2, %vm2002_vm4  ;;  %v6975_v39 = vpack.c.b16 %v6973_v20, %v6974_v12  ;;  %v2503_v54 = vpack.c.bf16 %v1935_v47, %v1935_v47  ;;  %v2627_v11 = vunpack.c.l.b16 %v2502_v23  ;;  %v1889_v49 = vsel %vm5850_vm14, %v6977_v37, %v1884_v50  ;;  %v6998_v50 = vld [vmem:[#allocation59_spill] sm:$0xff] }
 0x427   : > { %vm5988_vm15 = vcmp.eq.f32.partialorder %v6967_v36, 8.507059e+37  ;;  %v2385_v36 = vmul.f32 %v6976_v57, %v2384_v7  ;;  %v2695_v18 = vpack.c.b16 %v2681_v9, %v2680_v59  ;;  %v1890_v53 = vmul.f32 %v6980_v56, %v1889_v49  ;;  %v6992_v49 = vld [vmem:[#allocation40_spill] sm:$0xff]  ;;  %v6997_v9 = vld [vmem:[#allocation67_spill] sm:$0xff]  ;;  %v7004_v57 = vld [vmem:[#allocation33_spill] sm:$0xff] }
 0x428   : > { %2773 = vmatpush.bf16.xpose.msra.mxu1 %v6975_v39  ;;  %v1899_v23 = vsel %vm5971_vm3, %v5223_v17, %v6981_v6  ;;  %v2004_v47 = vsel %vm5998_vm0, %v5709_v5, %v2000_v19  ;;  %v6982_v41 = vand.u32 2147483647, %v6960_v35  ;;  %v6985_v7 = vand.u32 2147483647, %v6970_v24  ;;  %v6999_v20 = vld [vmem:[#allocation31_spill] sm:$0xff]  ;;  %v7005_v56 = vld [vmem:[#allocation26_spill] sm:$0xff]  ;;  %v297_v61 = vpop.permute.xlu1 %296 }
 0x429   : > { %vm6988_vm3 = vweird.f32 %v5446_v21  ;;  %vm6989_vm9 = vweird.f32 %v5365_v46  ;;  %v2628_v5 = vunpack.c.l.b16 %v2503_v54  ;;  %v2533_v6 = vpack.c.bf16 %v2385_v36, %v2385_v36  ;;  %2716 = vmatpush.bf16.xpose.msra.mxu3 %v2695_v18  ;;  %v7071_v24 = vld [vmem:[#allocation91_spill] sm:$0xff] }
 0x42a   : > { %vm6023_vm14 = vcmp.eq.f32.partialorder %v6982_v41, 8.507059e+37  ;;  %vm6029_vm8 = vcmp.eq.f32.partialorder %v6985_v7, 8.507059e+37  ;;  %vm6038_vm2 = vmor %vm6989_vm9, %vm6988_vm3  ;;  %v1904_v19 = vsel %vm5882_vm1, %v6992_v49, %v1899_v23  ;;  %v2009_v60 = vsel %vm5887_vm11, %v5875_v8, %v2004_v47  ;;  %v7014_v49 = vld [vmem:[#allocation43_spill] sm:$0xff]  ;;  %v7108_v7 = vld [vmem:[#allocation34_spill] sm:$0xff] }
 0x42b   : > { %vm6993_vm4 = vweird.f32 %v6920_v62  ;;  %vm6994_vm12 = vweird.f32 %v6930_v31  ;;  %v1905_v28 = vmul.f32 %v6998_v50, %v1904_v19  ;;  %v2500_v13 = vpack.c.bf16 %v1890_v53, %v1890_v53 }
 0x42c   : > { %vm6053_vm9 = vmor %vm6994_vm12, %vm6993_vm4  ;;  %v2010_v12 = vmul.f32 %v6999_v20, %v2009_v60  ;;  %v2019_v8 = vsel %vm6038_vm2, %v5446_v21, %v5594_v26  ;;  %v7001_v31 = vand.u32 2147483647, %v5412_v22  ;;  %v6074_v18 = vmul.f32 %v6009_v63, %v5877_v30 }
 0x42d   : > { %v2748_v53 = vunpack.c.l.b16 %v2533_v6  ;;  %v2024_v54 = vsel %vm5916_vm5, %v5530_v55, %v2019_v8  ;;  %v2349_v21 = vsel %vm6053_vm9, %v6920_v62, %v7004_v57  ;;  %v2638_v26 = vpack.c.b16 %v2628_v5, %v2627_v11  ;;  %v7012_v62 = vld [vmem:[#allocation86_spill] sm:$0xff]  ;;  %v7013_v11 = vld [vmem:[#allocation64_spill] sm:$0xff]  ;;  %v7029_v57 = vld [vmem:[#allocation5_spill] sm:$0xff] }
 0x42e   : > { %vm6068_vm11 = vcmp.eq.f32.partialorder %v7001_v31, 8.507059e+37  ;;  %v2501_v36 = vpack.c.bf16 %v1905_v28, %v1905_v28  ;;  %v2025_v23 = vmul.f32 %v7005_v56, %v2024_v54  ;;  %v2508_v47 = vpack.c.bf16 %v2010_v12, %v2010_v12 }
 0x42f   : > { %v7006_v41 = vand.u32 2147483647, %v6978_v14  ;;  %v7009_v55 = vand.u32 2147483647, %v6997_v9  ;;  %v2759_v17 = vpack.c.b16 %v2748_v53, %v7012_v62  ;;  %v6098_v6 = vunpack.c.l.b16 %v2500_v13  ;;  %v7019_v13 = vld [vmem:[#allocation46_spill] sm:$0xff]  ;;  %2651 = vmatpush.bf16.xpose.msra.mxu2 %v2638_v26 }
 0x430   : > { %v2354_v5 = vsel %vm5941_vm6, %v7013_v11, %v2349_v21  ;;  %v2530_v19 = vpack.c.bf16 %v7014_v49, %v7014_v49  ;;  %vm7015_vm4 = vweird.f32 %v6946_v51  ;;  %vm7016_vm9 = vweird.f32 %v6953_v1 }
 0x431   : > { %vm6087_vm2 = vcmp.eq.f32.partialorder %v7006_v41, 8.507059e+37  ;;  %vm6093_vm5 = vcmp.eq.f32.partialorder %v7009_v55, 8.507059e+37  ;;  %vm6109_vm12 = vmor %vm7016_vm9, %vm7015_vm4  ;;  %v2626_v46 = vunpack.c.l.b16 %v2501_v36  ;;  %v2509_v50 = vpack.c.bf16 %v2025_v23, %v2025_v23  ;;  %2774 = vmatpush.bf16.xpose.msra.mxu1 %v2759_v17  ;;  %v7030_v36 = vld [vmem:[#allocation75_spill] sm:$0xff]  ;;  %v7034_v55 = vld [vmem:[#allocation45_spill] sm:$0xff] }
 0x432   : > { %v2678_v28 = vunpack.c.l.b16 %v2508_v47  ;;  %v2355_v20 = vmul.f32 %v7019_v13, %v2354_v5  ;;  %vm7020_vm6 = vweird.f32 %v6950_v34  ;;  %v7023_v1 = vand.u32 2147483647, %v7000_v52  ;;  %v7033_v47 = vld [vmem:[#allocation87_spill] sm:$0xff]  ;;  %v7039_v17 = vld [vmem:[#allocation56_spill] sm:$0xff]  ;;  %v7068_v23 = vld [vmem:[#allocation14_spill] sm:$0xff] }
 0x433   : > { %vm6119_vm1 = vmor %vm1866_vm13, %vm7020_vm6  ;;  %v7026_v31 = vand.u32 2147483647, %v5550_v15  ;;  %v2253_v35 = vsub.f32 1.0, %v5977_v27  ;;  %v2745_v54 = vunpack.c.l.b16 %v2530_v19  ;;  %v393_v21 = vadd.f32 %v7029_v57, %v297_v61  ;;  %v7053_v61 = vld [vmem:[#allocation30_spill] sm:$0xff]  ;;  %v7059_v57 = vld [vmem:[#allocation65_spill] sm:$0xff] }
 0x434   : > { %vm6125_vm4 = vcmp.eq.f32.partialorder %v7023_v1, 8.507059e+37  ;;  %v1854_v56 = vsel %vm6109_vm12, %v6946_v51, %v7030_v36  ;;  %vm6146_vm13 = vmor %vm2301_vm10, %vm2302_vm7  ;;  %vm2241_vm6 = vweird.f32 %v7033_v47  ;;  %v2637_v27 = vpack.c.b16 %v2626_v46, %v6098_v6  ;;  %v7040_v6 = vld [vmem:[#allocation39_spill] sm:$0xff]  ;;  %v7046_v46 = vld [vmem:[#allocation74_spill] sm:$0xff] }
 0x435   : > { %vm6132_vm0 = vcmp.eq.f32.partialorder %v7026_v31, 8.507059e+37  ;;  %v2679_v26 = vunpack.c.l.b16 %v2509_v50  ;;  %v2531_v41 = vpack.c.bf16 %v2355_v20, %v2355_v20  ;;  %v1859_v51 = vsel %vm5988_vm15, %v7034_v55, %v1854_v56  ;;  %v7047_v50 = vld [vmem:[#allocation84_spill] sm:$0xff]  ;;  %v7058_v1 = vld [vmem:[#allocation54_spill] sm:$0xff]  ;;  %v7070_v55 = vld [vmem:[#allocation71_spill] sm:$0xff] }
 0x436   : > { %vm7035_vm12 = vweird.f32 %v6959_v3  ;;  %vm7036_vm3 = vweird.f32 %v6978_v14  ;;  %vm1806_vm10 = vweird.f32 %v5571_v32  ;;  %v406_v62 = vpack.c.bf16 %v393_v21, %v393_v21  ;;  %v7080_v14 = vld [vmem:[#allocation90_spill] sm:$0xff] }
 0x437   : > { %vm6160_vm7 = vmor %vm7036_vm3, %vm7035_vm12  ;;  %v1860_v11 = vmul.f32 %v7039_v17, %v1859_v51  ;;  %v1869_v5 = vsel %vm6119_vm1, %v6950_v34, %v7040_v6  ;;  %v2304_v49 = vsel %vm6146_vm13, %v6957_v10, %v7041_v33  ;;  %vm7042_vm15 = vweird.f32 %v5552_v16  ;;  %2652 = vmatpush.bf16.xpose.msra.mxu2 %v2637_v27  ;;  %v7079_v33 = vld [vmem:[#allocation53_spill] sm:$0xff]  ;;  %v7084_v27 = vld [vmem:[#allocation20_spill] sm:$0xff] }
 0x438   : > { %vm7043_vm3 = vweird.f32 %v5412_v22  ;;  %vm1791_vm9 = vweird.f32 %v5477_v38  ;;  %v2694_v19 = vpack.c.b16 %v2679_v26, %v2678_v28  ;;  %v2746_v60 = vunpack.c.l.b16 %v2531_v41  ;;  %v7052_v28 = vld [vmem:[#allocation57_spill] sm:$0xff]  ;;  %2596 = vmatmul.bf16.vlgmr.msrb.gmra.mxu1 %v406_v62  ;;  %v7069_v26 = vld [vmem:[#allocation51_spill] sm:$0xff] }
 0x439   : > { %vm6178_vm12 = vmor %vm7043_vm3, %vm7042_vm15  ;;  %v1874_v34 = vsel %vm6023_vm14, %v7046_v46, %v1869_v5  ;;  %v2309_v10 = vsel %vm6029_vm8, %v7047_v50, %v2304_v49  ;;  %vm7048_vm1 = vweird.f32 %v6979_v29  ;;  %vm7049_vm13 = vweird.f32 %v6997_v9  ;;  %v7095_v9 = vld [vmem:[#allocation36_spill] sm:$0xff] }
 0x43a   : > { %vm6193_vm15 = vmor %vm7049_vm13, %vm7048_vm1  ;;  %vm2256_vm3 = vweird.f32 %v5788_v0  ;;  %v1875_v13 = vmul.f32 %v7052_v28, %v1874_v34  ;;  %v2498_v20 = vpack.c.bf16 %v1860_v11, %v1860_v11  ;;  %v2310_v37 = vmul.f32 %v7053_v61, %v2309_v10  ;;  %2717 = vmatpush.bf16.xpose.msra.mxu3 %v2694_v19  ;;  %v7088_v10 = vld [vmem:[#allocation27_spill] sm:$0xff] }
 0x43b   : > { %v2319_v59 = vsel %vm6178_vm12, %v5552_v16, %v5700_v45  ;;  %vm7054_vm14 = vweird.f32 %v5405_v40  ;;  %vm7055_vm8 = vweird.f32 %v7000_v52  ;;  %v2758_v12 = vpack.c.b16 %v2746_v60, %v2745_v54  ;;  %v7060_v45 = vld [vmem:[#allocation72_spill] sm:$0xff] }
 0x43c   : > { %vm6208_vm1 = vmor %vm7055_vm8, %vm7054_vm14  ;;  %v2324_v31 = vsel %vm6068_vm11, %v7058_v1, %v2319_v59  ;;  %v1824_v16 = vsel %vm6193_vm15, %v6979_v29, %v7059_v57  ;;  %v1839_v52 = vsel %vm6160_vm7, %v6959_v3, %v7060_v45  ;;  %v7061_v21 = vand.u32 2147483647, %v5571_v32  ;;  %v7099_v45 = vld [vmem:[#allocation47_spill] sm:$0xff] }
 0x43d   : > { %vm7064_vm13 = vweird.f32 %v5630_v4  ;;  %vm7065_vm11 = vweird.f32 %v5550_v15  ;;  %v2254_v29 = vmul.f32 %v5927_v58, %v2253_v35  ;;  %v2499_v54 = vpack.c.bf16 %v1875_v13, %v1875_v13  ;;  %2775 = vmatpush.bf16.xpose.msra.mxu1 %v2758_v12  ;;  %v7092_v13 = vld [vmem:[#allocation7_spill] sm:$0xff] }
 0x43e   : > { %vm6225_vm12 = vcmp.eq.f32.partialorder %v7061_v21, 8.507059e+37  ;;  %vm6233_vm14 = vmor %vm7065_vm11, %vm7064_vm13  ;;  %v2623_v56 = vunpack.c.l.b16 %v2498_v20  ;;  %v2325_v3 = vmul.f32 %v7068_v23, %v2324_v31  ;;  %v1829_v41 = vsel %vm6093_vm5, %v7069_v26, %v1824_v16 }
 0x43f   : > { %v1844_v51 = vsel %vm6087_vm2, %v7070_v55, %v1839_v52  ;;  %v2274_v15 = vsel %vm6208_vm1, %v5405_v40, %v7071_v24  ;;  %v2289_v35 = vsel %vm6233_vm14, %v5630_v4, %v5825_v44  ;;  %v7072_v62 = vand.u32 2147483647, %v7033_v47  ;;  %v7078_v4 = vld [vmem:[#allocation55_spill] sm:$0xff]  ;;  %v7104_v24 = vld [vmem:[#allocation28_spill] sm:$0xff] }
 0x440   : > { %v7075_v25 = vand.u32 2147483647, %v5477_v38  ;;  %v1773_v11 = vsub.f32 1.0, %v6074_v18  ;;  %v2624_v40 = vunpack.c.l.b16 %v2499_v54  ;;  %v2528_v6 = vpack.c.bf16 %v2310_v37, %v2310_v37  ;;  %v7094_v37 = vld [vmem:[#allocation16_spill] sm:$0xff] }
 0x441   : > { %vm6255_vm7 = vcmp.eq.f32.partialorder %v7072_v62, 8.507059e+37  ;;  %v2529_v5 = vpack.c.bf16 %v2325_v3, %v2325_v3  ;;  %v1830_v44 = vmul.f32 %v7078_v4, %v1829_v41  ;;  %v1845_v49 = vmul.f32 %v7079_v33, %v1844_v51  ;;  %v7102_v41 = vld [vmem:[#allocation23_spill] sm:$0xff]  ;;  %v7103_v51 = vld [vmem:[#allocation10_spill] sm:$0xff]  ;;  %v7109_v33 = vld [vmem:[#allocation12_spill] sm:$0xff] }
 0x442   : > { %vm6261_vm5 = vcmp.eq.f32.partialorder %v7075_v25, 8.507059e+37  ;;  %v2279_v19 = vsel %vm6125_vm4, %v7080_v14, %v2274_v15  ;;  %v2294_v60 = vsel %vm6132_vm0, %v5771_v48, %v2289_v35  ;;  %vm7081_vm2 = vweird.f32 %v5524_v42  ;;  %v7105_v62 = vld [vmem:[#allocation18_spill] sm:$0xff] }
 0x443   : > { %vm6278_vm15 = vmor %vm2241_vm6, %vm7081_vm2  ;;  %vm1762_vm8 = vweird.f32 %v7084_v27  ;;  %v2255_v46 = vadd.f32 %v5927_v58, %v2254_v29  ;;  %vm2257_vm1 = vweird.f32 %v5927_v58  ;;  %v2636_v8 = vpack.c.b16 %v2624_v40, %v2623_v56  ;;  %v7100_v29 = vld [vmem:[#allocation52_spill] sm:$0xff]  ;;  %v7101_v56 = vld [vmem:[#allocation50_spill] sm:$0xff] }
 0x444   : > { %v2744_v34 = vunpack.c.l.b16 %v2529_v5  ;;  %vm7085_vm4 = vweird.f32 %v5647_v43  ;;  %v2260_v53 = vand.u32 2147483647, %v5788_v0  ;;  %v2496_v47 = vpack.c.bf16 %v1830_v44, %v1830_v44 }
 0x445   : > { %vm6289_vm0 = vmor %vm1806_vm10, %vm7085_vm4  ;;  %v2497_v50 = vpack.c.bf16 %v1845_v49, %v1845_v49  ;;  %v2295_v22 = vmul.f32 %v7088_v10, %v2294_v60  ;;  %vm7089_vm6 = vweird.f32 %v5590_v2  ;;  %v1774_v32 = vmul.f32 %v6009_v63, %v1773_v11  ;;  %2653 = vmatpush.bf16.xpose.msra.mxu2 %v2636_v8  ;;  %v7106_v11 = vld [vmem:[#allocation11_spill] sm:$0xff]  ;;  %v7110_v10 = vld [vmem:[#allocation17_spill] sm:$0xff] }
 0x446   : > { %vm6299_vm13 = vmor %vm1791_vm9, %vm7089_vm6  ;;  %v7093_v20 = vpack.c.bf16 %v7092_v13, %v7092_v13  ;;  %v2743_v61 = vunpack.c.l.b16 %v2528_v6  ;;  %v2280_v59 = vmul.f32 %v7094_v37, %v2279_v19  ;;  %v1809_v12 = vsel %vm6289_vm0, %v5647_v43, %v7095_v9  ;;  %v7107_v6 = vld [vmem:[#allocation61_spill] sm:$0xff]  ;;  %v7111_v13 = vld [vmem:[#allocation32_spill] sm:$0xff] }
 0x447   : > { %vm6314_vm9 = vmor %vm2256_vm3, %vm2257_vm1  ;;  %v7098_v1 = vand.u32 2147483648, %v5788_v0  ;;  %v2621_v57 = vunpack.c.l.b16 %v2496_v47  ;;  %v2622_v16 = vunpack.c.l.b16 %v2497_v50  ;;  %v1794_v52 = vsel %vm6299_vm13, %v5590_v2, %v7099_v45 }
 0x448   : > { %2718 = vmatmul.bf16.vlgmr.msra.gmra.mxu3 %v7093_v20  ;;  %v2757_v21 = vpack.c.b16 %v2744_v34, %v2743_v61  ;;  %v2527_v39 = vpack.c.bf16 %v2295_v22, %v2295_v22  ;;  %v2244_v43 = vsel %vm6278_vm15, %v5524_v42, %v7100_v29  ;;  %v2259_v54 = vsel %vm6314_vm9, %v5927_v58, %v2255_v46  ;;  %v312_v61 = vpop.permute.xlu1 %311 }
 0x449   : > { %v2263_v31 = vor.u32 1.1754944e-38, %v7098_v1  ;;  %vm1776_vm10 = vweird.f32 %v5877_v30  ;;  %vm2261_vm3 = vcmp.eq.f32.partialorder %v2260_v53, 8.507059e+37  ;;  %v2635_v0 = vpack.c.b16 %v2622_v16, %v2621_v57  ;;  %v302_v16 = vpop.permute.xlu0 %301 }
 0x44a   : > { %v1814_v23 = vsel %vm6225_vm12, %v7101_v56, %v1809_v12  ;;  %v1775_v2 = vadd.f32 %v6009_v63, %v1774_v32  ;;  %vm1777_vm11 = vweird.f32 %v6009_v63  ;;  %2776 = vmatpush.bf16.xpose.msra.mxu1 %v2757_v21  ;;  %v2526_v3 = vpack.c.bf16 %v2280_v59, %v2280_v59  ;;  %v7112_v12 = vld [vmem:[#allocation9_spill] sm:$0xff] }
 0x44b   : > { %v2264_v42 = vsel %vm2261_vm3, %v2263_v31, %v2259_v54  ;;  %v1780_v26 = vand.u32 2147483647, %v5877_v30  ;;  %v1782_v58 = vand.u32 2147483648, %v5877_v30  ;;  %v1799_v55 = vsel %vm6261_vm5, %v7102_v41, %v1794_v52  ;;  %vm1778_vm14 = vmor %vm1776_vm10, %vm1777_vm11  ;;  %v7113_v52 = vld [vmem:[#allocation6_spill] sm:$0xff] }
 0x44c   : > { %v2249_v36 = vsel %vm6255_vm7, %v7103_v51, %v2244_v43  ;;  %v1760_v15 = vadd.f32 %v7084_v27, %v7104_v24  ;;  %v2742_v35 = vunpack.c.l.b16 %v2527_v39  ;;  %v1815_v25 = vmul.f32 %v7105_v62, %v1814_v23  ;;  %v3023_v41 = vld [vmem:[%s6409_s3 + $0x8] sm:$0xff]  ;;  %v2802_v24 = vpop.permute.xlu2 %2801 }
 0x44d   : > { %v2265_v40 = vmul.f32 %v7106_v11, %v2264_v42  ;;  %vm1761_vm12 = vweird.f32 %v7107_v6  ;;  %v1765_v5 = vand.u32 2147483647, %v7107_v6  ;;  %v1767_v4 = vand.u32 2147483648, %v7107_v6  ;;  %2654 = vmatpush.bf16.xpose.msra.mxu2 %v2635_v0 }
 0x44e   : > { %v2741_v17 = vunpack.c.l.b16 %v2526_v3  ;;  %v1800_v44 = vmul.f32 %v7108_v7, %v1799_v55  ;;  %v2250_v49 = vmul.f32 %v7109_v33, %v2249_v36  ;;  %v1779_v14 = vsel %vm1778_vm14, %v6009_v63, %v1775_v2  ;;  %vm1763_vm7 = vmor %vm1761_vm12, %vm1762_vm8 }
 0x44f   : > { %vm1781_vm5 = vcmp.eq.f32.partialorder %v1780_v26, 8.507059e+37  ;;  %v1783_v19 = vor.u32 1.1754944e-38, %v1782_v58  ;;  %v2495_v18 = vpack.c.bf16 %v1815_v25, %v1815_v25  ;;  %v2525_v46 = vpack.c.bf16 %v2265_v40, %v2265_v40  ;;  %v3022_v26 = vld [vmem:[%s6409_s3] sm:$0xff] }
 0x450   : > { %v2756_v60 = vpack.c.b16 %v2742_v35, %v2741_v17  ;;  %v1764_v8 = vsel %vm1763_vm7, %v7084_v27, %v1760_v15  ;;  %v1768_v34 = vor.u32 1.1754944e-38, %v1767_v4  ;;  %vm1766_vm2 = vcmp.eq.f32.partialorder %v1765_v5, 8.507059e+37  ;;  %v2807_v62 = vpop.permute.xlu1 %2806 }
 0x451   : > { %v1784_v30 = vsel %vm1781_vm5, %v1783_v19, %v1779_v14  ;;  %v2494_v48 = vpack.c.bf16 %v1800_v44, %v1800_v44  ;;  %v2524_v53 = vpack.c.bf16 %v2250_v49, %v2250_v49  ;;  %v2620_v50 = vunpack.c.l.b16 %v2495_v18  ;;  %v2797_v55 = vpop.permute.xlu0 %2796 }
 0x452   : > { %2777 = vmatpush.bf16.xpose.msra.mxu1 %v2756_v60  ;;  %v1769_v47 = vsel %vm1766_vm2, %v1768_v34, %v1764_v8  ;;  %v2740_v63 = vunpack.c.l.b16 %v2525_v46  ;;  %v1785_v22 = vmul.f32 %v7110_v10, %v1784_v30  ;;  %v400_v38 = vadd.f32 %v7112_v12, %v312_v61 }
 0x453   : > { %v2619_v28 = vunpack.c.l.b16 %v2494_v48  ;;  %v2739_v32 = vunpack.c.l.b16 %v2524_v53  ;;  %v1770_v20 = vmul.f32 %v7111_v13, %v1769_v47  ;;  %v395_v21 = vadd.f32 %v7113_v52, %v302_v16 }
 0x454   : > { %v2493_v27 = vpack.c.bf16 %v1785_v22, %v1785_v22  ;;  %v409_v57 = vpack.c.bf16 %v400_v38, %v400_v38  ;;  %vm7114_vm15 = vcmask 261120  }
 0x455   : > { %v2634_v37 = vpack.c.b16 %v2620_v50, %v2619_v28  ;;  %v2755_v59 = vpack.c.b16 %v2740_v63, %v2739_v32  ;;  %v2492_v9 = vpack.c.bf16 %v1770_v20, %v1770_v20  ;;  %v407_v39 = vpack.c.bf16 %v395_v21, %v395_v21  ;;  %vm7115_vm8 = vmmov %vm7114_vm15 }
 0x456   : > { %v2618_v1 = vunpack.c.l.b16 %v2493_v27 }
 0x457   : > { %2655 = vmatpush.bf16.xpose.msra.mxu2 %v2634_v37  ;;  %v2617_v31 = vunpack.c.l.b16 %v2492_v9 }
 0x459   : > { %v2633_v45 = vpack.c.b16 %v2618_v1, %v2617_v31  ;;  %v2812_v40 = vpop.permute.xlu0 %2811 }
 0x45a   : > { %2778 = vmatpush.bf16.xpose.msra.mxu1 %v2755_v59 }
 0x45f   : > { %2656 = vmatpush.bf16.xpose.msra.mxu2 %v2633_v45 }
 0x461   : > { %2779 = vmatmul.bf16.vlgmr.msra.gmra.mxu1 %v409_v57 }
 0x466   : > { %2657 = vmatmul.bf16.vlgmr.msra.gmra.mxu2 %v407_v39 }
 0x4b5   : > { %v2597_v29 = vpop.f32.mrf.mxu1 }
 0x4bd   : > { %v2599_v43 = vpop.f32.mrf.mxu1 }
 0x4cb   : > { %v2719_v54 = vpop.f32.mrf.mxu3 }
 0x4d3   : > { %v2721_v0 = vpop.f32.mrf.mxu3 }
 0x4de   : > { %v2780_v56 = vpop.f32.mrf.mxu1 }
 0x4df   : > { %v2785_v23 = vpack.c.bf16 %v2780_v56, %v2719_v54 }
 0x4e1   : > { %2836 = vmatpush.bf16.msrb.mxu2 %v2785_v23 }
 0x4e6   : > { %v2782_v2 = vpop.f32.mrf.mxu1 }
 0x4e9   : > { %v2658_v3 = vpop.f32.mrf.mxu2 }
 0x4ea   : > { %v2784_v42 = vpack.c.bf16 %v2658_v3, %v2597_v29 }
 0x4ec   : > { %2837 = vmatpush.bf16.msrb.mxu2 %v2784_v42 }
 0x4ef   : > { %3008 = vmatmul.msk.bf16.vlgmr.msrb.gmra.mxu2 %vm7114_vm15, %v3022_v26 }
 0x4f1   : > { %v2660_v58 = vpop.f32.mrf.mxu2 }
 0x4ff   : > { %3009 = vmatmul.msk.bf16.gmra.mxu2 %vm7115_vm8, %v3023_v41 }
 0x572   : > { %v2839_v51 = vpop.f32.mrf.mxu2 }
 0x573   : > { %v2840_v36 = vadd.f32 %v2839_v51, %v2797_v55 }
 0x575   : > { %2849 = vst [vmem:[%s217_s12] sm:$0xff] %v2840_v36 }
 0x57a   : > { %v2841_v15 = vpop.f32.mrf.mxu2 }
 0x57b   : > { %v2842_v35 = vadd.f32 %v2841_v15, %v2802_v24 }
 0x57d   : > { %2850 = vst [vmem:[%s217_s12 + $0x8] sm:$0xff] %v2842_v35 }
 0x582   : > { %v2844_v25 = vpop.f32.mrf.mxu2 }
 0x583   : > { %v2845_v11 = vadd.f32 %v2844_v25, %v2807_v62 }
 0x585   : > { %2851 = vst [vmem:[%s217_s12 + $0x10] sm:$0xff] %v2845_v11 }
 0x58a   : > { %v2846_v6 = vpop.f32.mrf.mxu2 }
 0x58b   : > { %v2847_v5 = vadd.f32 %v2846_v6, %v2812_v40 }
 0x58d   : > { %2852 = vst [vmem:[%s217_s12 + $0x18] sm:$0xff] %v2847_v5 }
 0x58e   : > { %3439 = shalt.err (!%p3436_p3)
}
 0x58f   : > { %s3477_s10 = smov 128   ;;  %s3478_s11 = smov 8  }
 0x590   : > { %3028 = dma.vmem_to_hbm [thread:$0]  (%p3547_p5), %s2867_s17, 512, %s2869_s23, %s2854_s25, %s3477_s10, %s3477_s10, %s3478_s11  }
 0x591 PF: > { %p3034_p4 = scmp.ge.s32.totalorder %s3474_s21, 2  ;;  %s2883_s12 = sand.u32 1, %s3462_s18  }
 0x592   : > { %s2884_s13 = scalar_lea.sflag [#allocation3], %s2883_s12 }
 0x593   : > { %p3031_p7 = pnand %p3034_p4, %p3551_p6 }
 0x595   : > { %p3032_p8 = pneg %p3031_p7 }
 0x597   : > { %3457 = dma.done.wait (%p3032_p8), %s2884_s13, 512  }
 0x598   : > { %3459 = vsyncadd (%p3032_p8), %s2884_s13, 4294966784  ;;  %p15_p9 = scmp.ge.s32.totalorder %s3534_s24, 4   ;;  %s7116_s18 = smov %s3466_s19 }
 0x599   : > { %s7117_s19 = smov %s3470_s20  ;;  %s7118_s20 = smov %s3545_s27 }
 0x59a   : > { %s7119_s21 = smov %s3534_s24  ;;  %17 = sbr.rel (!%p15_p9) target bundleno = 3 (0x3), region = 75 }
 0x59f   :  { %2890 = vsyncpa [#allocation3], 1 }
 0x5a0   :  { %2892 = vsyncpa [#allocation3 + $0x1], 1 }

</bundles_post_ra>
